<compile_context>
chip_gen: v6e
topology: v6e:2x2x1
jax: 0.10.0
libtpu: 0.0.40
codegen_flags: <defaults>
</compile_context>

<pallas_src>
import math

import numpy as np

import jax
import jax.numpy as jnp
from jax import lax
from jax.experimental import pallas as pl
from jax.experimental.pallas import tpu as pltpu

# ----------------------------- model config (small) --------------------------
B = 2               # batch
N_MELS = 16         # whisper mel channels
FRAMES = 32         # input frames; conv2 stride 2 -> SEQ = 16
D_MODEL = 64
NHEAD = 8
HEAD_DIM = D_MODEL // NHEAD
WHISPER_LAYERS = 1
ADD_LAYERS = 2              # self.num_layers in the PyTorch module
LAYERS = WHISPER_LAYERS + ADD_LAYERS
FFN_DIM = 128               # dim_feedforward (PyTorch default 2048; scaled down)
CLASS_NUM = 8
OUT_PAD = 128               # lane-dense logits store; sliced to CLASS_NUM in wrapper
SEQ = (FRAMES + 2 - 3) // 2 + 1       # conv2: k=3, stride=2, pad=1 -> 16
ATTN_SCALE = 1.0 / math.sqrt(HEAD_DIM)
BF16 = jnp.bfloat16
F32 = jnp.float32
FW = 192                    # f32 blob lane width


# ------------------------- packed-parameter layouts ---------------------------
def _layout(entries):
    off, cur = {}, 0
    for name, rows in entries:
        off[name] = cur
        cur += rows
    return off, cur


_ENTRIES64 = (
    [("w1cat", 3 * N_MELS), ("w2cat", 3 * D_MODEL),
     ("s_prev", B * FRAMES), ("s_next", B * FRAMES)]
    + [(f"s2_{k}", B * SEQ) for k in range(3)]
    + [("headmask", NHEAD * SEQ)]
    + [(f"wo{l}", D_MODEL) for l in range(LAYERS)]
    + [(f"fc2{l}", FFN_DIM) for l in range(LAYERS)]
)
OFF64, ROWS64 = _layout(_ENTRIES64)

_ENTRIES128 = ([(f"fc1{l}", D_MODEL) for l in range(LAYERS)]
               + [("cls_w", D_MODEL), ("segsum", NHEAD * SEQ)])
OFF128, ROWS128 = _layout(_ENTRIES128)

_ENTRIES192 = [(f"wqkv{l}", D_MODEL) for l in range(LAYERS)]
OFF192, ROWS192 = _layout(_ENTRIES192)

_ENTRIESF = ([("pos2", B * SEQ), ("b1", 1), ("b2", 1), ("_pad0", 6)]
             + sum([[(f"{nm}{l}", 1) for nm in
                     ("ln1_g", "ln1_b", "ln2_g", "ln2_b",
                      "bqkv", "bo", "fc1_b", "fc2_b")]
                    for l in range(LAYERS)], [])
             + [("ln_post_g", 1), ("ln_post_b", 1), ("cls_b", 1), ("_pad1", 5)])
OFFF, ROWSF = _layout(_ENTRIESF)
assert ROWSF % 8 == 0


# ------------------------------ fused kernel ---------------------------------
def _fused_forward_kernel(x_ref, b64_ref, b128_ref, b192_ref, fb_ref, out_ref):
    """Full SpeechEmotionClassifier forward, both batch elements, one invocation."""

    def w64(name, rows):
        o = OFF64[name]
        return b64_ref[o:o + rows, :]

    def w128(name, rows):
        o = OFF128[name]
        return b128_ref[o:o + rows, :]

    def frow(name, width):
        r = OFFF[name]
        return fb_ref[r:r + 1, :width]          # (1, width) f32, broadcasts over rows

    def gelu(v):                                # tanh-approx GELU, f32 math
        return 0.5 * v * (1.0 + jnp.tanh(0.7978845608028654 *
                                         (v + 0.044715 * v * v * v)))

    def layer_norm(v, g, b):
        mu = jnp.mean(v, axis=-1, keepdims=True)
        c = v - mu
        var = jnp.mean(c * c, axis=-1, keepdims=True)
        return c * lax.rsqrt(var + 1e-5) * g + b

    # static 0/1 matrices (hoisted once; reused by every layer / batch element)
    headmask = w64("headmask", NHEAD * SEQ)                    # (128, 64) bf16
    segsum = w128("segsum", NHEAD * SEQ).astype(F32)           # (128, 128) f32

    def attention(h, l):
        """Block-diagonal head-packed MHA on (B*SEQ, D) activations."""
        o192 = OFF192[f"wqkv{l}"]
        wqkv = b192_ref[o192:o192 + D_MODEL, :]                # (64, 192) bf16
        qkv = (jnp.dot(h.astype(BF16), wqkv, preferred_element_type=F32)
               + frow(f"bqkv{l}", 3 * D_MODEL))                # (B*SEQ, 192) f32
        outs = []
        for b in range(B):                                     # static, B = 2
            r0 = b * SEQ
            q = qkv[r0:r0 + SEQ, 0:D_MODEL].astype(BF16)                   # (16, 64)
            k = qkv[r0:r0 + SEQ, D_MODEL:2 * D_MODEL].astype(BF16)
            v = qkv[r0:r0 + SEQ, 2 * D_MODEL:3 * D_MODEL].astype(BF16)
            k_bd = jnp.tile(k, (NHEAD, 1)) * headmask                      # (128, 64)
            v_bd = jnp.tile(v, (NHEAD, 1)) * headmask                      # (128, 64)
            # scores (16, NHEAD*16); K consumed via dot_general (no explicit transpose)
            s = lax.dot_general(q, k_bd, (((1,), (1,)), ((), ())),
                                preferred_element_type=F32) * ATTN_SCALE
            # segmented softmax on the lane-dense tile; softmax is shift-invariant so
            # the global row max stabilizes every 16-lane head segment.
            m = jnp.max(s, axis=-1, keepdims=True)
            e = jnp.exp(s - m)
            den = jnp.dot(e, segsum, preferred_element_type=F32)  # per-segment sums
            p = (e * pl.reciprocal(den, approx=True)).astype(BF16)         # (16, 128)
            outs.append(jnp.dot(p, v_bd, preferred_element_type=F32))      # (16, 64)
        o = jnp.concatenate(outs, axis=0).astype(BF16)                     # (B*SEQ, 64)
        wo = w64(f"wo{l}", D_MODEL)
        return (jnp.dot(o, wo, preferred_element_type=F32)
                + frow(f"bo{l}", D_MODEL))

    def ffn(h, l, act):
        w1 = w128(f"fc1{l}", D_MODEL)                                      # (64, 128)
        u = (jnp.dot(h.astype(BF16), w1, preferred_element_type=F32)
             + frow(f"fc1_b{l}", FFN_DIM))
        u = gelu(u) if act == "gelu" else jnp.maximum(u, 0.0)
        w2 = w64(f"fc2{l}", FFN_DIM)                                       # (128, 64)
        return (jnp.dot(u.astype(BF16), w2, preferred_element_type=F32)
                + frow(f"fc2_b{l}", D_MODEL))

    # ------------------------------- conv stem --------------------------------
    x = x_ref[...].astype(BF16)                                # (B*FRAMES, N_MELS)
    x_prev = jnp.dot(w64("s_prev", B * FRAMES), x,
                     preferred_element_type=F32).astype(BF16)  # shifted copies via
    x_next = jnp.dot(w64("s_next", B * FRAMES), x,
                     preferred_element_type=F32).astype(BF16)  # static 0/1 matmuls
    x_cat = jnp.concatenate([x_prev, x, x_next], axis=-1)      # (64, 48)
    h = gelu(jnp.dot(x_cat, w64("w1cat", 3 * N_MELS),
                     preferred_element_type=F32) + frow("b1", D_MODEL))    # (64, 64)
    hb = h.astype(BF16)
    taps = [jnp.dot(w64(f"s2_{k}", B * SEQ), hb,
                    preferred_element_type=F32).astype(BF16) for k in range(3)]
    h_cat = jnp.concatenate(taps, axis=-1)                     # (32, 192), stride-2 taps
    xs = gelu(jnp.dot(h_cat, w64("w2cat", 3 * D_MODEL),
                      preferred_element_type=F32) + frow("b2", D_MODEL))
    xs = xs + fb_ref[OFFF["pos2"]:OFFF["pos2"] + B * SEQ, :D_MODEL]        # (32, 64)

    # -------------------- whisper encoder layer(s): pre-LN, GELU ---------------
    for l in range(WHISPER_LAYERS):
        xs = xs + attention(layer_norm(xs, frow(f"ln1_g{l}", D_MODEL),
                                       frow(f"ln1_b{l}", D_MODEL)), l)
        xs = xs + ffn(layer_norm(xs, frow(f"ln2_g{l}", D_MODEL),
                                 frow(f"ln2_b{l}", D_MODEL)), l, "gelu")
    xs = layer_norm(xs, frow("ln_post_g", D_MODEL), frow("ln_post_b", D_MODEL))

    # --------------- additional transformer layers: post-LN, ReLU --------------
    for i in range(ADD_LAYERS):
        l = WHISPER_LAYERS + i
        xs = layer_norm(xs + attention(xs, l),
                        frow(f"ln1_g{l}", D_MODEL), frow(f"ln1_b{l}", D_MODEL))
        xs = layer_norm(xs + ffn(xs, l, "relu"),
                        frow(f"ln2_g{l}", D_MODEL), frow(f"ln2_b{l}", D_MODEL))

    # -------------------------------- classifier ------------------------------
    cls_w = w128("cls_w", D_MODEL)                             # (64, 128), zero-padded
    pooled = jnp.concatenate([xs[0:1, :], xs[SEQ:SEQ + 1, :]],
                             axis=0).astype(BF16)              # token 0 of each batch
    out_ref[...] = (jnp.dot(pooled, cls_w, preferred_element_type=F32)
                    + frow("cls_b", OUT_PAD))                  # (B, 128) lane-dense


# ------------------------------- host wrapper ---------------------------------
def forward(packed, input_features):
    """Mirrors SpeechEmotionClassifier.forward; input_features is (B, n_mels, frames)."""
    b64, b128, b192, fb = packed
    x = jnp.transpose(input_features, (0, 2, 1)).reshape(B * FRAMES, N_MELS)
    logits_pad = pl.pallas_call(
        _fused_forward_kernel,
        out_shape=jax.ShapeDtypeStruct((B, OUT_PAD), F32),
        grid=(1,),
        in_specs=[
            pl.BlockSpec((B * FRAMES, N_MELS), lambda i: (0, 0)),
            pl.BlockSpec((ROWS64, D_MODEL), lambda i: (0, 0)),
            pl.BlockSpec((ROWS128, FFN_DIM), lambda i: (0, 0)),
            pl.BlockSpec((ROWS192, 3 * D_MODEL), lambda i: (0, 0)),
            pl.BlockSpec((ROWSF, FW), lambda i: (0, 0)),
        ],
        out_specs=pl.BlockSpec((B, OUT_PAD), lambda i: (0, 0)),
        compiler_params=pltpu.CompilerParams(
            dimension_semantics=("arbitrary",)),
    )(x, b64, b128, b192, fb)
    return logits_pad[:, :CLASS_NUM]


# ---------------------- static 0/1 matrices (host, once) -----------------------
def _static_selection_matrices():
    sp = np.zeros((B * FRAMES, B * FRAMES), np.float32)      # row i -> x[i-1] (in-batch)
    sn = np.zeros((B * FRAMES, B * FRAMES), np.float32)      # row i -> x[i+1]
    s2 = [np.zeros((B * SEQ, B * FRAMES), np.float32) for _ in range(3)]  # stride-2 taps
    for b in range(B):
        for t in range(FRAMES):
            if t - 1 >= 0:
                sp[b * FRAMES + t, b * FRAMES + t - 1] = 1.0
            if t + 1 < FRAMES:
                sn[b * FRAMES + t, b * FRAMES + t + 1] = 1.0
        for s in range(SEQ):
            for k in range(3):
                src = 2 * s + k - 1
                if 0 <= src < FRAMES:
                    s2[k][b * SEQ + s, b * FRAMES + src] = 1.0
    hm = np.zeros((NHEAD * SEQ, D_MODEL), np.float32)        # block-diag head mask
    seg = np.zeros((NHEAD * SEQ, NHEAD * SEQ), np.float32)   # per-16-lane segment sums
    for hh in range(NHEAD):
        hm[hh * SEQ:(hh + 1) * SEQ, hh * HEAD_DIM:(hh + 1) * HEAD_DIM] = 1.0
        seg[hh * SEQ:(hh + 1) * SEQ, hh * SEQ:(hh + 1) * SEQ] = 1.0
    return sp, sn, s2, hm, seg


# ------------------------------ parameter packing -------------------------------
def pack_params(params):
    wsp = params["whisper"]
    layers = list(wsp["layers"]) + list(params["add_layers"])
    sp, sn, s2, hm, seg = _static_selection_matrices()

    # ---- bf16 blob, 64 lanes ----
    p64 = {
        "w1cat": jnp.concatenate(list(wsp["conv1_wk"]), axis=0),
        "w2cat": jnp.concatenate(list(wsp["conv2_wk"]), axis=0),
        "s_prev": jnp.asarray(sp), "s_next": jnp.asarray(sn),
        "s2_0": jnp.asarray(s2[0]), "s2_1": jnp.asarray(s2[1]),
        "s2_2": jnp.asarray(s2[2]), "headmask": jnp.asarray(hm),
    }
    for l, L in enumerate(layers):
        p64[f"wo{l}"] = L["wo"]
        p64[f"fc2{l}"] = L["fc2_w"]
    b64 = jnp.concatenate([p64[name].astype(BF16) for name, _ in _ENTRIES64], axis=0)

    # ---- bf16 blob, 128 lanes ----
    cls_w_pad = jnp.zeros((D_MODEL, OUT_PAD), F32).at[:, :CLASS_NUM].set(
        params["cls_w"].astype(F32))
    p128 = {f"fc1{l}": layers[l]["fc1_w"] for l in range(LAYERS)}
    p128["cls_w"] = cls_w_pad
    p128["segsum"] = jnp.asarray(seg)
    b128 = jnp.concatenate([p128[name].astype(BF16) for name, _ in _ENTRIES128], axis=0)

    # ---- bf16 blob, 192 lanes ----
    b192 = jnp.concatenate([layers[l]["wqkv"].astype(BF16) for l in range(LAYERS)],
                           axis=0)

    # ---- f32 blob (biases / LayerNorm / positional), 192 lanes ----
    fb = np.zeros((ROWSF, FW), np.float32)

    def put_row(name, vec):
        v = np.asarray(vec, dtype=np.float32).reshape(-1)
        fb[OFFF[name], :v.shape[0]] = v

    pos = np.asarray(wsp["pos_embed"], dtype=np.float32)[:SEQ]
    fb[OFFF["pos2"]:OFFF["pos2"] + B * SEQ, :D_MODEL] = np.tile(pos, (B, 1))
    put_row("b1", wsp["conv1_b"])
    put_row("b2", wsp["conv2_b"])
    for l, L in enumerate(layers):
        put_row(f"ln1_g{l}", L["ln1_g"]); put_row(f"ln1_b{l}", L["ln1_b"])
        put_row(f"ln2_g{l}", L["ln2_g"]); put_row(f"ln2_b{l}", L["ln2_b"])
        put_row(f"bqkv{l}", L["bqkv"]); put_row(f"bo{l}", L["bo"])
        put_row(f"fc1_b{l}", L["fc1_b"]); put_row(f"fc2_b{l}", L["fc2_b"])
    put_row("ln_post_g", wsp["ln_post_g"]); put_row("ln_post_b", wsp["ln_post_b"])
    put_row("cls_b", params["cls_b"])

    return b64, b128, b192, jnp.asarray(fb)


# ------------------------------- parameter init --------------------------------
def init_params(key):
    def nxt():
        nonlocal key
        key, sub = jax.random.split(key)
        return sub

    def w(*shape, scale=0.02):     # matmul weights stored bf16 (MXU inputs)
        return (jax.random.normal(nxt(), shape, F32) * scale).astype(BF16)

    def v(*shape, scale=0.02):     # f32 vectors (biases / LN / pos)
        return jax.random.normal(nxt(), shape, F32) * scale

    def layer():
        return dict(
            ln1_g=1.0 + v(D_MODEL), ln1_b=v(D_MODEL),
            ln2_g=1.0 + v(D_MODEL), ln2_b=v(D_MODEL),
            wqkv=w(D_MODEL, 3 * D_MODEL), bqkv=v(3 * D_MODEL),
            wo=w(D_MODEL, D_MODEL), bo=v(D_MODEL),
            fc1_w=w(D_MODEL, FFN_DIM), fc1_b=v(FFN_DIM),
            fc2_w=w(FFN_DIM, D_MODEL), fc2_b=v(D_MODEL),
        )

    whisper = dict(
        conv1_wk=[w(N_MELS, D_MODEL) for _ in range(3)], conv1_b=v(D_MODEL),
        conv2_wk=[w(D_MODEL, D_MODEL) for _ in range(3)], conv2_b=v(D_MODEL),
        pos_embed=v(SEQ, D_MODEL),
        layers=[layer() for _ in range(WHISPER_LAYERS)],
        ln_post_g=1.0 + v(D_MODEL), ln_post_b=v(D_MODEL),
    )
    return dict(
        whisper=whisper,
        add_layers=[layer() for _ in range(ADD_LAYERS)],
        cls_w=w(D_MODEL, CLASS_NUM), cls_b=v(CLASS_NUM),
    )


# ------------------------------------ main -------------------------------------
if __name__ == "__main__":
    key = jax.random.PRNGKey(0)
    k_in, k_par = jax.random.split(key)
    # mel-spectrogram style input, PyTorch NCL layout
    input_features = jax.random.normal(k_in, (B, N_MELS, FRAMES), F32)
    params = init_params(k_par)
    packed = pack_params(params)

    fwd = jax.jit(forward)
    logits = fwd(packed, input_features)
    jax.block_until_ready(logits)
    assert logits.shape == (B, CLASS_NUM)
    assert bool(jnp.all(jnp.isfinite(logits)))
    print("KERNEL_OK")
</pallas_src>

<mosaic_0001>
module attributes {stable_mosaic.version = 11 : i64} {
  func.func @_fused_forward_kernel(%arg0: i32, %arg1: memref<64x16xf32, #tpu.memory_space<vmem>>, %arg2: memref<1168x64xbf16, #tpu.memory_space<vmem>>, %arg3: memref<384x128xbf16, #tpu.memory_space<vmem>>, %arg4: memref<192x192xbf16, #tpu.memory_space<vmem>>, %arg5: memref<72x192xf32, #tpu.memory_space<vmem>>, %arg6: memref<2x128xf32, #tpu.memory_space<vmem>>) attributes {dimension_semantics = [#tpu.dimension_semantics<arbitrary>], iteration_bounds = array<i64: 1>, scalar_prefetch = 0 : i64, scratch_operands = 0 : i64, tpu.core_type = #tpu.core_type<tc>, window_params = [{pipeline_mode = #tpu.pipeline_mode<synchronous>, transform_indices = @transform_0, window_bounds = array<i64: 64, 16>}, {pipeline_mode = #tpu.pipeline_mode<synchronous>, transform_indices = @transform_1, window_bounds = array<i64: 1168, 64>}, {pipeline_mode = #tpu.pipeline_mode<synchronous>, transform_indices = @transform_2, window_bounds = array<i64: 384, 128>}, {pipeline_mode = #tpu.pipeline_mode<synchronous>, transform_indices = @transform_3, window_bounds = array<i64: 192, 192>}, {pipeline_mode = #tpu.pipeline_mode<synchronous>, transform_indices = @transform_4, window_bounds = array<i64: 72, 192>}, {pipeline_mode = #tpu.pipeline_mode<synchronous>, transform_indices = @transform_5, window_bounds = array<i64: 2, 128>}]} {
    %c464 = arith.constant 464 : index
    %c0 = arith.constant 0 : index
    %0 = vector.load %arg2[%c464, %c0] : memref<1168x64xbf16, #tpu.memory_space<vmem>>, vector<128x64xbf16>
    %c256 = arith.constant 256 : index
    %c0_0 = arith.constant 0 : index
    %1 = vector.load %arg3[%c256, %c0_0] : memref<384x128xbf16, #tpu.memory_space<vmem>>, vector<128x128xbf16>
    %2 = arith.extf %1 : vector<128x128xbf16> to vector<128x128xf32>
    %c0_1 = arith.constant 0 : index
    %c0_2 = arith.constant 0 : index
    %3 = vector.load %arg1[%c0_1, %c0_2] : memref<64x16xf32, #tpu.memory_space<vmem>>, vector<64x16xf32>
    %4 = arith.truncf %3 : vector<64x16xf32> to vector<64x16xbf16>
    %c240 = arith.constant 240 : index
    %c0_3 = arith.constant 0 : index
    %5 = vector.load %arg2[%c240, %c0_3] : memref<1168x64xbf16, #tpu.memory_space<vmem>>, vector<64x64xbf16>
    %cst = arith.constant dense<0.000000e+00> : vector<64x16xf32>
    %6 = tpu.matmul %5, %4, %cst {dimension_numbers = #tpu.dot_dimension_numbers<[1], [0], [0], [1], [0, 0, 1, 1], [], []>} : vector<64x64xbf16>, vector<64x16xbf16>, vector<64x16xf32> -> vector<64x16xf32>
    %7 = arith.truncf %6 : vector<64x16xf32> to vector<64x16xbf16>
    %c304 = arith.constant 304 : index
    %c0_4 = arith.constant 0 : index
    %8 = vector.load %arg2[%c304, %c0_4] : memref<1168x64xbf16, #tpu.memory_space<vmem>>, vector<64x64xbf16>
    %cst_5 = arith.constant dense<0.000000e+00> : vector<64x16xf32>
    %9 = tpu.matmul %8, %4, %cst_5 {dimension_numbers = #tpu.dot_dimension_numbers<[1], [0], [0], [1], [0, 0, 1, 1], [], []>} : vector<64x64xbf16>, vector<64x16xbf16>, vector<64x16xf32> -> vector<64x16xf32>
    %10 = arith.truncf %9 : vector<64x16xf32> to vector<64x16xbf16>
    %11 = tpu.concatenate %7, %4, %10 in 1 : vector<64x16xbf16>, vector<64x16xbf16>, vector<64x16xbf16> -> vector<64x48xbf16>
    %c0_6 = arith.constant 0 : index
    %c0_7 = arith.constant 0 : index
    %12 = vector.load %arg2[%c0_6, %c0_7] : memref<1168x64xbf16, #tpu.memory_space<vmem>>, vector<48x64xbf16>
    %cst_8 = arith.constant dense<0.000000e+00> : vector<64x64xf32>
    %13 = tpu.matmul %11, %12, %cst_8 {dimension_numbers = #tpu.dot_dimension_numbers<[1], [0], [0], [1], [0, 0, 1, 1], [], []>} : vector<64x48xbf16>, vector<48x64xbf16>, vector<64x64xf32> -> vector<64x64xf32>
    %c32 = arith.constant 32 : index
    %c0_9 = arith.constant 0 : index
    %14 = vector.load %arg5[%c32, %c0_9] : memref<72x192xf32, #tpu.memory_space<vmem>>, vector<1x64xf32>
    %15 = vector.broadcast %14 : vector<1x64xf32> to vector<64x64xf32>
    %16 = arith.addf %13, %15 : vector<64x64xf32>
    %cst_10 = arith.constant 5.000000e-01 : f32
    %17 = vector.broadcast %cst_10 : f32 to vector<64x64xf32>
    %18 = arith.mulf %17, %16 : vector<64x64xf32>
    %cst_11 = arith.constant 4.471500e-02 : f32
    %19 = vector.broadcast %cst_11 : f32 to vector<64x64xf32>
    %20 = arith.mulf %19, %16 : vector<64x64xf32>
    %21 = arith.mulf %20, %16 : vector<64x64xf32>
    %22 = arith.mulf %21, %16 : vector<64x64xf32>
    %23 = arith.addf %16, %22 : vector<64x64xf32>
    %cst_12 = arith.constant 0.797884583 : f32
    %24 = vector.broadcast %cst_12 : f32 to vector<64x64xf32>
    %25 = arith.mulf %24, %23 : vector<64x64xf32>
    %26 = math.tanh %25 : vector<64x64xf32>
    %cst_13 = arith.constant 1.000000e+00 : f32
    %27 = vector.broadcast %cst_13 : f32 to vector<64x64xf32>
    %28 = arith.addf %27, %26 : vector<64x64xf32>
    %29 = arith.mulf %18, %28 : vector<64x64xf32>
    %30 = arith.truncf %29 : vector<64x64xf32> to vector<64x64xbf16>
    %c368 = arith.constant 368 : index
    %c0_14 = arith.constant 0 : index
    %31 = vector.load %arg2[%c368, %c0_14] : memref<1168x64xbf16, #tpu.memory_space<vmem>>, vector<32x64xbf16>
    %cst_15 = arith.constant dense<0.000000e+00> : vector<32x64xf32>
    %32 = tpu.matmul %31, %30, %cst_15 {dimension_numbers = #tpu.dot_dimension_numbers<[1], [0], [0], [1], [0, 0, 1, 1], [], []>} : vector<32x64xbf16>, vector<64x64xbf16>, vector<32x64xf32> -> vector<32x64xf32>
    %33 = arith.truncf %32 : vector<32x64xf32> to vector<32x64xbf16>
    %c400 = arith.constant 400 : index
    %c0_16 = arith.constant 0 : index
    %34 = vector.load %arg2[%c400, %c0_16] : memref<1168x64xbf16, #tpu.memory_space<vmem>>, vector<32x64xbf16>
    %cst_17 = arith.constant dense<0.000000e+00> : vector<32x64xf32>
    %35 = tpu.matmul %34, %30, %cst_17 {dimension_numbers = #tpu.dot_dimension_numbers<[1], [0], [0], [1], [0, 0, 1, 1], [], []>} : vector<32x64xbf16>, vector<64x64xbf16>, vector<32x64xf32> -> vector<32x64xf32>
    %36 = arith.truncf %35 : vector<32x64xf32> to vector<32x64xbf16>
    %c432 = arith.constant 432 : index
    %c0_18 = arith.constant 0 : index
    %37 = vector.load %arg2[%c432, %c0_18] : memref<1168x64xbf16, #tpu.memory_space<vmem>>, vector<32x64xbf16>
    %cst_19 = arith.constant dense<0.000000e+00> : vector<32x64xf32>
    %38 = tpu.matmul %37, %30, %cst_19 {dimension_numbers = #tpu.dot_dimension_numbers<[1], [0], [0], [1], [0, 0, 1, 1], [], []>} : vector<32x64xbf16>, vector<64x64xbf16>, vector<32x64xf32> -> vector<32x64xf32>
    %39 = arith.truncf %38 : vector<32x64xf32> to vector<32x64xbf16>
    %40 = tpu.concatenate %33, %36, %39 in 1 : vector<32x64xbf16>, vector<32x64xbf16>, vector<32x64xbf16> -> vector<32x192xbf16>
    %c48 = arith.constant 48 : index
    %c0_20 = arith.constant 0 : index
    %41 = vector.load %arg2[%c48, %c0_20] : memref<1168x64xbf16, #tpu.memory_space<vmem>>, vector<192x64xbf16>
    %cst_21 = arith.constant dense<0.000000e+00> : vector<32x64xf32>
    %42 = tpu.matmul %40, %41, %cst_21 {dimension_numbers = #tpu.dot_dimension_numbers<[1], [0], [0], [1], [0, 0, 1, 1], [], []>} : vector<32x192xbf16>, vector<192x64xbf16>, vector<32x64xf32> -> vector<32x64xf32>
    %c33 = arith.constant 33 : index
    %c0_22 = arith.constant 0 : index
    %43 = vector.load %arg5[%c33, %c0_22] : memref<72x192xf32, #tpu.memory_space<vmem>>, vector<1x64xf32>
    %44 = vector.broadcast %43 : vector<1x64xf32> to vector<32x64xf32>
    %45 = arith.addf %42, %44 : vector<32x64xf32>
    %cst_23 = arith.constant 5.000000e-01 : f32
    %46 = vector.broadcast %cst_23 : f32 to vector<32x64xf32>
    %47 = arith.mulf %46, %45 : vector<32x64xf32>
    %cst_24 = arith.constant 4.471500e-02 : f32
    %48 = vector.broadcast %cst_24 : f32 to vector<32x64xf32>
    %49 = arith.mulf %48, %45 : vector<32x64xf32>
    %50 = arith.mulf %49, %45 : vector<32x64xf32>
    %51 = arith.mulf %50, %45 : vector<32x64xf32>
    %52 = arith.addf %45, %51 : vector<32x64xf32>
    %cst_25 = arith.constant 0.797884583 : f32
    %53 = vector.broadcast %cst_25 : f32 to vector<32x64xf32>
    %54 = arith.mulf %53, %52 : vector<32x64xf32>
    %55 = math.tanh %54 : vector<32x64xf32>
    %cst_26 = arith.constant 1.000000e+00 : f32
    %56 = vector.broadcast %cst_26 : f32 to vector<32x64xf32>
    %57 = arith.addf %56, %55 : vector<32x64xf32>
    %58 = arith.mulf %47, %57 : vector<32x64xf32>
    %c0_27 = arith.constant 0 : index
    %c0_28 = arith.constant 0 : index
    %59 = vector.load %arg5[%c0_27, %c0_28] : memref<72x192xf32, #tpu.memory_space<vmem>>, vector<32x64xf32>
    %60 = arith.addf %58, %59 : vector<32x64xf32>
    %c40 = arith.constant 40 : index
    %c0_29 = arith.constant 0 : index
    %61 = vector.load %arg5[%c40, %c0_29] : memref<72x192xf32, #tpu.memory_space<vmem>>, vector<1x64xf32>
    %c41 = arith.constant 41 : index
    %c0_30 = arith.constant 0 : index
    %62 = vector.load %arg5[%c41, %c0_30] : memref<72x192xf32, #tpu.memory_space<vmem>>, vector<1x64xf32>
    %cst_31 = arith.constant dense<0.000000e+00> : vector<32xf32>
    %63 = vector.multi_reduction <add>, %60, %cst_31 [1] : vector<32x64xf32> to vector<32xf32>
    %64 = vector.shape_cast %63 : vector<32xf32> to vector<32x1xf32>
    %cst_32 = arith.constant 6.400000e+01 : f32
    %65 = vector.broadcast %cst_32 : f32 to vector<32x1xf32>
    %66 = arith.divf %64, %65 : vector<32x1xf32>
    %67 = vector.broadcast %66 : vector<32x1xf32> to vector<32x64xf32>
    %68 = arith.subf %60, %67 : vector<32x64xf32>
    %69 = arith.mulf %68, %68 : vector<32x64xf32>
    %cst_33 = arith.constant dense<0.000000e+00> : vector<32xf32>
    %70 = vector.multi_reduction <add>, %69, %cst_33 [1] : vector<32x64xf32> to vector<32xf32>
    %71 = vector.shape_cast %70 : vector<32xf32> to vector<32x1xf32>
    %cst_34 = arith.constant 6.400000e+01 : f32
    %72 = vector.broadcast %cst_34 : f32 to vector<32x1xf32>
    %73 = arith.divf %71, %72 : vector<32x1xf32>
    %cst_35 = arith.constant 9.99999974E-6 : f32
    %74 = vector.broadcast %cst_35 : f32 to vector<32x1xf32>
    %75 = arith.addf %73, %74 : vector<32x1xf32>
    %76 = math.rsqrt %75 : vector<32x1xf32>
    %77 = vector.broadcast %76 : vector<32x1xf32> to vector<32x64xf32>
    %78 = arith.mulf %68, %77 : vector<32x64xf32>
    %79 = vector.broadcast %61 : vector<1x64xf32> to vector<32x64xf32>
    %80 = arith.mulf %78, %79 : vector<32x64xf32>
    %81 = vector.broadcast %62 : vector<1x64xf32> to vector<32x64xf32>
    %82 = arith.addf %80, %81 : vector<32x64xf32>
    %c0_36 = arith.constant 0 : index
    %c0_37 = arith.constant 0 : index
    %83 = vector.load %arg4[%c0_36, %c0_37] : memref<192x192xbf16, #tpu.memory_space<vmem>>, vector<64x192xbf16>
    %84 = arith.truncf %82 : vector<32x64xf32> to vector<32x64xbf16>
    %cst_38 = arith.constant dense<0.000000e+00> : vector<32x192xf32>
    %85 = tpu.matmul %84, %83, %cst_38 {dimension_numbers = #tpu.dot_dimension_numbers<[1], [0], [0], [1], [0, 0, 1, 1], [], []>} : vector<32x64xbf16>, vector<64x192xbf16>, vector<32x192xf32> -> vector<32x192xf32>
    %c44 = arith.constant 44 : index
    %c0_39 = arith.constant 0 : index
    %86 = vector.load %arg5[%c44, %c0_39] : memref<72x192xf32, #tpu.memory_space<vmem>>, vector<1x192xf32>
    %87 = vector.broadcast %86 : vector<1x192xf32> to vector<32x192xf32>
    %88 = arith.addf %85, %87 : vector<32x192xf32>
    %89 = vector.extract_strided_slice %88 {offsets = [0, 0], sizes = [16, 64], strides = [1, 1]} : vector<32x192xf32> to vector<16x64xf32>
    %90 = arith.truncf %89 : vector<16x64xf32> to vector<16x64xbf16>
    %91 = vector.extract_strided_slice %88 {offsets = [0, 64], sizes = [16, 64], strides = [1, 1]} : vector<32x192xf32> to vector<16x64xf32>
    %92 = arith.truncf %91 : vector<16x64xf32> to vector<16x64xbf16>
    %93 = vector.extract_strided_slice %88 {offsets = [0, 128], sizes = [16, 64], strides = [1, 1]} : vector<32x192xf32> to vector<16x64xf32>
    %94 = arith.truncf %93 : vector<16x64xf32> to vector<16x64xbf16>
    %95 = tpu.concatenate %92, %92, %92, %92, %92, %92, %92, %92 in 0 : vector<16x64xbf16>, vector<16x64xbf16>, vector<16x64xbf16>, vector<16x64xbf16>, vector<16x64xbf16>, vector<16x64xbf16>, vector<16x64xbf16>, vector<16x64xbf16> -> vector<128x64xbf16>
    %96 = arith.mulf %95, %0 : vector<128x64xbf16>
    %97 = tpu.concatenate %94, %94, %94, %94, %94, %94, %94, %94 in 0 : vector<16x64xbf16>, vector<16x64xbf16>, vector<16x64xbf16>, vector<16x64xbf16>, vector<16x64xbf16>, vector<16x64xbf16>, vector<16x64xbf16>, vector<16x64xbf16> -> vector<128x64xbf16>
    %98 = arith.mulf %97, %0 : vector<128x64xbf16>
    %cst_40 = arith.constant dense<0.000000e+00> : vector<16x128xf32>
    %99 = tpu.matmul %90, %96, %cst_40 {dimension_numbers = #tpu.dot_dimension_numbers<[1], [1], [0], [0], [0, 0, 1, 0], [], []>} : vector<16x64xbf16>, vector<128x64xbf16>, vector<16x128xf32> -> vector<16x128xf32>
    %cst_41 = arith.constant 0.353553385 : f32
    %100 = vector.broadcast %cst_41 : f32 to vector<16x128xf32>
    %101 = arith.mulf %99, %100 : vector<16x128xf32>
    %cst_42 = arith.constant dense<0xFF800000> : vector<16xf32>
    %102 = vector.multi_reduction <maximumf>, %101, %cst_42 [1] : vector<16x128xf32> to vector<16xf32>
    %103 = vector.shape_cast %102 : vector<16xf32> to vector<16x1xf32>
    %104 = vector.broadcast %103 : vector<16x1xf32> to vector<16x128xf32>
    %105 = arith.subf %101, %104 : vector<16x128xf32>
    %106 = math.exp %105 : vector<16x128xf32>
    %cst_43 = arith.constant dense<0.000000e+00> : vector<16x128xf32>
    %107 = tpu.matmul %106, %2, %cst_43 {dimension_numbers = #tpu.dot_dimension_numbers<[1], [0], [0], [1], [0, 0, 1, 1], [], []>} : vector<16x128xf32>, vector<128x128xf32>, vector<16x128xf32> -> vector<16x128xf32>
    %108 = tpu.reciprocal %107 {approx = true} : vector<16x128xf32> -> vector<16x128xf32>
    %109 = arith.mulf %106, %108 : vector<16x128xf32>
    %110 = arith.truncf %109 : vector<16x128xf32> to vector<16x128xbf16>
    %cst_44 = arith.constant dense<0.000000e+00> : vector<16x64xf32>
    %111 = tpu.matmul %110, %98, %cst_44 {dimension_numbers = #tpu.dot_dimension_numbers<[1], [0], [0], [1], [0, 0, 1, 1], [], []>} : vector<16x128xbf16>, vector<128x64xbf16>, vector<16x64xf32> -> vector<16x64xf32>
    %112 = vector.extract_strided_slice %88 {offsets = [16, 0], sizes = [16, 64], strides = [1, 1]} : vector<32x192xf32> to vector<16x64xf32>
    %113 = arith.truncf %112 : vector<16x64xf32> to vector<16x64xbf16>
    %114 = vector.extract_strided_slice %88 {offsets = [16, 64], sizes = [16, 64], strides = [1, 1]} : vector<32x192xf32> to vector<16x64xf32>
    %115 = arith.truncf %114 : vector<16x64xf32> to vector<16x64xbf16>
    %116 = vector.extract_strided_slice %88 {offsets = [16, 128], sizes = [16, 64], strides = [1, 1]} : vector<32x192xf32> to vector<16x64xf32>
    %117 = arith.truncf %116 : vector<16x64xf32> to vector<16x64xbf16>
    %118 = tpu.concatenate %115, %115, %115, %115, %115, %115, %115, %115 in 0 : vector<16x64xbf16>, vector<16x64xbf16>, vector<16x64xbf16>, vector<16x64xbf16>, vector<16x64xbf16>, vector<16x64xbf16>, vector<16x64xbf16>, vector<16x64xbf16> -> vector<128x64xbf16>
    %119 = arith.mulf %118, %0 : vector<128x64xbf16>
    %120 = tpu.concatenate %117, %117, %117, %117, %117, %117, %117, %117 in 0 : vector<16x64xbf16>, vector<16x64xbf16>, vector<16x64xbf16>, vector<16x64xbf16>, vector<16x64xbf16>, vector<16x64xbf16>, vector<16x64xbf16>, vector<16x64xbf16> -> vector<128x64xbf16>
    %121 = arith.mulf %120, %0 : vector<128x64xbf16>
    %cst_45 = arith.constant dense<0.000000e+00> : vector<16x128xf32>
    %122 = tpu.matmul %113, %119, %cst_45 {dimension_numbers = #tpu.dot_dimension_numbers<[1], [1], [0], [0], [0, 0, 1, 0], [], []>} : vector<16x64xbf16>, vector<128x64xbf16>, vector<16x128xf32> -> vector<16x128xf32>
    %cst_46 = arith.constant 0.353553385 : f32
    %123 = vector.broadcast %cst_46 : f32 to vector<16x128xf32>
    %124 = arith.mulf %122, %123 : vector<16x128xf32>
    %cst_47 = arith.constant dense<0xFF800000> : vector<16xf32>
    %125 = vector.multi_reduction <maximumf>, %124, %cst_47 [1] : vector<16x128xf32> to vector<16xf32>
    %126 = vector.shape_cast %125 : vector<16xf32> to vector<16x1xf32>
    %127 = vector.broadcast %126 : vector<16x1xf32> to vector<16x128xf32>
    %128 = arith.subf %124, %127 : vector<16x128xf32>
    %129 = math.exp %128 : vector<16x128xf32>
    %cst_48 = arith.constant dense<0.000000e+00> : vector<16x128xf32>
    %130 = tpu.matmul %129, %2, %cst_48 {dimension_numbers = #tpu.dot_dimension_numbers<[1], [0], [0], [1], [0, 0, 1, 1], [], []>} : vector<16x128xf32>, vector<128x128xf32>, vector<16x128xf32> -> vector<16x128xf32>
    %131 = tpu.reciprocal %130 {approx = true} : vector<16x128xf32> -> vector<16x128xf32>
    %132 = arith.mulf %129, %131 : vector<16x128xf32>
    %133 = arith.truncf %132 : vector<16x128xf32> to vector<16x128xbf16>
    %cst_49 = arith.constant dense<0.000000e+00> : vector<16x64xf32>
    %134 = tpu.matmul %133, %121, %cst_49 {dimension_numbers = #tpu.dot_dimension_numbers<[1], [0], [0], [1], [0, 0, 1, 1], [], []>} : vector<16x128xbf16>, vector<128x64xbf16>, vector<16x64xf32> -> vector<16x64xf32>
    %135 = tpu.concatenate %111, %134 in 0 : vector<16x64xf32>, vector<16x64xf32> -> vector<32x64xf32>
    %136 = arith.truncf %135 : vector<32x64xf32> to vector<32x64xbf16>
    %c592 = arith.constant 592 : index
    %c0_50 = arith.constant 0 : index
    %137 = vector.load %arg2[%c592, %c0_50] : memref<1168x64xbf16, #tpu.memory_space<vmem>>, vector<64x64xbf16>
    %cst_51 = arith.constant dense<0.000000e+00> : vector<32x64xf32>
    %138 = tpu.matmul %136, %137, %cst_51 {dimension_numbers = #tpu.dot_dimension_numbers<[1], [0], [0], [1], [0, 0, 1, 1], [], []>} : vector<32x64xbf16>, vector<64x64xbf16>, vector<32x64xf32> -> vector<32x64xf32>
    %c45 = arith.constant 45 : index
    %c0_52 = arith.constant 0 : index
    %139 = vector.load %arg5[%c45, %c0_52] : memref<72x192xf32, #tpu.memory_space<vmem>>, vector<1x64xf32>
    %140 = vector.broadcast %139 : vector<1x64xf32> to vector<32x64xf32>
    %141 = arith.addf %138, %140 : vector<32x64xf32>
    %142 = arith.addf %60, %141 : vector<32x64xf32>
    %c42 = arith.constant 42 : index
    %c0_53 = arith.constant 0 : index
    %143 = vector.load %arg5[%c42, %c0_53] : memref<72x192xf32, #tpu.memory_space<vmem>>, vector<1x64xf32>
    %c43 = arith.constant 43 : index
    %c0_54 = arith.constant 0 : index
    %144 = vector.load %arg5[%c43, %c0_54] : memref<72x192xf32, #tpu.memory_space<vmem>>, vector<1x64xf32>
    %cst_55 = arith.constant dense<0.000000e+00> : vector<32xf32>
    %145 = vector.multi_reduction <add>, %142, %cst_55 [1] : vector<32x64xf32> to vector<32xf32>
    %146 = vector.shape_cast %145 : vector<32xf32> to vector<32x1xf32>
    %cst_56 = arith.constant 6.400000e+01 : f32
    %147 = vector.broadcast %cst_56 : f32 to vector<32x1xf32>
    %148 = arith.divf %146, %147 : vector<32x1xf32>
    %149 = vector.broadcast %148 : vector<32x1xf32> to vector<32x64xf32>
    %150 = arith.subf %142, %149 : vector<32x64xf32>
    %151 = arith.mulf %150, %150 : vector<32x64xf32>
    %cst_57 = arith.constant dense<0.000000e+00> : vector<32xf32>
    %152 = vector.multi_reduction <add>, %151, %cst_57 [1] : vector<32x64xf32> to vector<32xf32>
    %153 = vector.shape_cast %152 : vector<32xf32> to vector<32x1xf32>
    %cst_58 = arith.constant 6.400000e+01 : f32
    %154 = vector.broadcast %cst_58 : f32 to vector<32x1xf32>
    %155 = arith.divf %153, %154 : vector<32x1xf32>
    %cst_59 = arith.constant 9.99999974E-6 : f32
    %156 = vector.broadcast %cst_59 : f32 to vector<32x1xf32>
    %157 = arith.addf %155, %156 : vector<32x1xf32>
    %158 = math.rsqrt %157 : vector<32x1xf32>
    %159 = vector.broadcast %158 : vector<32x1xf32> to vector<32x64xf32>
    %160 = arith.mulf %150, %159 : vector<32x64xf32>
    %161 = vector.broadcast %143 : vector<1x64xf32> to vector<32x64xf32>
    %162 = arith.mulf %160, %161 : vector<32x64xf32>
    %163 = vector.broadcast %144 : vector<1x64xf32> to vector<32x64xf32>
    %164 = arith.addf %162, %163 : vector<32x64xf32>
    %c0_60 = arith.constant 0 : index
    %c0_61 = arith.constant 0 : index
    %165 = vector.load %arg3[%c0_60, %c0_61] : memref<384x128xbf16, #tpu.memory_space<vmem>>, vector<64x128xbf16>
    %166 = arith.truncf %164 : vector<32x64xf32> to vector<32x64xbf16>
    %cst_62 = arith.constant dense<0.000000e+00> : vector<32x128xf32>
    %167 = tpu.matmul %166, %165, %cst_62 {dimension_numbers = #tpu.dot_dimension_numbers<[1], [0], [0], [1], [0, 0, 1, 1], [], []>} : vector<32x64xbf16>, vector<64x128xbf16>, vector<32x128xf32> -> vector<32x128xf32>
    %c46 = arith.constant 46 : index
    %c0_63 = arith.constant 0 : index
    %168 = vector.load %arg5[%c46, %c0_63] : memref<72x192xf32, #tpu.memory_space<vmem>>, vector<1x128xf32>
    %169 = vector.broadcast %168 : vector<1x128xf32> to vector<32x128xf32>
    %170 = arith.addf %167, %169 : vector<32x128xf32>
    %cst_64 = arith.constant 5.000000e-01 : f32
    %171 = vector.broadcast %cst_64 : f32 to vector<32x128xf32>
    %172 = arith.mulf %171, %170 : vector<32x128xf32>
    %cst_65 = arith.constant 4.471500e-02 : f32
    %173 = vector.broadcast %cst_65 : f32 to vector<32x128xf32>
    %174 = arith.mulf %173, %170 : vector<32x128xf32>
    %175 = arith.mulf %174, %170 : vector<32x128xf32>
    %176 = arith.mulf %175, %170 : vector<32x128xf32>
    %177 = arith.addf %170, %176 : vector<32x128xf32>
    %cst_66 = arith.constant 0.797884583 : f32
    %178 = vector.broadcast %cst_66 : f32 to vector<32x128xf32>
    %179 = arith.mulf %178, %177 : vector<32x128xf32>
    %180 = math.tanh %179 : vector<32x128xf32>
    %cst_67 = arith.constant 1.000000e+00 : f32
    %181 = vector.broadcast %cst_67 : f32 to vector<32x128xf32>
    %182 = arith.addf %181, %180 : vector<32x128xf32>
    %183 = arith.mulf %172, %182 : vector<32x128xf32>
    %c784 = arith.constant 784 : index
    %c0_68 = arith.constant 0 : index
    %184 = vector.load %arg2[%c784, %c0_68] : memref<1168x64xbf16, #tpu.memory_space<vmem>>, vector<128x64xbf16>
    %185 = arith.truncf %183 : vector<32x128xf32> to vector<32x128xbf16>
    %cst_69 = arith.constant dense<0.000000e+00> : vector<32x64xf32>
    %186 = tpu.matmul %185, %184, %cst_69 {dimension_numbers = #tpu.dot_dimension_numbers<[1], [0], [0], [1], [0, 0, 1, 1], [], []>} : vector<32x128xbf16>, vector<128x64xbf16>, vector<32x64xf32> -> vector<32x64xf32>
    %c47 = arith.constant 47 : index
    %c0_70 = arith.constant 0 : index
    %187 = vector.load %arg5[%c47, %c0_70] : memref<72x192xf32, #tpu.memory_space<vmem>>, vector<1x64xf32>
    %188 = vector.broadcast %187 : vector<1x64xf32> to vector<32x64xf32>
    %189 = arith.addf %186, %188 : vector<32x64xf32>
    %190 = arith.addf %142, %189 : vector<32x64xf32>
    %c64 = arith.constant 64 : index
    %c0_71 = arith.constant 0 : index
    %191 = vector.load %arg5[%c64, %c0_71] : memref<72x192xf32, #tpu.memory_space<vmem>>, vector<1x64xf32>
    %c65 = arith.constant 65 : index
    %c0_72 = arith.constant 0 : index
    %192 = vector.load %arg5[%c65, %c0_72] : memref<72x192xf32, #tpu.memory_space<vmem>>, vector<1x64xf32>
    %cst_73 = arith.constant dense<0.000000e+00> : vector<32xf32>
    %193 = vector.multi_reduction <add>, %190, %cst_73 [1] : vector<32x64xf32> to vector<32xf32>
    %194 = vector.shape_cast %193 : vector<32xf32> to vector<32x1xf32>
    %cst_74 = arith.constant 6.400000e+01 : f32
    %195 = vector.broadcast %cst_74 : f32 to vector<32x1xf32>
    %196 = arith.divf %194, %195 : vector<32x1xf32>
    %197 = vector.broadcast %196 : vector<32x1xf32> to vector<32x64xf32>
    %198 = arith.subf %190, %197 : vector<32x64xf32>
    %199 = arith.mulf %198, %198 : vector<32x64xf32>
    %cst_75 = arith.constant dense<0.000000e+00> : vector<32xf32>
    %200 = vector.multi_reduction <add>, %199, %cst_75 [1] : vector<32x64xf32> to vector<32xf32>
    %201 = vector.shape_cast %200 : vector<32xf32> to vector<32x1xf32>
    %cst_76 = arith.constant 6.400000e+01 : f32
    %202 = vector.broadcast %cst_76 : f32 to vector<32x1xf32>
    %203 = arith.divf %201, %202 : vector<32x1xf32>
    %cst_77 = arith.constant 9.99999974E-6 : f32
    %204 = vector.broadcast %cst_77 : f32 to vector<32x1xf32>
    %205 = arith.addf %203, %204 : vector<32x1xf32>
    %206 = math.rsqrt %205 : vector<32x1xf32>
    %207 = vector.broadcast %206 : vector<32x1xf32> to vector<32x64xf32>
    %208 = arith.mulf %198, %207 : vector<32x64xf32>
    %209 = vector.broadcast %191 : vector<1x64xf32> to vector<32x64xf32>
    %210 = arith.mulf %208, %209 : vector<32x64xf32>
    %211 = vector.broadcast %192 : vector<1x64xf32> to vector<32x64xf32>
    %212 = arith.addf %210, %211 : vector<32x64xf32>
    %c64_78 = arith.constant 64 : index
    %c0_79 = arith.constant 0 : index
    %213 = vector.load %arg4[%c64_78, %c0_79] : memref<192x192xbf16, #tpu.memory_space<vmem>>, vector<64x192xbf16>
    %214 = arith.truncf %212 : vector<32x64xf32> to vector<32x64xbf16>
    %cst_80 = arith.constant dense<0.000000e+00> : vector<32x192xf32>
    %215 = tpu.matmul %214, %213, %cst_80 {dimension_numbers = #tpu.dot_dimension_numbers<[1], [0], [0], [1], [0, 0, 1, 1], [], []>} : vector<32x64xbf16>, vector<64x192xbf16>, vector<32x192xf32> -> vector<32x192xf32>
    %c52 = arith.constant 52 : index
    %c0_81 = arith.constant 0 : index
    %216 = vector.load %arg5[%c52, %c0_81] : memref<72x192xf32, #tpu.memory_space<vmem>>, vector<1x192xf32>
    %217 = vector.broadcast %216 : vector<1x192xf32> to vector<32x192xf32>
    %218 = arith.addf %215, %217 : vector<32x192xf32>
    %219 = vector.extract_strided_slice %218 {offsets = [0, 0], sizes = [16, 64], strides = [1, 1]} : vector<32x192xf32> to vector<16x64xf32>
    %220 = arith.truncf %219 : vector<16x64xf32> to vector<16x64xbf16>
    %221 = vector.extract_strided_slice %218 {offsets = [0, 64], sizes = [16, 64], strides = [1, 1]} : vector<32x192xf32> to vector<16x64xf32>
    %222 = arith.truncf %221 : vector<16x64xf32> to vector<16x64xbf16>
    %223 = vector.extract_strided_slice %218 {offsets = [0, 128], sizes = [16, 64], strides = [1, 1]} : vector<32x192xf32> to vector<16x64xf32>
    %224 = arith.truncf %223 : vector<16x64xf32> to vector<16x64xbf16>
    %225 = tpu.concatenate %222, %222, %222, %222, %222, %222, %222, %222 in 0 : vector<16x64xbf16>, vector<16x64xbf16>, vector<16x64xbf16>, vector<16x64xbf16>, vector<16x64xbf16>, vector<16x64xbf16>, vector<16x64xbf16>, vector<16x64xbf16> -> vector<128x64xbf16>
    %226 = arith.mulf %225, %0 : vector<128x64xbf16>
    %227 = tpu.concatenate %224, %224, %224, %224, %224, %224, %224, %224 in 0 : vector<16x64xbf16>, vector<16x64xbf16>, vector<16x64xbf16>, vector<16x64xbf16>, vector<16x64xbf16>, vector<16x64xbf16>, vector<16x64xbf16>, vector<16x64xbf16> -> vector<128x64xbf16>
    %228 = arith.mulf %227, %0 : vector<128x64xbf16>
    %cst_82 = arith.constant dense<0.000000e+00> : vector<16x128xf32>
    %229 = tpu.matmul %220, %226, %cst_82 {dimension_numbers = #tpu.dot_dimension_numbers<[1], [1], [0], [0], [0, 0, 1, 0], [], []>} : vector<16x64xbf16>, vector<128x64xbf16>, vector<16x128xf32> -> vector<16x128xf32>
    %cst_83 = arith.constant 0.353553385 : f32
    %230 = vector.broadcast %cst_83 : f32 to vector<16x128xf32>
    %231 = arith.mulf %229, %230 : vector<16x128xf32>
    %cst_84 = arith.constant dense<0xFF800000> : vector<16xf32>
    %232 = vector.multi_reduction <maximumf>, %231, %cst_84 [1] : vector<16x128xf32> to vector<16xf32>
    %233 = vector.shape_cast %232 : vector<16xf32> to vector<16x1xf32>
    %234 = vector.broadcast %233 : vector<16x1xf32> to vector<16x128xf32>
    %235 = arith.subf %231, %234 : vector<16x128xf32>
    %236 = math.exp %235 : vector<16x128xf32>
    %cst_85 = arith.constant dense<0.000000e+00> : vector<16x128xf32>
    %237 = tpu.matmul %236, %2, %cst_85 {dimension_numbers = #tpu.dot_dimension_numbers<[1], [0], [0], [1], [0, 0, 1, 1], [], []>} : vector<16x128xf32>, vector<128x128xf32>, vector<16x128xf32> -> vector<16x128xf32>
    %238 = tpu.reciprocal %237 {approx = true} : vector<16x128xf32> -> vector<16x128xf32>
    %239 = arith.mulf %236, %238 : vector<16x128xf32>
    %240 = arith.truncf %239 : vector<16x128xf32> to vector<16x128xbf16>
    %cst_86 = arith.constant dense<0.000000e+00> : vector<16x64xf32>
    %241 = tpu.matmul %240, %228, %cst_86 {dimension_numbers = #tpu.dot_dimension_numbers<[1], [0], [0], [1], [0, 0, 1, 1], [], []>} : vector<16x128xbf16>, vector<128x64xbf16>, vector<16x64xf32> -> vector<16x64xf32>
    %242 = vector.extract_strided_slice %218 {offsets = [16, 0], sizes = [16, 64], strides = [1, 1]} : vector<32x192xf32> to vector<16x64xf32>
    %243 = arith.truncf %242 : vector<16x64xf32> to vector<16x64xbf16>
    %244 = vector.extract_strided_slice %218 {offsets = [16, 64], sizes = [16, 64], strides = [1, 1]} : vector<32x192xf32> to vector<16x64xf32>
    %245 = arith.truncf %244 : vector<16x64xf32> to vector<16x64xbf16>
    %246 = vector.extract_strided_slice %218 {offsets = [16, 128], sizes = [16, 64], strides = [1, 1]} : vector<32x192xf32> to vector<16x64xf32>
    %247 = arith.truncf %246 : vector<16x64xf32> to vector<16x64xbf16>
    %248 = tpu.concatenate %245, %245, %245, %245, %245, %245, %245, %245 in 0 : vector<16x64xbf16>, vector<16x64xbf16>, vector<16x64xbf16>, vector<16x64xbf16>, vector<16x64xbf16>, vector<16x64xbf16>, vector<16x64xbf16>, vector<16x64xbf16> -> vector<128x64xbf16>
    %249 = arith.mulf %248, %0 : vector<128x64xbf16>
    %250 = tpu.concatenate %247, %247, %247, %247, %247, %247, %247, %247 in 0 : vector<16x64xbf16>, vector<16x64xbf16>, vector<16x64xbf16>, vector<16x64xbf16>, vector<16x64xbf16>, vector<16x64xbf16>, vector<16x64xbf16>, vector<16x64xbf16> -> vector<128x64xbf16>
    %251 = arith.mulf %250, %0 : vector<128x64xbf16>
    %cst_87 = arith.constant dense<0.000000e+00> : vector<16x128xf32>
    %252 = tpu.matmul %243, %249, %cst_87 {dimension_numbers = #tpu.dot_dimension_numbers<[1], [1], [0], [0], [0, 0, 1, 0], [], []>} : vector<16x64xbf16>, vector<128x64xbf16>, vector<16x128xf32> -> vector<16x128xf32>
    %cst_88 = arith.constant 0.353553385 : f32
    %253 = vector.broadcast %cst_88 : f32 to vector<16x128xf32>
    %254 = arith.mulf %252, %253 : vector<16x128xf32>
    %cst_89 = arith.constant dense<0xFF800000> : vector<16xf32>
    %255 = vector.multi_reduction <maximumf>, %254, %cst_89 [1] : vector<16x128xf32> to vector<16xf32>
    %256 = vector.shape_cast %255 : vector<16xf32> to vector<16x1xf32>
    %257 = vector.broadcast %256 : vector<16x1xf32> to vector<16x128xf32>
    %258 = arith.subf %254, %257 : vector<16x128xf32>
    %259 = math.exp %258 : vector<16x128xf32>
    %cst_90 = arith.constant dense<0.000000e+00> : vector<16x128xf32>
    %260 = tpu.matmul %259, %2, %cst_90 {dimension_numbers = #tpu.dot_dimension_numbers<[1], [0], [0], [1], [0, 0, 1, 1], [], []>} : vector<16x128xf32>, vector<128x128xf32>, vector<16x128xf32> -> vector<16x128xf32>
    %261 = tpu.reciprocal %260 {approx = true} : vector<16x128xf32> -> vector<16x128xf32>
    %262 = arith.mulf %259, %261 : vector<16x128xf32>
    %263 = arith.truncf %262 : vector<16x128xf32> to vector<16x128xbf16>
    %cst_91 = arith.constant dense<0.000000e+00> : vector<16x64xf32>
    %264 = tpu.matmul %263, %251, %cst_91 {dimension_numbers = #tpu.dot_dimension_numbers<[1], [0], [0], [1], [0, 0, 1, 1], [], []>} : vector<16x128xbf16>, vector<128x64xbf16>, vector<16x64xf32> -> vector<16x64xf32>
    %265 = tpu.concatenate %241, %264 in 0 : vector<16x64xf32>, vector<16x64xf32> -> vector<32x64xf32>
    %266 = arith.truncf %265 : vector<32x64xf32> to vector<32x64xbf16>
    %c656 = arith.constant 656 : index
    %c0_92 = arith.constant 0 : index
    %267 = vector.load %arg2[%c656, %c0_92] : memref<1168x64xbf16, #tpu.memory_space<vmem>>, vector<64x64xbf16>
    %cst_93 = arith.constant dense<0.000000e+00> : vector<32x64xf32>
    %268 = tpu.matmul %266, %267, %cst_93 {dimension_numbers = #tpu.dot_dimension_numbers<[1], [0], [0], [1], [0, 0, 1, 1], [], []>} : vector<32x64xbf16>, vector<64x64xbf16>, vector<32x64xf32> -> vector<32x64xf32>
    %c53 = arith.constant 53 : index
    %c0_94 = arith.constant 0 : index
    %269 = vector.load %arg5[%c53, %c0_94] : memref<72x192xf32, #tpu.memory_space<vmem>>, vector<1x64xf32>
    %270 = vector.broadcast %269 : vector<1x64xf32> to vector<32x64xf32>
    %271 = arith.addf %268, %270 : vector<32x64xf32>
    %272 = arith.addf %212, %271 : vector<32x64xf32>
    %c48_95 = arith.constant 48 : index
    %c0_96 = arith.constant 0 : index
    %273 = vector.load %arg5[%c48_95, %c0_96] : memref<72x192xf32, #tpu.memory_space<vmem>>, vector<1x64xf32>
    %c49 = arith.constant 49 : index
    %c0_97 = arith.constant 0 : index
    %274 = vector.load %arg5[%c49, %c0_97] : memref<72x192xf32, #tpu.memory_space<vmem>>, vector<1x64xf32>
    %cst_98 = arith.constant dense<0.000000e+00> : vector<32xf32>
    %275 = vector.multi_reduction <add>, %272, %cst_98 [1] : vector<32x64xf32> to vector<32xf32>
    %276 = vector.shape_cast %275 : vector<32xf32> to vector<32x1xf32>
    %cst_99 = arith.constant 6.400000e+01 : f32
    %277 = vector.broadcast %cst_99 : f32 to vector<32x1xf32>
    %278 = arith.divf %276, %277 : vector<32x1xf32>
    %279 = vector.broadcast %278 : vector<32x1xf32> to vector<32x64xf32>
    %280 = arith.subf %272, %279 : vector<32x64xf32>
    %281 = arith.mulf %280, %280 : vector<32x64xf32>
    %cst_100 = arith.constant dense<0.000000e+00> : vector<32xf32>
    %282 = vector.multi_reduction <add>, %281, %cst_100 [1] : vector<32x64xf32> to vector<32xf32>
    %283 = vector.shape_cast %282 : vector<32xf32> to vector<32x1xf32>
    %cst_101 = arith.constant 6.400000e+01 : f32
    %284 = vector.broadcast %cst_101 : f32 to vector<32x1xf32>
    %285 = arith.divf %283, %284 : vector<32x1xf32>
    %cst_102 = arith.constant 9.99999974E-6 : f32
    %286 = vector.broadcast %cst_102 : f32 to vector<32x1xf32>
    %287 = arith.addf %285, %286 : vector<32x1xf32>
    %288 = math.rsqrt %287 : vector<32x1xf32>
    %289 = vector.broadcast %288 : vector<32x1xf32> to vector<32x64xf32>
    %290 = arith.mulf %280, %289 : vector<32x64xf32>
    %291 = vector.broadcast %273 : vector<1x64xf32> to vector<32x64xf32>
    %292 = arith.mulf %290, %291 : vector<32x64xf32>
    %293 = vector.broadcast %274 : vector<1x64xf32> to vector<32x64xf32>
    %294 = arith.addf %292, %293 : vector<32x64xf32>
    %c64_103 = arith.constant 64 : index
    %c0_104 = arith.constant 0 : index
    %295 = vector.load %arg3[%c64_103, %c0_104] : memref<384x128xbf16, #tpu.memory_space<vmem>>, vector<64x128xbf16>
    %296 = arith.truncf %294 : vector<32x64xf32> to vector<32x64xbf16>
    %cst_105 = arith.constant dense<0.000000e+00> : vector<32x128xf32>
    %297 = tpu.matmul %296, %295, %cst_105 {dimension_numbers = #tpu.dot_dimension_numbers<[1], [0], [0], [1], [0, 0, 1, 1], [], []>} : vector<32x64xbf16>, vector<64x128xbf16>, vector<32x128xf32> -> vector<32x128xf32>
    %c54 = arith.constant 54 : index
    %c0_106 = arith.constant 0 : index
    %298 = vector.load %arg5[%c54, %c0_106] : memref<72x192xf32, #tpu.memory_space<vmem>>, vector<1x128xf32>
    %299 = vector.broadcast %298 : vector<1x128xf32> to vector<32x128xf32>
    %300 = arith.addf %297, %299 : vector<32x128xf32>
    %cst_107 = arith.constant 0.000000e+00 : f32
    %301 = vector.broadcast %cst_107 : f32 to vector<32x128xf32>
    %302 = arith.maximumf %300, %301 : vector<32x128xf32>
    %c912 = arith.constant 912 : index
    %c0_108 = arith.constant 0 : index
    %303 = vector.load %arg2[%c912, %c0_108] : memref<1168x64xbf16, #tpu.memory_space<vmem>>, vector<128x64xbf16>
    %304 = arith.truncf %302 : vector<32x128xf32> to vector<32x128xbf16>
    %cst_109 = arith.constant dense<0.000000e+00> : vector<32x64xf32>
    %305 = tpu.matmul %304, %303, %cst_109 {dimension_numbers = #tpu.dot_dimension_numbers<[1], [0], [0], [1], [0, 0, 1, 1], [], []>} : vector<32x128xbf16>, vector<128x64xbf16>, vector<32x64xf32> -> vector<32x64xf32>
    %c55 = arith.constant 55 : index
    %c0_110 = arith.constant 0 : index
    %306 = vector.load %arg5[%c55, %c0_110] : memref<72x192xf32, #tpu.memory_space<vmem>>, vector<1x64xf32>
    %307 = vector.broadcast %306 : vector<1x64xf32> to vector<32x64xf32>
    %308 = arith.addf %305, %307 : vector<32x64xf32>
    %309 = arith.addf %294, %308 : vector<32x64xf32>
    %c50 = arith.constant 50 : index
    %c0_111 = arith.constant 0 : index
    %310 = vector.load %arg5[%c50, %c0_111] : memref<72x192xf32, #tpu.memory_space<vmem>>, vector<1x64xf32>
    %c51 = arith.constant 51 : index
    %c0_112 = arith.constant 0 : index
    %311 = vector.load %arg5[%c51, %c0_112] : memref<72x192xf32, #tpu.memory_space<vmem>>, vector<1x64xf32>
    %cst_113 = arith.constant dense<0.000000e+00> : vector<32xf32>
    %312 = vector.multi_reduction <add>, %309, %cst_113 [1] : vector<32x64xf32> to vector<32xf32>
    %313 = vector.shape_cast %312 : vector<32xf32> to vector<32x1xf32>
    %cst_114 = arith.constant 6.400000e+01 : f32
    %314 = vector.broadcast %cst_114 : f32 to vector<32x1xf32>
    %315 = arith.divf %313, %314 : vector<32x1xf32>
    %316 = vector.broadcast %315 : vector<32x1xf32> to vector<32x64xf32>
    %317 = arith.subf %309, %316 : vector<32x64xf32>
    %318 = arith.mulf %317, %317 : vector<32x64xf32>
    %cst_115 = arith.constant dense<0.000000e+00> : vector<32xf32>
    %319 = vector.multi_reduction <add>, %318, %cst_115 [1] : vector<32x64xf32> to vector<32xf32>
    %320 = vector.shape_cast %319 : vector<32xf32> to vector<32x1xf32>
    %cst_116 = arith.constant 6.400000e+01 : f32
    %321 = vector.broadcast %cst_116 : f32 to vector<32x1xf32>
    %322 = arith.divf %320, %321 : vector<32x1xf32>
    %cst_117 = arith.constant 9.99999974E-6 : f32
    %323 = vector.broadcast %cst_117 : f32 to vector<32x1xf32>
    %324 = arith.addf %322, %323 : vector<32x1xf32>
    %325 = math.rsqrt %324 : vector<32x1xf32>
    %326 = vector.broadcast %325 : vector<32x1xf32> to vector<32x64xf32>
    %327 = arith.mulf %317, %326 : vector<32x64xf32>
    %328 = vector.broadcast %310 : vector<1x64xf32> to vector<32x64xf32>
    %329 = arith.mulf %327, %328 : vector<32x64xf32>
    %330 = vector.broadcast %311 : vector<1x64xf32> to vector<32x64xf32>
    %331 = arith.addf %329, %330 : vector<32x64xf32>
    %c128 = arith.constant 128 : index
    %c0_118 = arith.constant 0 : index
    %332 = vector.load %arg4[%c128, %c0_118] : memref<192x192xbf16, #tpu.memory_space<vmem>>, vector<64x192xbf16>
    %333 = arith.truncf %331 : vector<32x64xf32> to vector<32x64xbf16>
    %cst_119 = arith.constant dense<0.000000e+00> : vector<32x192xf32>
    %334 = tpu.matmul %333, %332, %cst_119 {dimension_numbers = #tpu.dot_dimension_numbers<[1], [0], [0], [1], [0, 0, 1, 1], [], []>} : vector<32x64xbf16>, vector<64x192xbf16>, vector<32x192xf32> -> vector<32x192xf32>
    %c60 = arith.constant 60 : index
    %c0_120 = arith.constant 0 : index
    %335 = vector.load %arg5[%c60, %c0_120] : memref<72x192xf32, #tpu.memory_space<vmem>>, vector<1x192xf32>
    %336 = vector.broadcast %335 : vector<1x192xf32> to vector<32x192xf32>
    %337 = arith.addf %334, %336 : vector<32x192xf32>
    %338 = vector.extract_strided_slice %337 {offsets = [0, 0], sizes = [16, 64], strides = [1, 1]} : vector<32x192xf32> to vector<16x64xf32>
    %339 = arith.truncf %338 : vector<16x64xf32> to vector<16x64xbf16>
    %340 = vector.extract_strided_slice %337 {offsets = [0, 64], sizes = [16, 64], strides = [1, 1]} : vector<32x192xf32> to vector<16x64xf32>
    %341 = arith.truncf %340 : vector<16x64xf32> to vector<16x64xbf16>
    %342 = vector.extract_strided_slice %337 {offsets = [0, 128], sizes = [16, 64], strides = [1, 1]} : vector<32x192xf32> to vector<16x64xf32>
    %343 = arith.truncf %342 : vector<16x64xf32> to vector<16x64xbf16>
    %344 = tpu.concatenate %341, %341, %341, %341, %341, %341, %341, %341 in 0 : vector<16x64xbf16>, vector<16x64xbf16>, vector<16x64xbf16>, vector<16x64xbf16>, vector<16x64xbf16>, vector<16x64xbf16>, vector<16x64xbf16>, vector<16x64xbf16> -> vector<128x64xbf16>
    %345 = arith.mulf %344, %0 : vector<128x64xbf16>
    %346 = tpu.concatenate %343, %343, %343, %343, %343, %343, %343, %343 in 0 : vector<16x64xbf16>, vector<16x64xbf16>, vector<16x64xbf16>, vector<16x64xbf16>, vector<16x64xbf16>, vector<16x64xbf16>, vector<16x64xbf16>, vector<16x64xbf16> -> vector<128x64xbf16>
    %347 = arith.mulf %346, %0 : vector<128x64xbf16>
    %cst_121 = arith.constant dense<0.000000e+00> : vector<16x128xf32>
    %348 = tpu.matmul %339, %345, %cst_121 {dimension_numbers = #tpu.dot_dimension_numbers<[1], [1], [0], [0], [0, 0, 1, 0], [], []>} : vector<16x64xbf16>, vector<128x64xbf16>, vector<16x128xf32> -> vector<16x128xf32>
    %cst_122 = arith.constant 0.353553385 : f32
    %349 = vector.broadcast %cst_122 : f32 to vector<16x128xf32>
    %350 = arith.mulf %348, %349 : vector<16x128xf32>
    %cst_123 = arith.constant dense<0xFF800000> : vector<16xf32>
    %351 = vector.multi_reduction <maximumf>, %350, %cst_123 [1] : vector<16x128xf32> to vector<16xf32>
    %352 = vector.shape_cast %351 : vector<16xf32> to vector<16x1xf32>
    %353 = vector.broadcast %352 : vector<16x1xf32> to vector<16x128xf32>
    %354 = arith.subf %350, %353 : vector<16x128xf32>
    %355 = math.exp %354 : vector<16x128xf32>
    %cst_124 = arith.constant dense<0.000000e+00> : vector<16x128xf32>
    %356 = tpu.matmul %355, %2, %cst_124 {dimension_numbers = #tpu.dot_dimension_numbers<[1], [0], [0], [1], [0, 0, 1, 1], [], []>} : vector<16x128xf32>, vector<128x128xf32>, vector<16x128xf32> -> vector<16x128xf32>
    %357 = tpu.reciprocal %356 {approx = true} : vector<16x128xf32> -> vector<16x128xf32>
    %358 = arith.mulf %355, %357 : vector<16x128xf32>
    %359 = arith.truncf %358 : vector<16x128xf32> to vector<16x128xbf16>
    %cst_125 = arith.constant dense<0.000000e+00> : vector<16x64xf32>
    %360 = tpu.matmul %359, %347, %cst_125 {dimension_numbers = #tpu.dot_dimension_numbers<[1], [0], [0], [1], [0, 0, 1, 1], [], []>} : vector<16x128xbf16>, vector<128x64xbf16>, vector<16x64xf32> -> vector<16x64xf32>
    %361 = vector.extract_strided_slice %337 {offsets = [16, 0], sizes = [16, 64], strides = [1, 1]} : vector<32x192xf32> to vector<16x64xf32>
    %362 = arith.truncf %361 : vector<16x64xf32> to vector<16x64xbf16>
    %363 = vector.extract_strided_slice %337 {offsets = [16, 64], sizes = [16, 64], strides = [1, 1]} : vector<32x192xf32> to vector<16x64xf32>
    %364 = arith.truncf %363 : vector<16x64xf32> to vector<16x64xbf16>
    %365 = vector.extract_strided_slice %337 {offsets = [16, 128], sizes = [16, 64], strides = [1, 1]} : vector<32x192xf32> to vector<16x64xf32>
    %366 = arith.truncf %365 : vector<16x64xf32> to vector<16x64xbf16>
    %367 = tpu.concatenate %364, %364, %364, %364, %364, %364, %364, %364 in 0 : vector<16x64xbf16>, vector<16x64xbf16>, vector<16x64xbf16>, vector<16x64xbf16>, vector<16x64xbf16>, vector<16x64xbf16>, vector<16x64xbf16>, vector<16x64xbf16> -> vector<128x64xbf16>
    %368 = arith.mulf %367, %0 : vector<128x64xbf16>
    %369 = tpu.concatenate %366, %366, %366, %366, %366, %366, %366, %366 in 0 : vector<16x64xbf16>, vector<16x64xbf16>, vector<16x64xbf16>, vector<16x64xbf16>, vector<16x64xbf16>, vector<16x64xbf16>, vector<16x64xbf16>, vector<16x64xbf16> -> vector<128x64xbf16>
    %370 = arith.mulf %369, %0 : vector<128x64xbf16>
    %cst_126 = arith.constant dense<0.000000e+00> : vector<16x128xf32>
    %371 = tpu.matmul %362, %368, %cst_126 {dimension_numbers = #tpu.dot_dimension_numbers<[1], [1], [0], [0], [0, 0, 1, 0], [], []>} : vector<16x64xbf16>, vector<128x64xbf16>, vector<16x128xf32> -> vector<16x128xf32>
    %cst_127 = arith.constant 0.353553385 : f32
    %372 = vector.broadcast %cst_127 : f32 to vector<16x128xf32>
    %373 = arith.mulf %371, %372 : vector<16x128xf32>
    %cst_128 = arith.constant dense<0xFF800000> : vector<16xf32>
    %374 = vector.multi_reduction <maximumf>, %373, %cst_128 [1] : vector<16x128xf32> to vector<16xf32>
    %375 = vector.shape_cast %374 : vector<16xf32> to vector<16x1xf32>
    %376 = vector.broadcast %375 : vector<16x1xf32> to vector<16x128xf32>
    %377 = arith.subf %373, %376 : vector<16x128xf32>
    %378 = math.exp %377 : vector<16x128xf32>
    %cst_129 = arith.constant dense<0.000000e+00> : vector<16x128xf32>
    %379 = tpu.matmul %378, %2, %cst_129 {dimension_numbers = #tpu.dot_dimension_numbers<[1], [0], [0], [1], [0, 0, 1, 1], [], []>} : vector<16x128xf32>, vector<128x128xf32>, vector<16x128xf32> -> vector<16x128xf32>
    %380 = tpu.reciprocal %379 {approx = true} : vector<16x128xf32> -> vector<16x128xf32>
    %381 = arith.mulf %378, %380 : vector<16x128xf32>
    %382 = arith.truncf %381 : vector<16x128xf32> to vector<16x128xbf16>
    %cst_130 = arith.constant dense<0.000000e+00> : vector<16x64xf32>
    %383 = tpu.matmul %382, %370, %cst_130 {dimension_numbers = #tpu.dot_dimension_numbers<[1], [0], [0], [1], [0, 0, 1, 1], [], []>} : vector<16x128xbf16>, vector<128x64xbf16>, vector<16x64xf32> -> vector<16x64xf32>
    %384 = tpu.concatenate %360, %383 in 0 : vector<16x64xf32>, vector<16x64xf32> -> vector<32x64xf32>
    %385 = arith.truncf %384 : vector<32x64xf32> to vector<32x64xbf16>
    %c720 = arith.constant 720 : index
    %c0_131 = arith.constant 0 : index
    %386 = vector.load %arg2[%c720, %c0_131] : memref<1168x64xbf16, #tpu.memory_space<vmem>>, vector<64x64xbf16>
    %cst_132 = arith.constant dense<0.000000e+00> : vector<32x64xf32>
    %387 = tpu.matmul %385, %386, %cst_132 {dimension_numbers = #tpu.dot_dimension_numbers<[1], [0], [0], [1], [0, 0, 1, 1], [], []>} : vector<32x64xbf16>, vector<64x64xbf16>, vector<32x64xf32> -> vector<32x64xf32>
    %c61 = arith.constant 61 : index
    %c0_133 = arith.constant 0 : index
    %388 = vector.load %arg5[%c61, %c0_133] : memref<72x192xf32, #tpu.memory_space<vmem>>, vector<1x64xf32>
    %389 = vector.broadcast %388 : vector<1x64xf32> to vector<32x64xf32>
    %390 = arith.addf %387, %389 : vector<32x64xf32>
    %391 = arith.addf %331, %390 : vector<32x64xf32>
    %c56 = arith.constant 56 : index
    %c0_134 = arith.constant 0 : index
    %392 = vector.load %arg5[%c56, %c0_134] : memref<72x192xf32, #tpu.memory_space<vmem>>, vector<1x64xf32>
    %c57 = arith.constant 57 : index
    %c0_135 = arith.constant 0 : index
    %393 = vector.load %arg5[%c57, %c0_135] : memref<72x192xf32, #tpu.memory_space<vmem>>, vector<1x64xf32>
    %cst_136 = arith.constant dense<0.000000e+00> : vector<32xf32>
    %394 = vector.multi_reduction <add>, %391, %cst_136 [1] : vector<32x64xf32> to vector<32xf32>
    %395 = vector.shape_cast %394 : vector<32xf32> to vector<32x1xf32>
    %cst_137 = arith.constant 6.400000e+01 : f32
    %396 = vector.broadcast %cst_137 : f32 to vector<32x1xf32>
    %397 = arith.divf %395, %396 : vector<32x1xf32>
    %398 = vector.broadcast %397 : vector<32x1xf32> to vector<32x64xf32>
    %399 = arith.subf %391, %398 : vector<32x64xf32>
    %400 = arith.mulf %399, %399 : vector<32x64xf32>
    %cst_138 = arith.constant dense<0.000000e+00> : vector<32xf32>
    %401 = vector.multi_reduction <add>, %400, %cst_138 [1] : vector<32x64xf32> to vector<32xf32>
    %402 = vector.shape_cast %401 : vector<32xf32> to vector<32x1xf32>
    %cst_139 = arith.constant 6.400000e+01 : f32
    %403 = vector.broadcast %cst_139 : f32 to vector<32x1xf32>
    %404 = arith.divf %402, %403 : vector<32x1xf32>
    %cst_140 = arith.constant 9.99999974E-6 : f32
    %405 = vector.broadcast %cst_140 : f32 to vector<32x1xf32>
    %406 = arith.addf %404, %405 : vector<32x1xf32>
    %407 = math.rsqrt %406 : vector<32x1xf32>
    %408 = vector.broadcast %407 : vector<32x1xf32> to vector<32x64xf32>
    %409 = arith.mulf %399, %408 : vector<32x64xf32>
    %410 = vector.broadcast %392 : vector<1x64xf32> to vector<32x64xf32>
    %411 = arith.mulf %409, %410 : vector<32x64xf32>
    %412 = vector.broadcast %393 : vector<1x64xf32> to vector<32x64xf32>
    %413 = arith.addf %411, %412 : vector<32x64xf32>
    %c128_141 = arith.constant 128 : index
    %c0_142 = arith.constant 0 : index
    %414 = vector.load %arg3[%c128_141, %c0_142] : memref<384x128xbf16, #tpu.memory_space<vmem>>, vector<64x128xbf16>
    %415 = arith.truncf %413 : vector<32x64xf32> to vector<32x64xbf16>
    %cst_143 = arith.constant dense<0.000000e+00> : vector<32x128xf32>
    %416 = tpu.matmul %415, %414, %cst_143 {dimension_numbers = #tpu.dot_dimension_numbers<[1], [0], [0], [1], [0, 0, 1, 1], [], []>} : vector<32x64xbf16>, vector<64x128xbf16>, vector<32x128xf32> -> vector<32x128xf32>
    %c62 = arith.constant 62 : index
    %c0_144 = arith.constant 0 : index
    %417 = vector.load %arg5[%c62, %c0_144] : memref<72x192xf32, #tpu.memory_space<vmem>>, vector<1x128xf32>
    %418 = vector.broadcast %417 : vector<1x128xf32> to vector<32x128xf32>
    %419 = arith.addf %416, %418 : vector<32x128xf32>
    %cst_145 = arith.constant 0.000000e+00 : f32
    %420 = vector.broadcast %cst_145 : f32 to vector<32x128xf32>
    %421 = arith.maximumf %419, %420 : vector<32x128xf32>
    %c1040 = arith.constant 1040 : index
    %c0_146 = arith.constant 0 : index
    %422 = vector.load %arg2[%c1040, %c0_146] : memref<1168x64xbf16, #tpu.memory_space<vmem>>, vector<128x64xbf16>
    %423 = arith.truncf %421 : vector<32x128xf32> to vector<32x128xbf16>
    %cst_147 = arith.constant dense<0.000000e+00> : vector<32x64xf32>
    %424 = tpu.matmul %423, %422, %cst_147 {dimension_numbers = #tpu.dot_dimension_numbers<[1], [0], [0], [1], [0, 0, 1, 1], [], []>} : vector<32x128xbf16>, vector<128x64xbf16>, vector<32x64xf32> -> vector<32x64xf32>
    %c63 = arith.constant 63 : index
    %c0_148 = arith.constant 0 : index
    %425 = vector.load %arg5[%c63, %c0_148] : memref<72x192xf32, #tpu.memory_space<vmem>>, vector<1x64xf32>
    %426 = vector.broadcast %425 : vector<1x64xf32> to vector<32x64xf32>
    %427 = arith.addf %424, %426 : vector<32x64xf32>
    %428 = arith.addf %413, %427 : vector<32x64xf32>
    %c58 = arith.constant 58 : index
    %c0_149 = arith.constant 0 : index
    %429 = vector.load %arg5[%c58, %c0_149] : memref<72x192xf32, #tpu.memory_space<vmem>>, vector<1x64xf32>
    %c59 = arith.constant 59 : index
    %c0_150 = arith.constant 0 : index
    %430 = vector.load %arg5[%c59, %c0_150] : memref<72x192xf32, #tpu.memory_space<vmem>>, vector<1x64xf32>
    %cst_151 = arith.constant dense<0.000000e+00> : vector<32xf32>
    %431 = vector.multi_reduction <add>, %428, %cst_151 [1] : vector<32x64xf32> to vector<32xf32>
    %432 = vector.shape_cast %431 : vector<32xf32> to vector<32x1xf32>
    %cst_152 = arith.constant 6.400000e+01 : f32
    %433 = vector.broadcast %cst_152 : f32 to vector<32x1xf32>
    %434 = arith.divf %432, %433 : vector<32x1xf32>
    %435 = vector.broadcast %434 : vector<32x1xf32> to vector<32x64xf32>
    %436 = arith.subf %428, %435 : vector<32x64xf32>
    %437 = arith.mulf %436, %436 : vector<32x64xf32>
    %cst_153 = arith.constant dense<0.000000e+00> : vector<32xf32>
    %438 = vector.multi_reduction <add>, %437, %cst_153 [1] : vector<32x64xf32> to vector<32xf32>
    %439 = vector.shape_cast %438 : vector<32xf32> to vector<32x1xf32>
    %cst_154 = arith.constant 6.400000e+01 : f32
    %440 = vector.broadcast %cst_154 : f32 to vector<32x1xf32>
    %441 = arith.divf %439, %440 : vector<32x1xf32>
    %cst_155 = arith.constant 9.99999974E-6 : f32
    %442 = vector.broadcast %cst_155 : f32 to vector<32x1xf32>
    %443 = arith.addf %441, %442 : vector<32x1xf32>
    %444 = math.rsqrt %443 : vector<32x1xf32>
    %445 = vector.broadcast %444 : vector<32x1xf32> to vector<32x64xf32>
    %446 = arith.mulf %436, %445 : vector<32x64xf32>
    %447 = vector.broadcast %429 : vector<1x64xf32> to vector<32x64xf32>
    %448 = arith.mulf %446, %447 : vector<32x64xf32>
    %449 = vector.broadcast %430 : vector<1x64xf32> to vector<32x64xf32>
    %450 = arith.addf %448, %449 : vector<32x64xf32>
    %c192 = arith.constant 192 : index
    %c0_156 = arith.constant 0 : index
    %451 = vector.load %arg3[%c192, %c0_156] : memref<384x128xbf16, #tpu.memory_space<vmem>>, vector<64x128xbf16>
    %452 = vector.extract_strided_slice %450 {offsets = [0, 0], sizes = [1, 64], strides = [1, 1]} : vector<32x64xf32> to vector<1x64xf32>
    %453 = vector.extract_strided_slice %450 {offsets = [16, 0], sizes = [1, 64], strides = [1, 1]} : vector<32x64xf32> to vector<1x64xf32>
    %454 = tpu.concatenate %452, %453 in 0 : vector<1x64xf32>, vector<1x64xf32> -> vector<2x64xf32>
    %455 = arith.truncf %454 : vector<2x64xf32> to vector<2x64xbf16>
    %cst_157 = arith.constant dense<0.000000e+00> : vector<2x128xf32>
    %456 = tpu.matmul %455, %451, %cst_157 {dimension_numbers = #tpu.dot_dimension_numbers<[1], [0], [0], [1], [0, 0, 1, 1], [], []>} : vector<2x64xbf16>, vector<64x128xbf16>, vector<2x128xf32> -> vector<2x128xf32>
    %c66 = arith.constant 66 : index
    %c0_158 = arith.constant 0 : index
    %457 = vector.load %arg5[%c66, %c0_158] : memref<72x192xf32, #tpu.memory_space<vmem>>, vector<1x128xf32>
    %458 = vector.broadcast %457 : vector<1x128xf32> to vector<2x128xf32>
    %459 = arith.addf %456, %458 : vector<2x128xf32>
    %c0_159 = arith.constant 0 : index
    %c0_160 = arith.constant 0 : index
    %460 = vector.load %arg6[%c0_159, %c0_160] : memref<2x128xf32, #tpu.memory_space<vmem>>, vector<2x128xf32>
    tpu.vector_store %arg6[%c0_159, %c0_160], %459 {strides = array<i32>} : memref<2x128xf32, #tpu.memory_space<vmem>>, vector<2x128xf32>,
    return
  }
  func.func @transform_0(%arg0: i32) -> (i32, i32) {
    %c0_i32 = arith.constant 0 : i32
    %c0_i32_0 = arith.constant 0 : i32
    %c0_i32_1 = arith.constant 0 : i32
    return %c0_i32, %c0_i32_0 : i32, i32
  }
  func.func @transform_1(%arg0: i32) -> (i32, i32) {
    %c0_i32 = arith.constant 0 : i32
    %c0_i32_0 = arith.constant 0 : i32
    %c0_i32_1 = arith.constant 0 : i32
    return %c0_i32, %c0_i32_0 : i32, i32
  }
  func.func @transform_2(%arg0: i32) -> (i32, i32) {
    %c0_i32 = arith.constant 0 : i32
    %c0_i32_0 = arith.constant 0 : i32
    %c0_i32_1 = arith.constant 0 : i32
    return %c0_i32, %c0_i32_0 : i32, i32
  }
  func.func @transform_3(%arg0: i32) -> (i32, i32) {
    %c0_i32 = arith.constant 0 : i32
    %c0_i32_0 = arith.constant 0 : i32
    %c0_i32_1 = arith.constant 0 : i32
    return %c0_i32, %c0_i32_0 : i32, i32
  }
  func.func @transform_4(%arg0: i32) -> (i32, i32) {
    %c0_i32 = arith.constant 0 : i32
    %c0_i32_0 = arith.constant 0 : i32
    %c0_i32_1 = arith.constant 0 : i32
    return %c0_i32, %c0_i32_0 : i32, i32
  }
  func.func @transform_5(%arg0: i32) -> (i32, i32) {
    %c0_i32 = arith.constant 0 : i32
    %c0_i32_0 = arith.constant 0 : i32
    %c0_i32_1 = arith.constant 0 : i32
    return %c0_i32, %c0_i32_0 : i32, i32
  }
}

</mosaic_0001>

<bundles_post_ra>
// kernel: forward.1
= control target key start
LH: loop header
LB: loop body
LE: loop exit
PB: predicated region body
PF: predicated region fallthrough
CT: control target
= control target key end

     0   :  { %vm110_vm0 = vcmask 523264   ;;  %s7468_s0 = inlined_call_operand.vmem [shape: f32[64,16], index: 0, kind: input, shape index: {}]   ;;  %s7469_s1 = inlined_call_operand.vmem [shape: bf16[1168,64], index: 1, kind: input, shape index: {}]   ;;  %s7470_s2 = inlined_call_operand.vmem [shape: bf16[384,128], index: 2, kind: input, shape index: {}]   ;;  %s7471_s3 = inlined_call_operand.vmem [shape: bf16[192,192], index: 3, kind: input, shape index: {}]   ;;  %s7472_s4 = inlined_call_operand.vmem [shape: f32[72,192], index: 4, kind: input, shape index: {}]   ;;  %s7473_s5 = inlined_call_operand.hbm [shape: f32[2,128], index: 5, kind: output, shape index: {}]  }
   0x1   :  { %v76_v0 = vld [vmem:[%s7468_s0 + $0x30] sm:$0xff]  ;;  %v77_v1 = vld [vmem:[%s7468_s0 + $0x38] sm:$0xff]  ;;  %v74_v2 = vld [vmem:[%s7468_s0 + $0x20] sm:$0xff] }
   0x2   :  { %v5848_v3 = vpack.c.bf16 %v77_v1, %v76_v0  ;;  %v75_v4 = vld [vmem:[%s7468_s0 + $0x28] sm:$0xff]  ;;  %v72_v6 = vld [vmem:[%s7468_s0 + $0x10] sm:$0xff]  ;;  %v73_v7 = vld [vmem:[%s7468_s0 + $0x18] sm:$0xff] }
   0x3   :  { %v80_v5 = vpack.c.bf16 %v75_v4, %v74_v2  ;;  %v5507_v8 = vld [vmem:[%s7469_s1 + $0x98] sm:$0xff]   ;;  %v79_v9 = vpack.c.bf16 %v73_v7, %v72_v6  ;;  %v70_v10 = vld [vmem:[%s7468_s0] sm:$0xff]  ;;  %v71_v11 = vld [vmem:[%s7468_s0 + $0x8] sm:$0xff] }
   0x4   :  { %4840 = vmatprep.subr.bf16.mxu1 %v5848_v3  ;;  %4824 = vmatprep.subr.bf16.mxu0 %v5848_v3  ;;  %v5511_v12 = vld [vmem:[%s7469_s1 + $0x78] sm:$0xff]   ;;  %v78_v13 = vpack.c.bf16 %v71_v11, %v70_v10  ;;  %v5508_v14 = vld [vmem:[%s7469_s1 + $0xa0] sm:$0xff]   ;;  %v5509_v16 = vld [vmem:[%s7469_s1 + $0xa8] sm:$0xff]  }
   0x5   :  { %4841 = vmatpush3.bf16.msra.mxu1 %v5848_v3  ;;  %4825 = vmatpush3.bf16.msra.mxu0 %v5848_v3  ;;  %v5512_v15 = vld [vmem:[%s7469_s1 + $0x80] sm:$0xff]   ;;  %v5513_v17 = vld [vmem:[%s7469_s1 + $0x88] sm:$0xff]   ;;  %v5510_v18 = vld [vmem:[%s7469_s1 + $0xb0] sm:$0xff]  }
   0x6   :  { %4842 = vmatprep.subr.bf16.mxu1 %v80_v5  ;;  %4848 = vmatprep.mubr.msk.bf16.mxu1 %vm110_vm0, %v5507_v8  ;;  %v5514_v19 = vld [vmem:[%s7469_s1 + $0x90] sm:$0xff]  }
   0x7   :  { %4826 = vmatprep.subr.bf16.mxu0 %v80_v5  ;;  %4832 = vmatprep.mubr.msk.bf16.mxu0 %vm110_vm0, %v5511_v12 }
   0x9   :  { %4843 = vmatpush3.bf16.msra.mxu1 %v80_v5  ;;  %4827 = vmatpush3.bf16.msra.mxu0 %v80_v5 }
   0xa   :  { %4844 = vmatprep.subr.bf16.mxu1 %v79_v9  ;;  %4828 = vmatprep.subr.bf16.mxu0 %v79_v9 }
   0xd   :  { %4845 = vmatpush3.bf16.msra.mxu1 %v79_v9  ;;  %4829 = vmatpush3.bf16.msra.mxu0 %v79_v9 }
   0xe   :  { %4846 = vmatprep.subr.bf16.mxu1 %v78_v13  ;;  %4830 = vmatprep.subr.bf16.mxu0 %v78_v13 }
  0x11   :  { %4847 = vmatpush3.bf16.msra.mxu1 %v78_v13  ;;  %4831 = vmatpush3.bf16.msra.mxu0 %v78_v13 }
  0x14   :  { %4849 = vmatmul.mubr.msk.bf16.vlgmr.msra.gmra.mxu1 %vm110_vm0, %v5508_v14  ;;  %4833 = vmatmul.mubr.msk.bf16.vlgmr.msra.gmra.mxu0 %vm110_vm0, %v5512_v15 }
  0x15   :  { %4852 = vmatprep.mubr.msk.bf16.mxu1 %vm110_vm0, %v5509_v16  ;;  %4836 = vmatprep.mubr.msk.bf16.mxu0 %vm110_vm0, %v5513_v17 }
  0x1c   :  { %4853 = vmatmul.mubr.msk.bf16.gmra.mxu1 %vm110_vm0, %v5510_v18  ;;  %4837 = vmatmul.mubr.msk.bf16.gmra.mxu0 %vm110_vm0, %v5514_v19 }
  0x1d   :  { %10 = vsyncpa [#allocation3], 0  ;;  %s5802_s24 = smov 16   ;;  %v5515_v20 = vld [vmem:[%s7469_s1 + $0x10] sm:$0xff]   ;;  %v5516_v21 = vld [vmem:[%s7469_s1 + $0x8] sm:$0xff]   ;;  %s5803_s6 = smov 32  }
  0x1e   :  { %305 = vrot.lane.b32.xlu0 %v78_v13, %s5802_s24  ;;  %4856 = vmatprep.subr.bf16.mxu0 %v5515_v20  ;;  %v5517_v22 = vld [vmem:[%s7469_s1] sm:$0xff]   ;;  %vm325_vm1 = vcmask 130048   ;;  %vm338_vm2 = vcmask 261120   ;;  %vm372_vm3 = vcmask 392192   ;;  %v5518_v63 = vld [vmem:[%s7469_s1 + $0xc8] sm:$0xff]   ;;  %v5519_v0 = vld [vmem:[%s7469_s1 + $0xb8] sm:$0xff]  }
  0x1f   :  { %4857 = vmatpush3.bf16.msra.mxu0 %v5515_v20  ;;  %4878 = vmatprep.mubr.msk.bf16.mxu1 %vm110_vm0, %v5519_v0  ;;  %v353_v1 = vld [vmem:[%s7472_s4 + $0x40] ss:$0 sm:$0xff]  ;;  %s5805_s18 = smov 64   ;;  %vm5807_vm4 = vmmov 0   ;;  %vm4209_vm5 = vcmask 1040384   ;;  %s5808_s15 = smov [#allocation2]  }
  0x20   :  { %4858 = vmatprep.subr.bf16.mxu0 %v5516_v21  ;;  %s4287_s16 = sshll.u32 %s5808_s15, 4  ;;  %s4288_s16 = int_to_ptr.vmem [resolvable:$true] %s4287_s16 }
  0x21   :  { %s5780_s17 = scalar_lea.vmem %s4288_s16, 32  ;;  %p5785_p1 = scmp.lt.s32.totalorder %s4288_s16, %s4288_s16 }
  0x22   :  { %307 = vrot.lane.b32.xlu0 %v79_v9, %s5802_s24  ;;  %p5781_p0 = scmp.ne.s32.totalorder %s4288_s16, %s5780_s17  ;;  %p5786_p2 = scmp.lt.s32.totalorder %s5780_s17, %s5780_s17 }
  0x23   :  { %4859 = vmatpush3.bf16.msra.mxu0 %v5516_v21 }
  0x24   :  { %4860 = vmatprep.subr.bf16.mxu0 %v5517_v22  ;;  %p5787_p3 = por %p5786_p2, %p5785_p1 }
  0x26   :  { %309 = vrot.lane.b32.xlu0 %v80_v5, %s5802_s24  ;;  %p5788_p4 = pnand %p5787_p3, %p5781_p0 }
  0x27   :  { %4861 = vmatpush3.bf16.msra.mxu0 %v5517_v22 }
  0x90   :  { %v306_v40 = vpop.permute.xlu0 %305 }
  0x94   :  { %v308_v44 = vpop.permute.xlu0 %307 }
  0x98   :  { %v310_v50 = vpop.permute.xlu0 %309 }
  0xd4   :  { %v4850_v23 = vpop.f32.mrf.mxu1  ;;  %v4834_v35 = vpop.f32.mrf.mxu0 }
  0xd6   :  { %v266_v24 = vpop.f32.mrf.mxu1  ;;  %v157_v36 = vpop.f32.mrf.mxu0 }
  0xd8   :  { %v4851_v25 = vpop.f32.mrf.mxu1  ;;  %v4835_v37 = vpop.f32.mrf.mxu0 }
  0xd9   :  { %v298_v30 = vpack.c.bf16 %v4851_v25, %v4850_v23  ;;  %v189_v45 = vpack.c.bf16 %v4835_v37, %v4834_v35 }
  0xda   :  { %v269_v26 = vpop.f32.mrf.mxu1  ;;  %v160_v38 = vpop.f32.mrf.mxu0 }
  0xdb   :  { %v297_v27 = vpack.c.bf16 %v269_v26, %v266_v24  ;;  %v188_v42 = vpack.c.bf16 %v160_v38, %v157_v36  ;;  %v331_v51 = vsel %vm325_vm1, %v189_v45, %v308_v44 }
  0xdc   :  { %v4854_v28 = vpop.f32.mrf.mxu1  ;;  %v4838_v39 = vpop.f32.mrf.mxu0 }
  0xdd   :  { %317 = vrot.lane.b32.xlu1 %v297_v27, %s5803_s6  ;;  %v328_v47 = vsel %vm325_vm1, %v188_v42, %v306_v40 }
  0xde   :  { %v282_v29 = vpop.f32.mrf.mxu1  ;;  %v173_v41 = vpop.f32.mrf.mxu0 }
  0xe0   :  { %v4855_v31 = vpop.f32.mrf.mxu1  ;;  %v4839_v43 = vpop.f32.mrf.mxu0 }
  0xe1   :  { %319 = vrot.lane.b32.xlu1 %v298_v30, %s5803_s6  ;;  %v300_v34 = vpack.c.bf16 %v4855_v31, %v4854_v28  ;;  %v191_v59 = vpack.c.bf16 %v4839_v43, %v4838_v39 }
  0xe2   :  { %v285_v32 = vpop.f32.mrf.mxu1  ;;  %v176_v49 = vpop.f32.mrf.mxu0 }
  0xe3   :  { %v299_v33 = vpack.c.bf16 %v285_v32, %v282_v29  ;;  %v190_v52 = vpack.c.bf16 %v176_v49, %v173_v41 }
  0xe5   :  { %311 = vrot.lane.b32.xlu1 %v5848_v3, %s5802_s24  ;;  %321 = vrot.lane.b32.xlu0 %v299_v33, %s5803_s6  ;;  %v334_v55 = vsel %vm325_vm1, %v190_v52, %v310_v50 }
  0xe9   :  { %323 = vrot.lane.b32.xlu1 %v300_v34, %s5803_s6 }
 0x14f   :  { %v318_v46 = vpop.permute.xlu1 %317 }
 0x150   :  { %v340_v48 = vsel %vm338_vm2, %v328_v47, %v318_v46 }
 0x151   :  { %4862 = vmatprep.mubr.msk.bf16.mxu0 %vm372_vm3, %v340_v48 }
 0x153   :  { %v320_v53 = vpop.permute.xlu1 %319 }
 0x154   :  { %v342_v54 = vsel %vm338_vm2, %v331_v51, %v320_v53 }
 0x155   :  { %4863 = vmatmul.mubr.msk.bf16.vlgmr.msra.gmra.mxu0 %vm372_vm3, %v342_v54 }
 0x157   :  { %v312_v56 = vpop.permute.xlu1 %311  ;;  %v322_v57 = vpop.permute.xlu0 %321 }
 0x158   :  { %v344_v58 = vsel %vm338_vm2, %v334_v55, %v322_v57  ;;  %v337_v60 = vsel %vm325_vm1, %v191_v59, %v312_v56 }
 0x159   :  { %4866 = vmatprep.mubr.msk.bf16.mxu0 %vm372_vm3, %v344_v58 }
 0x15b   :  { %v324_v61 = vpop.permute.xlu1 %323 }
 0x15c   :  { %v346_v62 = vsel %vm338_vm2, %v337_v60, %v324_v61 }
 0x15d   :  { %4867 = vmatmul.mubr.msk.bf16.gmra.mxu0 %vm372_vm3, %v346_v62 }
 0x15e   :  { %4890 = vmatprep.mubr.msk.bf16.mxu0 %vm110_vm0, %v5518_v63 }
 0x215   :  { %v4864_v2 = vpop.f32.mrf.mxu0 }
 0x216   :  { %v5934_v3 = vadd.f32 %v4864_v2, %v353_v1 }
 0x217   :  { %v415_v4 = vpop.f32.mrf.mxu0 }
 0x218   :  { %v456_v7 = vmul.f32 0.044715, %v5934_v3  ;;  %v5939_v9 = vadd.f32 %v415_v4, %v353_v1 }
 0x219   :  { %v4865_v5 = vpop.f32.mrf.mxu0 }
 0x21a   :  { %v5936_v6 = vadd.f32 %v4865_v5, %v353_v1  ;;  %v464_v15 = vmul.f32 %v456_v7, %v5934_v3  ;;  %v454_v18 = vmul.f32 0.044715, %v5939_v9 }
 0x21b   :  { %v418_v8 = vpop.f32.mrf.mxu0 }
 0x21c   :  { %v457_v10 = vmul.f32 0.044715, %v5936_v6  ;;  %v5942_v11 = vadd.f32 %v418_v8, %v353_v1  ;;  %v472_v25 = vmul.f32 %v464_v15, %v5934_v3  ;;  %v462_v29 = vmul.f32 %v454_v18, %v5939_v9 }
 0x21d   :  { %v4868_v12 = vpop.f32.mrf.mxu0 }
 0x21e   :  { %v465_v13 = vmul.f32 %v457_v10, %v5936_v6  ;;  %v440_v14 = vadd.f32 %v4868_v12, %v353_v1  ;;  %v455_v16 = vmul.f32 0.044715, %v5942_v11  ;;  %v480_v37 = vadd.f32 %v472_v25, %v5934_v3 }
 0x21f   :  { %v431_v17 = vpop.f32.mrf.mxu0  ;;  %v470_v40 = vmul.f32 %v462_v29, %v5939_v9 }
 0x220   :  { %v473_v19 = vmul.f32 %v465_v13, %v5936_v6  ;;  %v463_v20 = vmul.f32 %v455_v16, %v5942_v11  ;;  %v460_v21 = vmul.f32 0.044715, %v440_v14  ;;  %v432_v22 = vadd.f32 %v431_v17, %v353_v1 }
 0x221   :  { %v4869_v23 = vpop.f32.mrf.mxu0  ;;  %v488_v49 = vmul.f32 0.7978846, %v480_v37  ;;  %v478_v51 = vadd.f32 %v470_v40, %v5939_v9  ;;  %v452_v63 = vmul.f32 0.5, %v440_v14  ;;  %v449_v13 = vmul.f32 0.5, %v5936_v6  ;;  %v5526_v37 = vld [vmem:[%s7469_s1 + $0x40] sm:$0xff]   ;;  %v5529_v40 = vld [vmem:[%s7469_s1 + $0x28] sm:$0xff]  }
 0x222   :  { %v443_v24 = vadd.f32 %v4869_v23, %v353_v1  ;;  %v468_v26 = vmul.f32 %v460_v21, %v440_v14  ;;  %v458_v27 = vmul.f32 0.044715, %v432_v22  ;;  %v481_v30 = vadd.f32 %v473_v19, %v5936_v6 }
 0x223   :  { %v434_v28 = vpop.f32.mrf.mxu0  ;;  %v471_v32 = vmul.f32 %v463_v20, %v5942_v11  ;;  %v486_v56 = vmul.f32 0.7978846, %v478_v51  ;;  %v450_v15 = vmul.f32 0.5, %v432_v22  ;;  %v448_v21 = vmul.f32 0.5, %v5934_v3 }
 0x224   :  { %v461_v31 = vmul.f32 0.044715, %v443_v24  ;;  %v476_v33 = vmul.f32 %v468_v26, %v440_v14  ;;  %v466_v34 = vmul.f32 %v458_v27, %v432_v22  ;;  %v435_v35 = vadd.f32 %v434_v28, %v353_v1 }
 0x225   :  { %v489_v41 = vmul.f32 0.7978846, %v481_v30  ;;  %v479_v44 = vadd.f32 %v471_v32, %v5942_v11  ;;  %v453_v0 = vmul.f32 0.5, %v443_v24  ;;  %v447_v6 = vmul.f32 0.5, %v5942_v11  ;;  %v5520_v11 = vld [vmem:[%s7469_s1 + $0xd0] sm:$0xff]   ;;  %v5522_v32 = vld [vmem:[%s7469_s1 + $0xd8] sm:$0xff]  }
 0x226   :  { %v469_v36 = vmul.f32 %v461_v31, %v443_v24  ;;  %v484_v38 = vadd.f32 %v476_v33, %v440_v14  ;;  %v474_v39 = vmul.f32 %v466_v34, %v432_v22  ;;  %v459_v43 = vmul.f32 0.044715, %v435_v35  ;;  %v5523_v33 = vld [vmem:[%s7469_s1 + $0xe0] sm:$0xff]   ;;  %v5524_v34 = vld [vmem:[%s7469_s1 + $0x50] sm:$0xff]  }
 0x227   :  { %v487_v54 = vmul.f32 0.7978846, %v479_v44  ;;  %v451_v18 = vmul.f32 0.5, %v435_v35  ;;  %v446_v28 = vmul.f32 0.5, %v5939_v9  ;;  %v5521_v9 = vld [vmem:[%s7469_s1 + $0xc0] sm:$0xff]   ;;  %v5533_v44 = vld [vmem:[%s7469_s1 + $0x68] sm:$0xff]  }
 0x228   :  { %v477_v42 = vmul.f32 %v469_v36, %v443_v24  ;;  %v492_v45 = vmul.f32 0.7978846, %v484_v38  ;;  %v482_v46 = vadd.f32 %v474_v39, %v432_v22  ;;  %v467_v48 = vmul.f32 %v459_v43, %v435_v35  ;;  %v5525_v36 = vld [vmem:[%s7469_s1 + $0x48] sm:$0xff]   ;;  %v5527_v38 = vld [vmem:[%s7469_s1 + $0x38] sm:$0xff]   ;;  %v5528_v39 = vld [vmem:[%s7469_s1 + $0x30] sm:$0xff]  }
 0x229   :  { %v5532_v43 = vld [vmem:[%s7469_s1 + $0x70] sm:$0xff]  }
 0x22a   :  { %v485_v47 = vadd.f32 %v477_v42, %v443_v24  ;;  %5632 = vtanh.f32 %v492_v45  ;;  %v490_v50 = vmul.f32 0.7978846, %v482_v46  ;;  %v475_v53 = vmul.f32 %v467_v48, %v435_v35  ;;  %v5531_v42 = vld [vmem:[%s7469_s1 + $0x18] sm:$0xff]   ;;  %v5534_v45 = vld [vmem:[%s7469_s1 + $0x60] sm:$0xff]  }
 0x22b   :  { %5634 = vtanh.f32 %v489_v41  ;;  %v5530_v41 = vld [vmem:[%s7469_s1 + $0x20] sm:$0xff]   ;;  %v5535_v46 = vld [vmem:[%s7469_s1 + $0x58] sm:$0xff]  }
 0x22c   :  { %v493_v52 = vmul.f32 0.7978846, %v485_v47  ;;  %5636 = vtanh.f32 %v490_v50  ;;  %v483_v55 = vadd.f32 %v475_v53, %v435_v35  ;;  %v5804_v35 = vmov 0  }
 0x22e   :  { %5638 = vtanh.f32 %v493_v52  ;;  %v491_v57 = vmul.f32 0.7978846, %v483_v55 }
 0x22f   :  { %5640 = vtanh.f32 %v488_v49 }
 0x230   :  { %5642 = vtanh.f32 %v487_v54 }
 0x231   :  { %5644 = vtanh.f32 %v491_v57 }
 0x232   :  { %5646 = vtanh.f32 %v486_v56 }
 0x237   :  { %v5633_v58 = vpop.eup %5632 }
 0x238   :  { %v5635_v59 = vpop.eup %5634  ;;  %v508_v61 = vadd.f32 1.0, %v5633_v58 }
 0x239   :  { %v5637_v60 = vpop.eup %5636  ;;  %v505_v5 = vadd.f32 1.0, %v5635_v59 }
 0x23a   :  { %v516_v7 = vmul.f32 %v508_v61, %v452_v63  ;;  %v506_v8 = vadd.f32 1.0, %v5637_v60 }
 0x23b   :  { %v5639_v62 = vpop.eup %5638  ;;  %v513_v14 = vmul.f32 %v505_v5, %v449_v13 }
 0x23c   :  { %v509_v1 = vadd.f32 1.0, %v5639_v62  ;;  %v5641_v2 = vpop.eup %5640  ;;  %v514_v24 = vmul.f32 %v506_v8, %v450_v15 }
 0x23d   :  { %v5643_v4 = vpop.eup %5642  ;;  %v504_v16 = vadd.f32 1.0, %v5641_v2 }
 0x23e   :  { %v517_v10 = vmul.f32 %v509_v1, %v453_v0  ;;  %v5645_v12 = vpop.eup %5644  ;;  %v503_v23 = vadd.f32 1.0, %v5643_v4 }
 0x23f   :  { %v507_v19 = vadd.f32 1.0, %v5645_v12  ;;  %v5647_v20 = vpop.eup %5646  ;;  %v512_v26 = vmul.f32 %v504_v16, %v448_v21 }
 0x240   :  { %v521_v17 = vpack.c.bf16 %v517_v10, %v516_v7  ;;  %v502_v27 = vadd.f32 1.0, %v5647_v20  ;;  %v511_v30 = vmul.f32 %v503_v23, %v447_v6  ;;  %v773_v7 = vld [vmem:[%s7472_s4 + $0x41] ss:$0 sm:$0xff] }
 0x241   :  { %v515_v25 = vmul.f32 %v507_v19, %v451_v18  ;;  %v519_v29 = vpack.c.bf16 %v513_v14, %v512_v26 }
 0x242   :  { %4870 = vmatprep.subr.bf16.mxu1 %v521_v17  ;;  %4882 = vmatprep.subr.bf16.mxu0 %v521_v17  ;;  %v510_v3 = vmul.f32 %v502_v27, %v446_v28 }
 0x243   :  { %4871 = vmatpush3.bf16.msra.mxu1 %v521_v17  ;;  %4883 = vmatpush3.bf16.msra.mxu0 %v521_v17  ;;  %v520_v22 = vpack.c.bf16 %v515_v25, %v514_v24 }
 0x244   :  { %v518_v31 = vpack.c.bf16 %v511_v30, %v510_v3 }
 0x245   :  { %4872 = vmatprep.subr.bf16.mxu1 %v520_v22  ;;  %4884 = vmatprep.subr.bf16.mxu0 %v520_v22 }
 0x247   :  { %4873 = vmatpush3.bf16.msra.mxu1 %v520_v22  ;;  %4885 = vmatpush3.bf16.msra.mxu0 %v520_v22 }
 0x248   :  { %4874 = vmatprep.subr.bf16.mxu1 %v519_v29  ;;  %4886 = vmatprep.subr.bf16.mxu0 %v519_v29 }
 0x24b   :  { %4875 = vmatpush3.bf16.msra.mxu1 %v519_v29  ;;  %4887 = vmatpush3.bf16.msra.mxu0 %v519_v29 }
 0x24c   :  { %4876 = vmatprep.subr.bf16.mxu1 %v518_v31  ;;  %4888 = vmatprep.subr.bf16.mxu0 %v518_v31 }
 0x24f   :  { %4877 = vmatpush3.bf16.msra.mxu1 %v518_v31  ;;  %4889 = vmatpush3.bf16.msra.mxu0 %v518_v31 }
 0x250   :  { %4894 = vmatprep.subr.bf16.mxu1 %v521_v17  ;;  %852 = vmatprep.subr.bf16.mxu0 %v5804_v35 }
 0x252   :  { %4891 = vmatmul.mubr.msk.bf16.vlgmr.msra.gmra.mxu0 %vm110_vm0, %v5520_v11  ;;  %4879 = vmatmul.mubr.msk.bf16.vlgmr.msra.gmra.mxu1 %vm110_vm0, %v5521_v9 }
 0x253   :  { %4895 = vmatpush3.bf16.msra.mxu1 %v521_v17  ;;  %4902 = vmatprep.mubr.msk.bf16.mxu1 %vm110_vm0, %v5522_v32 }
 0x254   :  { %4896 = vmatprep.subr.bf16.mxu1 %v520_v22  ;;  %853 = vmatpush1.bf16.msra.mxu0 %v5524_v34 }
 0x255   :  { %854 = vmatprep.subr.bf16.mxu0 %v5804_v35 }
 0x257   :  { %4897 = vmatpush3.bf16.msra.mxu1 %v520_v22 }
 0x258   :  { %4898 = vmatprep.subr.bf16.mxu1 %v519_v29  ;;  %855 = vmatpush1.bf16.msra.mxu0 %v5525_v36 }
 0x259   :  { %856 = vmatprep.subr.bf16.mxu0 %v5804_v35 }
 0x25b   :  { %4899 = vmatpush3.bf16.msra.mxu1 %v519_v29 }
 0x25c   :  { %4900 = vmatprep.subr.bf16.mxu1 %v518_v31  ;;  %857 = vmatpush1.bf16.msra.mxu0 %v5526_v37  ;;  %v937_v37 = vld [vmem:[%s7472_s4] sm:$0xff] }
 0x25d   :  { %858 = vmatprep.subr.bf16.mxu0 %v5804_v35 }
 0x25f   :  { %4901 = vmatpush3.bf16.msra.mxu1 %v518_v31 }
 0x260   :  { %859 = vmatpush1.bf16.msra.mxu0 %v5527_v38 }
 0x261   :  { %860 = vmatprep.subr.bf16.mxu0 %v5804_v35 }
 0x262   :  { %4903 = vmatmul.mubr.msk.bf16.vlgmr.msra.gmra.mxu1 %vm110_vm0, %v5523_v33 }
 0x263   :  { %1109 = vmatprep.mubr.bf16.mxu1 %v5804_v35 }
 0x264   :  { %861 = vmatpush1.bf16.msra.mxu0 %v5528_v39 }
 0x265   :  { %862 = vmatprep.subr.bf16.mxu0 %v5804_v35 }
 0x268   :  { %863 = vmatpush1.bf16.msra.mxu0 %v5529_v40 }
 0x269   :  { %864 = vmatprep.subr.bf16.mxu0 %v5804_v35 }
 0x26c   :  { %865 = vmatpush1.bf16.msra.mxu0 %v5530_v41 }
 0x26d   :  { %866 = vmatprep.subr.bf16.mxu0 %v5804_v35 }
 0x270   :  { %867 = vmatpush1.bf16.msra.mxu0 %v5531_v42 }
 0x271   :  { %876 = vmatprep.subr.bf16.mxu0 %v5804_v35 }
 0x274   :  { %877 = vmatpush2.bf16.msra.mxu0 %v5532_v43  ;;  %v938_v43 = vld [vmem:[%s7472_s4 + $0x10] sm:$0xff] }
 0x275   :  { %878 = vmatprep.subr.bf16.mxu0 %v5804_v35 }
 0x278   :  { %879 = vmatpush2.bf16.msra.mxu0 %v5533_v44 }
 0x279   :  { %880 = vmatprep.subr.bf16.mxu0 %v5804_v35 }
 0x27c   :  { %881 = vmatpush2.bf16.msra.mxu0 %v5534_v45 }
 0x27d   :  { %882 = vmatprep.subr.bf16.mxu0 %v5804_v35 }
 0x280   :  { %883 = vmatpush2.bf16.msra.mxu0 %v5535_v46 }
 0x312   :  { %v4892_v47 = vpop.f32.mrf.mxu0  ;;  %v4880_v48 = vpop.f32.mrf.mxu1 }
 0x314   :  { %v647_v49 = vpop.f32.mrf.mxu0  ;;  %v576_v50 = vpop.f32.mrf.mxu1 }
 0x316   :  { %v4893_v51 = vpop.f32.mrf.mxu0  ;;  %v4881_v52 = vpop.f32.mrf.mxu1 }
 0x317   :  { %v663_v53 = vpack.c.bf16 %v4893_v51, %v4892_v47  ;;  %v592_v54 = vpack.c.bf16 %v4881_v52, %v4880_v48 }
 0x318   :  { %v650_v55 = vpop.f32.mrf.mxu0  ;;  %v579_v56 = vpop.f32.mrf.mxu1 }
 0x319   :  { %v662_v57 = vpack.c.bf16 %v650_v55, %v647_v49  ;;  %739 = vrot.lane.b32.xlu1 %v663_v53, %s5805_s18  ;;  %v591_v58 = vpack.c.bf16 %v579_v56, %v576_v50  ;;  %v939_v50 = vld [vmem:[%s7472_s4 + $0x20] sm:$0xff] }
 0x31b   :  { %737 = vrot.lane.b32.xlu0 %v662_v57, %s5805_s18 }
 0x322   :  { %v4904_v59 = vpop.f32.mrf.mxu1 }
 0x324   :  { %v718_v60 = vpop.f32.mrf.mxu1 }
 0x326   :  { %v4905_v61 = vpop.f32.mrf.mxu1 }
 0x327   :  { %v734_v62 = vpack.c.bf16 %v4905_v61, %v4904_v59 }
 0x328   :  { %v721_v63 = vpop.f32.mrf.mxu1 }
 0x329   :  { %v733_v0 = vpack.c.bf16 %v721_v63, %v718_v60 }
 0x32b   :  { %4342 = vmatprep.mubr.msk.bf16.mxu0 %vm110_vm0, %v733_v0 }
 0x38b   :  { %v740_v4 = vpop.permute.xlu1 %739 }
 0x38c   :  { %v747_v5 = vsel %vm110_vm0, %v592_v54, %v740_v4 }
 0x38d   :  { %v738_v1 = vpop.permute.xlu0 %737 }
 0x38e   :  { %v743_v2 = vsel %vm110_vm0, %v591_v58, %v738_v1 }
 0x38f   :  { %885 = vmatmul.mubr.bf16.vlgmr.msra.gmra.mxu0 %v743_v2 }
 0x390   :  { %4343 = vmatprep.mubr.msk.bf16.mxu0 %vm110_vm0, %v734_v62 }
 0x397   :  { %893 = vmatmul.mubr.bf16.gmra.mxu0 %v747_v5 }
 0x44f   :  { %v886_v8 = vpop.f32.mrf.mxu0 }
 0x450   :  { %v887_v10 = vadd.f32 %v886_v8, %v773_v7 }
 0x451   :  { %v888_v12 = vpop.f32.mrf.mxu0 }
 0x452   :  { %v905_v13 = vmul.f32 0.044715, %v887_v10  ;;  %v901_v34 = vmul.f32 0.5, %v887_v10 }
 0x453   :  { %v889_v15 = vpop.f32.mrf.mxu0 }
 0x454   :  { %v909_v16 = vmul.f32 %v905_v13, %v887_v10  ;;  %v890_v17 = vadd.f32 %v889_v15, %v773_v7  ;;  %v940_v13 = vld [vmem:[%s7472_s4 + $0x30] sm:$0xff] }
 0x455   :  { %v891_v18 = vpop.f32.mrf.mxu0 }
 0x456   :  { %v913_v19 = vmul.f32 %v909_v16, %v887_v10  ;;  %v906_v20 = vmul.f32 0.044715, %v890_v17  ;;  %v902_v41 = vmul.f32 0.5, %v890_v17 }
 0x457   :  { %v894_v21 = vpop.f32.mrf.mxu0 }
 0x458   :  { %v917_v14 = vadd.f32 %v913_v19, %v887_v10  ;;  %v910_v23 = vmul.f32 %v906_v20, %v890_v17  ;;  %v895_v24 = vadd.f32 %v894_v21, %v773_v7 }
 0x459   :  { %v896_v25 = vpop.f32.mrf.mxu0 }
 0x45a   :  { %v914_v26 = vmul.f32 %v910_v23, %v890_v17  ;;  %v907_v27 = vmul.f32 0.044715, %v895_v24  ;;  %v921_v6 = vmul.f32 0.7978846, %v917_v14  ;;  %v903_v48 = vmul.f32 0.5, %v895_v24 }
 0x45b   :  { %v897_v22 = vpop.f32.mrf.mxu0  ;;  %v5538_v23 = vld [vmem:[%s7471_s3 + $0x34] ss:$8 sps:$4 sm:$0xff]   ;;  %v5541_v25 = vld [vmem:[%s7471_s3 + $0x24] ss:$8 sps:$4 sm:$0xff]  }
 0x45c   :  { %v918_v28 = vadd.f32 %v914_v26, %v890_v17  ;;  %v911_v29 = vmul.f32 %v907_v27, %v895_v24  ;;  %v898_v30 = vadd.f32 %v897_v22, %v773_v7  ;;  %5648 = vtanh.f32 %v921_v6  ;;  %1085 = vmatprep.subr.bf16.mxu1 %v5538_v23  ;;  %v5539_v26 = vld [vmem:[%s7471_s3 + $0x20] ss:$8 sps:$4 sm:$0xff]   ;;  %v5542_v27 = vld [vmem:[%s7471_s3 + $0x10] ss:$8 sps:$4 sm:$0xff]   ;;  %v5544_v6 = vld [vmem:[%s7471_s3 + $0x14] ss:$8 sps:$4 sm:$0xff]  }
 0x45d   :  { %v899_v3 = vpop.f32.mrf.mxu0  ;;  %v5547_v22 = vld [vmem:[%s7471_s3 + $0x4] ss:$8 sps:$4 sm:$0xff]   ;;  %v5806_v23 = vmov 0.0  }
 0x45e   :  { %v915_v31 = vmul.f32 %v911_v29, %v895_v24  ;;  %v922_v11 = vmul.f32 0.7978846, %v918_v28  ;;  %v908_v55 = vmul.f32 0.044715, %v898_v30  ;;  %v904_v5 = vmul.f32 0.5, %v898_v30  ;;  %v6109_v29 = vld [vmem:[%s7469_s1 + $0x120] sm:$0xff]  }
 0x45f   :  { %v5545_v28 = vld [vmem:[%s7471_s3] ss:$8 sps:$4 sm:$0xff]  }
 0x460   :  { %v919_v9 = vadd.f32 %v915_v31, %v895_v24  ;;  %5650 = vtanh.f32 %v922_v11  ;;  %v912_v56 = vmul.f32 %v908_v55, %v898_v30  ;;  %v5536_v24 = vld [vmem:[%s7471_s3 + $0x30] ss:$8 sps:$4 sm:$0xff]   ;;  %v6123_v3 = vld [vmem:[%s7469_s1 + $0x108] sm:$0xff]   ;;  %v6130_v31 = vld [vmem:[%s7469_s1 + $0x100] sm:$0xff]  }
 0x461   :  { %1086 = vmatpush1.bf16.msra.mxu1 %v5536_v24  ;;  %v6137_v11 = vld [vmem:[%s7469_s1 + $0xf8] sm:$0xff]  }
 0x462   :  { %v923_v32 = vmul.f32 0.7978846, %v919_v9  ;;  %v916_v57 = vmul.f32 %v912_v56, %v898_v30  ;;  %1087 = vmatprep.subr.bf16.mxu1 %v5541_v25  ;;  %v6144_v9 = vld [vmem:[%s7469_s1 + $0xe8] sm:$0xff]  }
 0x464   :  { %5652 = vtanh.f32 %v923_v32  ;;  %v920_v58 = vadd.f32 %v916_v57, %v898_v30  ;;  %v6116_v30 = vld [vmem:[%s7469_s1 + $0x110] sm:$0xff]  }
 0x465   :  { %1088 = vmatpush1.bf16.msra.mxu1 %v5539_v26 }
 0x466   :  { %v924_v59 = vmul.f32 0.7978846, %v920_v58  ;;  %1089 = vmatprep.subr.bf16.mxu1 %v5544_v6  ;;  %v6163_v58 = vld [vmem:[%s7469_s1 + $0x118] sm:$0xff]  }
 0x468   :  { %5654 = vtanh.f32 %v924_v59  ;;  %v6170_v59 = vld [vmem:[%s7469_s1 + $0xf0] sm:$0xff]  }
 0x469   :  { %v5649_v33 = vpop.eup %5648  ;;  %1090 = vmatpush1.bf16.msra.mxu1 %v5542_v27 }
 0x46a   :  { %v929_v36 = vadd.f32 1.0, %v5649_v33  ;;  %1091 = vmatprep.subr.bf16.mxu1 %v5547_v22 }
 0x46c   :  { %v933_v38 = vmul.f32 %v929_v36, %v901_v34 }
 0x46d   :  { %v5651_v39 = vpop.eup %5650  ;;  %1092 = vmatpush1.bf16.msra.mxu1 %v5545_v28 }
 0x46e   :  { %v6039_v40 = vadd.f32 %v937_v37, %v933_v38  ;;  %v930_v42 = vadd.f32 1.0, %v5651_v39  ;;  %4906 = vmatprep.subr.bf16.mxu1 %v5806_v23 }
 0x470   :  { %v947_v44 = vsel %vm110_vm0, %v6039_v40, 0.0  ;;  %v934_v45 = vmul.f32 %v930_v42, %v902_v41 }
 0x471   :  { %v5653_v46 = vpop.eup %5652  ;;  %948 = vadd.xlane.f32.xlu0 %v947_v44 }
 0x472   :  { %v6046_v47 = vadd.f32 %v938_v43, %v934_v45  ;;  %v931_v49 = vadd.f32 1.0, %v5653_v46 }
 0x474   :  { %v950_v51 = vsel %vm110_vm0, %v6046_v47, 0.0  ;;  %v935_v52 = vmul.f32 %v931_v49, %v903_v48  ;;  %v945_v48 = vld [vmem:[%s7472_s4 + $0x50] ss:$0 sm:$0xff] }
 0x475   :  { %951 = vadd.xlane.f32.xlu1 %v950_v51  ;;  %v5655_v60 = vpop.eup %5654 }
 0x476   :  { %v6053_v53 = vadd.f32 %v939_v50, %v935_v52  ;;  %v932_v0 = vadd.f32 1.0, %v5655_v60  ;;  %v946_v52 = vld [vmem:[%s7472_s4 + $0x51] ss:$0 sm:$0xff] }
 0x478   :  { %v953_v54 = vsel %vm110_vm0, %v6053_v53, 0.0  ;;  %v936_v10 = vmul.f32 %v932_v0, %v904_v5 }
 0x479   :  { %954 = vadd.xlane.f32.xlu1 %v953_v54 }
 0x47a   :  { %v6075_v19 = vadd.f32 %v940_v13, %v936_v10 }
 0x47c   :  { %v956_v20 = vsel %vm110_vm0, %v6075_v19, 0.0 }
 0x48a   :  { %1186 = vrot.lane.b32.xlu1 %v6109_v29, %s5805_s18 }
 0x48e   :  { %1182 = vrot.lane.b32.xlu1 %v6116_v30, %s5805_s18 }
 0x492   :  { %1180 = vrot.lane.b32.xlu1 %v6123_v3, %s5805_s18 }
 0x496   :  { %1178 = vrot.lane.b32.xlu1 %v6130_v31, %s5805_s18 }
 0x49a   :  { %1176 = vrot.lane.b32.xlu1 %v6137_v11, %s5805_s18 }
 0x49e   :  { %1172 = vrot.lane.b32.xlu1 %v6144_v9, %s5805_s18 }
 0x4fa   :  { %v949_v61 = vpop.xlane.xlu0 %948 }
 0x4fb   :  { %v960_v62 = vmul.f32 0.015625, %v949_v61 }
 0x4fd   :  { %v6058_v63 = vsub.f32 %v6039_v40, %v960_v62 }
 0x4fe   :  { %v952_v1 = vpop.xlane.xlu1 %951 }
 0x4ff   :  { %v961_v2 = vmul.f32 0.015625, %v952_v1  ;;  %v968_v4 = vmul.f32 %v6058_v63, %v6058_v63 }
 0x501   :  { %v6063_v7 = vsub.f32 %v6046_v47, %v961_v2  ;;  %v972_v8 = vsel %vm110_vm0, %v968_v4, 0.0 }
 0x502   :  { %v955_v12 = vpop.xlane.xlu1 %954  ;;  %973 = vadd.xlane.f32.xlu0 %v972_v8 }
 0x503   :  { %v962_v15 = vmul.f32 0.015625, %v955_v12  ;;  %v969_v16 = vmul.f32 %v6063_v7, %v6063_v7 }
 0x505   :  { %v6072_v17 = vsub.f32 %v6053_v53, %v962_v15  ;;  %v975_v18 = vsel %vm110_vm0, %v969_v16, 0.0 }
 0x506   :  { %976 = vadd.xlane.f32.xlu0 %v975_v18  ;;  %v6176_v16 = vpop.permute.xlu1 %1186  ;;  %v1021_v18 = vlaneseq }
 0x507   :  { %v970_v21 = vmul.f32 %v6072_v17, %v6072_v17 }
 0x509   :  { %v978_v14 = vsel %vm110_vm0, %v970_v21, 0.0 }
 0x50a   :  { %957 = vadd.xlane.f32.xlu0 %v956_v20  ;;  %v6178_v20 = vshrl.u32 %v1021_v18, 7  ;;  %v6180_v21 = vpop.permute.xlu1 %1182 }
 0x50e   :  { %979 = vadd.xlane.f32.xlu0 %v978_v14  ;;  %v6183_v14 = vsub.s32 0, %v6178_v20  ;;  %v6191_v24 = vpop.permute.xlu1 %1180 }
 0x58b   :  { %v974_v32 = vpop.xlane.xlu0 %973 }
 0x58c   :  { %v984_v33 = vmul.f32 0.015625, %v974_v32  ;;  %v6197_v32 = vpop.permute.xlu1 %1178 }
 0x58e   :  { %v988_v34 = vadd.f32 1e-05, %v984_v33 }
 0x58f   :  { %v977_v36 = vpop.xlane.xlu0 %976 }
 0x590   :  { %5656 = vrsqrt.f32 %v988_v34  ;;  %v985_v37 = vmul.f32 0.015625, %v977_v36 }
 0x592   :  { %v989_v38 = vadd.f32 1e-05, %v985_v37 }
 0x593   :  { %v958_v39 = vpop.xlane.xlu0 %957 }
 0x594   :  { %5658 = vrsqrt.f32 %v989_v38  ;;  %v963_v41 = vmul.f32 0.015625, %v958_v39  ;;  %v6209_v38 = vpop.permute.xlu1 %1176 }
 0x596   :  { %v967_v42 = vsub.f32 %v6075_v19, %v963_v41 }
 0x597   :  { %v980_v60 = vpop.xlane.xlu0 %979 }
 0x598   :  { %v971_v43 = vmul.f32 %v967_v42, %v967_v42  ;;  %v986_v61 = vmul.f32 0.015625, %v980_v60 }
 0x59a   :  { %v981_v44 = vsel %vm110_vm0, %v971_v43, 0.0  ;;  %v990_v62 = vadd.f32 1e-05, %v986_v61 }
 0x59b   :  { %982 = vadd.xlane.f32.xlu0 %v981_v44 }
 0x59c   :  { %5660 = vrsqrt.f32 %v990_v62 }
 0x59d   :  { %v5657_v45 = vpop.eup %5656 }
 0x59e   :  { %v996_v46 = vmul.f32 %v5657_v45, %v6058_v63  ;;  %v6223_v45 = vpop.permute.xlu1 %1172 }
 0x5a0   :  { %v1000_v51 = vmul.f32 %v996_v46, %v945_v48 }
 0x5a1   :  { %v5659_v49 = vpop.eup %5658 }
 0x5a2   :  { %v997_v50 = vmul.f32 %v5659_v49, %v6063_v7  ;;  %v1004_v55 = vadd.f32 %v1000_v51, %v946_v52 }
 0x5a4   :  { %v1001_v54 = vmul.f32 %v997_v50, %v945_v48 }
 0x5a6   :  { %v1005_v56 = vadd.f32 %v1001_v54, %v946_v52 }
 0x5a8   :  { %v1016_v57 = vpack.c.bf16 %v1005_v56, %v1004_v55 }
 0x5a9   :  { %v5661_v2 = vpop.eup %5660 }
 0x5aa   :  { %4353 = vmatmul.mubr.msk.bf16.vlgmr.msra.gmra.mxu1 %vm110_vm0, %v1016_v57  ;;  %v998_v4 = vmul.f32 %v5661_v2, %v6072_v17  ;;  %v6188_v17 = vld [vmem:[%s7472_s4 + $0x54] ss:$8 sm:$0x3] }
 0x5ab   :  { %1119 = vmatprep.mubr.bf16.mxu1 %v5804_v35  ;;  %v1024_v26 = vrot.slane %v6188_v17, %v6183_v14 }
 0x5ac   :  { %v1002_v8 = vmul.f32 %v998_v4, %v945_v48 }
 0x5ae   :  { %v1006_v12 = vadd.f32 %v1002_v8, %v946_v52 }
 0x5b1   :  { %1184 = vrot.lane.b32.xlu0 %v6163_v58, %s5805_s18 }
 0x5b5   :  { %1174 = vrot.lane.b32.xlu0 %v6170_v59, %s5805_s18 }
 0x624   :  { %v983_v63 = vpop.xlane.xlu0 %982 }
 0x625   :  { %v987_v0 = vmul.f32 0.015625, %v983_v63 }
 0x627   :  { %v991_v1 = vadd.f32 1e-05, %v987_v0 }
 0x628   :  { %v6201_v34 = vpop.permute.xlu0 %1184 }
 0x629   :  { %5662 = vrsqrt.f32 %v991_v1 }
 0x62c   :  { %v6221_v44 = vpop.permute.xlu0 %1174 }
 0x636   :  { %v5663_v5 = vpop.eup %5662 }
 0x637   :  { %v999_v7 = vmul.f32 %v5663_v5, %v967_v42 }
 0x639   :  { %v1003_v10 = vmul.f32 %v999_v7, %v945_v48 }
 0x63b   :  { %v1007_v13 = vadd.f32 %v1003_v10, %v946_v52 }
 0x63d   :  { %v1017_v15 = vpack.c.bf16 %v1007_v13, %v1006_v12 }
 0x63f   :  { %4354 = vmatmul.mubr.msk.bf16.gmra.mxu1 %vm110_vm0, %v1017_v15 }
 0x640   :  { %4922 = vmatprep.mubr.msk.bf16.mxu1 %vm5807_vm4, %v5806_v23 }
 0x66a   :  { %v1111_v25 = vpop.f32.mrf.mxu1 }
 0x66b   :  { %v1112_v22 = vadd.f32 %v1111_v25, %v1024_v26 }
 0x66c   :  { %v6195_v27 = vpop.f32.mrf.mxu1 }
 0x66e   :  { %v1115_v6 = vpop.f32.mrf.mxu1 }
 0x66f   :  { %v1116_v28 = vadd.f32 %v1115_v6, %v1024_v26 }
 0x670   :  { %v6241_v56 = vpop.f32.mrf.mxu1 }
 0x671   :  { %v6199_v33 = vpack.c.bf16 %v1116_v28, %v1112_v22 }
 0x673   :  { %v1203_v36 = vmul.bf16 %v6176_v16, %v6199_v33  ;;  %v1202_v37 = vmul.bf16 %v6201_v34, %v6199_v33  ;;  %v1201_v39 = vmul.bf16 %v6180_v21, %v6199_v33  ;;  %v1200_v41 = vmul.bf16 %v6191_v24, %v6199_v33 }
 0x674   :  { %v1199_v42 = vmul.bf16 %v6197_v32, %v6199_v33  ;;  %v1198_v43 = vmul.bf16 %v6209_v38, %v6199_v33  ;;  %v1197_v46 = vmul.bf16 %v6221_v44, %v6199_v33  ;;  %v1196_v48 = vmul.bf16 %v6223_v45, %v6199_v33 }
 0x675   :  { %1242 = vrot.lane.b32.xlu0 %v1203_v36, %s5805_s18  ;;  %1240 = vrot.lane.b32.xlu1 %v1202_v37, %s5805_s18 }
 0x679   :  { %1238 = vrot.lane.b32.xlu0 %v1201_v39, %s5805_s18  ;;  %1236 = vrot.lane.b32.xlu1 %v1200_v41, %s5805_s18  ;;  %v4495_v39 = vld [vmem:[%s7470_s2 + $0xb8] sm:$0xff]   ;;  %v4494_v41 = vld [vmem:[%s7470_s2 + $0xb0] sm:$0xff]  }
 0x67d   :  { %1234 = vrot.lane.b32.xlu0 %v1199_v42, %s5805_s18  ;;  %1232 = vrot.lane.b32.xlu1 %v1198_v43, %s5805_s18  ;;  %v6291_v42 = vunpack.c.h.bf16 %v4495_v39  ;;  %v6293_v43 = vunpack.c.l.bf16 %v4495_v39 }
 0x67f   :  { %4926 = vmatprep.subr.mxu0 %v6291_v42 }
 0x680   :  { %4927 = vmatpush3.msra.mxu0 %v6291_v42 }
 0x681   :  { %1230 = vrot.lane.b32.xlu0 %v1197_v46, %s5805_s18  ;;  %1228 = vrot.lane.b32.xlu1 %v1196_v48, %s5805_s18  ;;  %v6296_v46 = vunpack.c.h.bf16 %v4494_v41  ;;  %v6303_v48 = vunpack.c.l.bf16 %v4494_v41 }
 0x682   :  { %4928 = vmatprep.subr.mxu0 %v6293_v43 }
 0x683   :  { %4929 = vmatpush3.msra.mxu0 %v6293_v43 }
 0x684   :  { %4930 = vmatprep.subr.mxu0 %v6296_v46 }
 0x685   :  { %4931 = vmatpush3.msra.mxu0 %v6296_v46 }
 0x686   :  { %4932 = vmatprep.subr.mxu0 %v6303_v48 }
 0x687   :  { %4933 = vmatpush3.msra.mxu0 %v6303_v48 }
 0x6e7   :  { %v1243_v49 = vpop.permute.xlu0 %1242  ;;  %v1241_v51 = vpop.permute.xlu1 %1240 }
 0x6e8   :  { %v1269_v50 = vsel %vm110_vm0, %v1243_v49, 0  ;;  %v1266_v52 = vsel %vm110_vm0, %v1241_v51, 0 }
 0x6e9   :  { %4907 = vmatpush3.bf16.xpose.msra.mxu1 %v1269_v50 }
 0x6ea   :  { %4908 = vmatprep.subr.bf16.mxu1 %v5806_v23 }
 0x6eb   :  { %v1239_v54 = vpop.permute.xlu0 %1238  ;;  %v1237_v57 = vpop.permute.xlu1 %1236 }
 0x6ec   :  { %v1263_v55 = vsel %vm110_vm0, %v1239_v54, 0  ;;  %v1260_v61 = vsel %vm110_vm0, %v1237_v57, 0 }
 0x6ef   :  { %v1235_v2 = vpop.permute.xlu0 %1234  ;;  %v1233_v13 = vpop.permute.xlu1 %1232 }
 0x6f0   :  { %v1257_v5 = vsel %vm110_vm0, %v1235_v2, 0  ;;  %v1254_v15 = vsel %vm110_vm0, %v1233_v13, 0 }
 0x6f1   :  { %4909 = vmatpush3.bf16.xpose.msra.mxu1 %v1266_v52 }
 0x6f2   :  { %4910 = vmatprep.subr.bf16.mxu1 %v5806_v23 }
 0x6f3   :  { %v1231_v22 = vpop.permute.xlu0 %1230  ;;  %v1229_v36 = vpop.permute.xlu1 %1228 }
 0x6f4   :  { %v1251_v28 = vsel %vm110_vm0, %v1231_v22, 0  ;;  %v1248_v37 = vsel %vm110_vm0, %v1229_v36, 0 }
 0x6f9   :  { %4911 = vmatpush3.bf16.xpose.msra.mxu1 %v1263_v55 }
 0x6fa   :  { %4912 = vmatprep.subr.bf16.mxu1 %v5806_v23 }
 0x6ff   :  { %v1121_v60 = vpop.f32.mrf.mxu1 }
 0x700   :  { %v1122_v0 = vadd.f32 %v1121_v60, %v1024_v26 }
 0x701   :  { %v6244_v62 = vpop.f32.mrf.mxu1  ;;  %4913 = vmatpush3.bf16.xpose.msra.mxu1 %v1260_v61 }
 0x702   :  { %4914 = vmatprep.subr.bf16.mxu1 %v5806_v23 }
 0x703   :  { %v1125_v63 = vpop.f32.mrf.mxu1 }
 0x704   :  { %v1126_v1 = vadd.f32 %v1125_v63, %v1024_v26 }
 0x705   :  { %v6335_v13 = vpop.f32.mrf.mxu1 }
 0x706   :  { %v6247_v4 = vpack.c.bf16 %v1126_v1, %v1122_v0 }
 0x708   :  { %v1454_v7 = vmul.bf16 %v6247_v4, %v6176_v16  ;;  %v1453_v8 = vmul.bf16 %v6247_v4, %v6201_v34  ;;  %v1452_v10 = vmul.bf16 %v6247_v4, %v6180_v21  ;;  %v1451_v12 = vmul.bf16 %v6247_v4, %v6191_v24 }
 0x709   :  { %4915 = vmatpush3.bf16.xpose.msra.mxu1 %v1257_v5  ;;  %v1450_v18 = vmul.bf16 %v6247_v4, %v6197_v32  ;;  %v1449_v25 = vmul.bf16 %v6247_v4, %v6209_v38  ;;  %v1448_v26 = vmul.bf16 %v6247_v4, %v6221_v44  ;;  %v1447_v6 = vmul.bf16 %v6247_v4, %v6223_v45 }
 0x70a   :  { %1485 = vrot.lane.b32.xlu0 %v1454_v7, %s5805_s18  ;;  %1483 = vrot.lane.b32.xlu1 %v1453_v8, %s5805_s18 }
 0x70b   :  { %4916 = vmatprep.subr.bf16.mxu1 %v5806_v23 }
 0x70e   :  { %1481 = vrot.lane.b32.xlu0 %v1452_v10, %s5805_s18  ;;  %1479 = vrot.lane.b32.xlu1 %v1451_v12, %s5805_s18 }
 0x711   :  { %4917 = vmatpush3.bf16.xpose.msra.mxu1 %v1254_v15 }
 0x712   :  { %1477 = vrot.lane.b32.xlu0 %v1450_v18, %s5805_s18  ;;  %1475 = vrot.lane.b32.xlu1 %v1449_v25, %s5805_s18 }
 0x713   :  { %4918 = vmatprep.subr.bf16.mxu1 %v5806_v23 }
 0x716   :  { %1473 = vrot.lane.b32.xlu0 %v1448_v26, %s5805_s18  ;;  %1471 = vrot.lane.b32.xlu1 %v1447_v6, %s5805_s18 }
 0x719   :  { %4919 = vmatpush3.bf16.xpose.msra.mxu1 %v1251_v28  ;;  %v4492_v28 = vld [vmem:[%s7470_s2 + $0xa0] sm:$0xff]  }
 0x71a   :  { %4920 = vmatprep.subr.bf16.mxu1 %v5806_v23  ;;  %v6340_v36 = vunpack.c.h.bf16 %v4492_v28 }
 0x721   :  { %4921 = vmatpush3.bf16.xpose.msra.mxu1 %v1248_v37  ;;  %v6343_v37 = vunpack.c.l.bf16 %v4492_v28 }
 0x722   :  { %4981 = vmatprep.subr.bf16.mxu1 %v5806_v23 }
 0x728   :  { %4923 = vmatmul.mubr.msk.bf16.vlgmr.msra.gmra.mxu1 %vm110_vm0, %v6199_v33  ;;  %v4493_v33 = vld [vmem:[%s7470_s2 + $0xa8] sm:$0xff]  }
 0x729   :  { %4997 = vmatprep.mubr.msk.bf16.mxu1 %vm5807_vm4, %v5806_v23  ;;  %v6307_v49 = vunpack.c.h.bf16 %v4493_v33  ;;  %v6311_v50 = vunpack.c.l.bf16 %v4493_v33  ;;  %v4490_v33 = vld [vmem:[%s7470_s2 + $0x90] sm:$0xff]  }
 0x72b   :  { %4934 = vmatprep.subr.mxu0 %v6307_v49 }
 0x72c   :  { %4935 = vmatpush3.msra.mxu0 %v6307_v49 }
 0x72d   :  { %4936 = vmatprep.subr.mxu0 %v6311_v50 }
 0x72e   :  { %4937 = vmatpush3.msra.mxu0 %v6311_v50 }
 0x72f   :  { %4938 = vmatprep.subr.mxu0 %v6340_v36 }
 0x730   :  { %4939 = vmatpush3.msra.mxu0 %v6340_v36 }
 0x731   :  { %4940 = vmatprep.subr.mxu0 %v6343_v37 }
 0x732   :  { %4941 = vmatpush3.msra.mxu0 %v6343_v37 }
 0x77c   :  { %v1486_v51 = vpop.permute.xlu0 %1485  ;;  %v1484_v54 = vpop.permute.xlu1 %1483 }
 0x77d   :  { %v1512_v52 = vsel %vm110_vm0, %v1486_v51, 0  ;;  %v1509_v55 = vsel %vm110_vm0, %v1484_v54, 0  ;;  %v6361_v51 = vunpack.c.h.bf16 %v4490_v33  ;;  %v4489_v54 = vld [vmem:[%s7470_s2 + $0x88] sm:$0xff]  }
 0x77e   :  { %4982 = vmatpush3.bf16.xpose.msra.mxu1 %v1512_v52  ;;  %v6364_v52 = vunpack.c.l.bf16 %v4490_v33 }
 0x77f   :  { %4983 = vmatprep.subr.bf16.mxu1 %v5806_v23 }
 0x780   :  { %v1482_v57 = vpop.permute.xlu0 %1481  ;;  %v1480_v61 = vpop.permute.xlu1 %1479 }
 0x781   :  { %v1506_v60 = vsel %vm110_vm0, %v1482_v57, 0  ;;  %v1503_v63 = vsel %vm110_vm0, %v1480_v61, 0  ;;  %v6375_v57 = vunpack.c.l.bf16 %v4489_v54 }
 0x784   :  { %v1478_v0 = vpop.permute.xlu0 %1477  ;;  %v1476_v2 = vpop.permute.xlu1 %1475 }
 0x785   :  { %v1500_v1 = vsel %vm110_vm0, %v1478_v0, 0  ;;  %v1497_v5 = vsel %vm110_vm0, %v1476_v2, 0 }
 0x786   :  { %4984 = vmatpush3.bf16.xpose.msra.mxu1 %v1509_v55  ;;  %v6372_v55 = vunpack.c.h.bf16 %v4489_v54 }
 0x787   :  { %4985 = vmatprep.subr.bf16.mxu1 %v5806_v23 }
 0x788   :  { %v1474_v7 = vpop.permute.xlu0 %1473  ;;  %v1472_v10 = vpop.permute.xlu1 %1471 }
 0x789   :  { %v1494_v8 = vsel %vm110_vm0, %v1474_v7, 0  ;;  %v1491_v12 = vsel %vm110_vm0, %v1472_v10, 0  ;;  %v6394_v10 = vsub.s32 1, %v6178_v20 }
 0x78e   :  { %4986 = vmatpush3.bf16.xpose.msra.mxu1 %v1506_v60  ;;  %v4488_v60 = vld [vmem:[%s7470_s2 + $0x80] sm:$0xff]  }
 0x78f   :  { %4987 = vmatprep.subr.bf16.mxu1 %v5806_v23  ;;  %v6382_v61 = vunpack.c.h.bf16 %v4488_v60 }
 0x796   :  { %4988 = vmatpush3.bf16.xpose.msra.mxu1 %v1503_v63  ;;  %v6386_v63 = vunpack.c.l.bf16 %v4488_v60 }
 0x797   :  { %4989 = vmatprep.subr.bf16.mxu1 %v5806_v23 }
 0x79e   :  { %4990 = vmatpush3.bf16.xpose.msra.mxu1 %v1500_v1 }
 0x79f   :  { %4991 = vmatprep.subr.bf16.mxu1 %v5806_v23 }
 0x7a6   :  { %4992 = vmatpush3.bf16.xpose.msra.mxu1 %v1497_v5 }
 0x7a7   :  { %4993 = vmatprep.subr.bf16.mxu1 %v5806_v23 }
 0x7ae   :  { %4994 = vmatpush3.bf16.xpose.msra.mxu1 %v1494_v8 }
 0x7af   :  { %4995 = vmatprep.subr.bf16.mxu1 %v5806_v23 }
 0x7b6   :  { %4996 = vmatpush3.bf16.xpose.msra.mxu1 %v1491_v12 }
 0x7bd   :  { %4998 = vmatmul.mubr.msk.bf16.vlgmr.msra.gmra.mxu1 %vm110_vm0, %v6247_v4  ;;  %v4491_v4 = vld [vmem:[%s7470_s2 + $0x98] sm:$0xff]  }
 0x7be   :  { %v6350_v39 = vunpack.c.h.bf16 %v4491_v4  ;;  %v6354_v41 = vunpack.c.l.bf16 %v4491_v4 }
 0x7c0   :  { %4942 = vmatprep.subr.mxu0 %v6350_v39 }
 0x7c1   :  { %4943 = vmatpush3.msra.mxu0 %v6350_v39 }
 0x7c2   :  { %4944 = vmatprep.subr.mxu0 %v6354_v41 }
 0x7c3   :  { %4945 = vmatpush3.msra.mxu0 %v6354_v41 }
 0x7c4   :  { %4946 = vmatprep.subr.mxu0 %v6361_v51 }
 0x7c5   :  { %4947 = vmatpush3.msra.mxu0 %v6361_v51 }
 0x7c6   :  { %4948 = vmatprep.subr.mxu0 %v6364_v52 }
 0x7c7   :  { %4949 = vmatpush3.msra.mxu0 %v6364_v52 }
 0x7c8   :  { %4950 = vmatprep.subr.mxu0 %v6372_v55 }
 0x7c9   :  { %4951 = vmatpush3.msra.mxu0 %v6372_v55 }
 0x7ca   :  { %4952 = vmatprep.subr.mxu0 %v6375_v57 }
 0x7cb   :  { %4953 = vmatpush3.msra.mxu0 %v6375_v57 }
 0x7cc   :  { %4954 = vmatprep.subr.mxu0 %v6382_v61 }
 0x7cd   :  { %4955 = vmatpush3.msra.mxu0 %v6382_v61 }
 0x7ce   :  { %4956 = vmatprep.subr.mxu0 %v6386_v63 }
 0x7cf   :  { %4957 = vmatpush3.msra.mxu0 %v6386_v63 }
 0x7d0   :  { %4961 = vmatprep.subr.bf16.mxu0 %v5806_v23 }
 0x7e8   :  { %v1305_v15 = vpop.f32.mrf.mxu1 }
 0x7e9   :  { %v1312_v18 = vmul.f32 0.35355338, %v1305_v15 }
 0x7ea   :  { %v4924_v25 = vpop.f32.mrf.mxu1 }
 0x7eb   :  { %1314 = vmax.xlane.f32.xlu0 %v1312_v18 }
 0x7ec   :  { %v1308_v26 = vpop.f32.mrf.mxu1 }
 0x7ed   :  { %v1313_v6 = vmul.f32 0.35355338, %v1308_v26  ;;  %v6398_v26 = vrot.slane %v6188_v17, %v6394_v10 }
 0x7ee   :  { %v4925_v22 = vpop.f32.mrf.mxu1 }
 0x7ef   :  { %1316 = vmax.xlane.f32.xlu1 %v1313_v6  ;;  %v1114_v20 = vadd.f32 %v6195_v27, %v6398_v26 }
 0x874   :  { %v1315_v0 = vpop.xlane.xlu0 %1314 }
 0x875   :  { %v1318_v1 = vsub.f32 %v1312_v18, %v1315_v0  ;;  %v1118_v18 = vadd.f32 %v6241_v56, %v6398_v26 }
 0x877   :  { %v1320_v2 = vmul.f32 1.442695, %v1318_v1  ;;  %v1131_v33 = vpack.c.bf16 %v1118_v18, %v1114_v20 }
 0x878   :  { %v1317_v5 = vpop.xlane.xlu1 %1316 }
 0x879   :  { %5664 = vpow2.f32 %v1320_v2  ;;  %v1319_v7 = vsub.f32 %v1313_v6, %v1317_v5  ;;  %v1219_v17 = vmul.bf16 %v6109_v29, %v1131_v33  ;;  %v1218_v56 = vmul.bf16 %v6163_v58, %v1131_v33 }
 0x87a   :  { %v1217_v27 = vmul.bf16 %v6116_v30, %v1131_v33  ;;  %v1216_v60 = vmul.bf16 %v6123_v3, %v1131_v33  ;;  %v1215_v0 = vmul.bf16 %v6130_v31, %v1131_v33  ;;  %v1214_v1 = vmul.bf16 %v6137_v11, %v1131_v33 }
 0x87b   :  { %v1322_v8 = vmul.f32 1.442695, %v1319_v7  ;;  %v1213_v2 = vmul.bf16 %v6170_v59, %v1131_v33  ;;  %v1212_v5 = vmul.bf16 %v6144_v9, %v1131_v33 }
 0x87d   :  { %5666 = vpow2.f32 %v1322_v8  ;;  %v1548_v12 = vpop.f32.mrf.mxu1 }
 0x87e   :  { %v1555_v15 = vmul.f32 0.35355338, %v1548_v12 }
 0x87f   :  { %v4999_v25 = vpop.f32.mrf.mxu1 }
 0x880   :  { %1557 = vmax.xlane.f32.xlu0 %v1555_v15 }
 0x881   :  { %v1551_v22 = vpop.f32.mrf.mxu1 }
 0x882   :  { %v6402_v28 = vmul.f32 0.35355338, %v1551_v22 }
 0x883   :  { %v5000_v6 = vpop.f32.mrf.mxu1 }
 0x884   :  { %1559 = vmax.xlane.f32.xlu0 %v6402_v28 }
 0x886   :  { %v5665_v4 = vpop.eup %5664 }
 0x887   :  { %4958 = vmatprep.mubr.f32.mxu0 %v5665_v4 }
 0x88a   :  { %v5667_v54 = vpop.eup %5666 }
 0x88b   :  { %4959 = vmatmul.mubr.f32.vlgmr.msra.gmra.mxu0 %v5667_v54 }
 0x88c   :  { %4962 = vmatpush3.bf16.msra.mxu0 %v1219_v17  ;;  %4977 = vmatprep.mubr.msk.bf16.mxu0 %vm5807_vm4, %v5806_v23 }
 0x88d   :  { %4963 = vmatprep.subr.bf16.mxu0 %v5806_v23 }
 0x890   :  { %4964 = vmatpush3.bf16.msra.mxu0 %v1218_v56 }
 0x891   :  { %4965 = vmatprep.subr.bf16.mxu0 %v5806_v23 }
 0x894   :  { %4966 = vmatpush3.bf16.msra.mxu0 %v1217_v27 }
 0x895   :  { %4967 = vmatprep.subr.bf16.mxu0 %v5806_v23 }
 0x898   :  { %4968 = vmatpush3.bf16.msra.mxu0 %v1216_v60 }
 0x899   :  { %4969 = vmatprep.subr.bf16.mxu0 %v5806_v23 }
 0x89c   :  { %4970 = vmatpush3.bf16.msra.mxu0 %v1215_v0 }
 0x89d   :  { %4971 = vmatprep.subr.bf16.mxu0 %v5806_v23 }
 0x8a0   :  { %4972 = vmatpush3.bf16.msra.mxu0 %v1214_v1 }
 0x8a1   :  { %4973 = vmatprep.subr.bf16.mxu0 %v5806_v23 }
 0x8a4   :  { %4974 = vmatpush3.bf16.msra.mxu0 %v1213_v2  ;;  %v5557_v2 = vld [vmem:[%s7469_s1 + $0x138] sm:$0xff]  }
 0x8a5   :  { %4975 = vmatprep.subr.bf16.mxu0 %v5806_v23 }
 0x8a8   :  { %4976 = vmatpush3.bf16.msra.mxu0 %v1212_v5 }
 0x8a9   :  { %5001 = vmatprep.subr.mxu0 %v6291_v42 }
 0x909   :  { %v1558_v7 = vpop.xlane.xlu0 %1557 }
 0x90a   :  { %v1561_v8 = vsub.f32 %v1555_v15, %v1558_v7 }
 0x90c   :  { %v1563_v22 = vmul.f32 1.442695, %v1561_v8 }
 0x90d   :  { %v1560_v15 = vpop.xlane.xlu0 %1559 }
 0x94b   :  { %v4960_v12 = vpop.f32.mrf.mxu0 }
 0x94c   :  { %5668 = vrcp.f32 %v4960_v12 }
 0x94d   :  { %v1390_v25 = vpop.f32.mrf.mxu0 }
 0x94e   :  { %5670 = vrcp.f32 %v1390_v25 }
 0x94f   :  { %5672 = vpow2.f32 %v1563_v22 }
 0x959   :  { %v5669_v18 = vpop.eup %5668 }
 0x95a   :  { %v1402_v17 = vmul.f32 %v5669_v18, %v5667_v54  ;;  %v1124_v54 = vadd.f32 %v6244_v62, %v6398_v26 }
 0x95b   :  { %v5671_v6 = vpop.eup %5670 }
 0x95c   :  { %v1401_v20 = vmul.f32 %v5671_v6, %v5665_v4  ;;  %v6425_v27 = vpop.eup %5672  ;;  %v1562_v4 = vsub.f32 %v6402_v28, %v1560_v15  ;;  %v1128_v28 = vadd.f32 %v6335_v13, %v6398_v26 }
 0x95e   :  { %v1403_v56 = vpack.c.bf16 %v1402_v17, %v1401_v20  ;;  %v1565_v33 = vmul.f32 1.442695, %v1562_v4  ;;  %v1446_v60 = vpack.c.bf16 %v1128_v28, %v1124_v54 }
 0x960   :  { %4978 = vmatmul.mubr.bf16.vlgmr.msra.gmra.mxu0 %v1403_v56  ;;  %5674 = vpow2.f32 %v1565_v33  ;;  %v1462_v0 = vmul.bf16 %v6109_v29, %v1446_v60  ;;  %v1461_v62 = vmul.bf16 %v6163_v58, %v1446_v60  ;;  %v1460_v26 = vmul.bf16 %v6116_v30, %v1446_v60  ;;  %v5559_v56 = vld [vmem:[%s7469_s1 + $0x128] sm:$0xff]  }
 0x961   :  { %5002 = vmatpush3.msra.mxu0 %v6291_v42  ;;  %5033 = vmatprep.mubr.f32.mxu0 %v6425_v27  ;;  %v1459_v29 = vmul.bf16 %v6123_v3, %v1446_v60  ;;  %v1458_v1 = vmul.bf16 %v6130_v31, %v1446_v60  ;;  %v1457_v58 = vmul.bf16 %v6137_v11, %v1446_v60  ;;  %v5556_v31 = vld [vmem:[%s7469_s1 + $0x140] sm:$0xff]   ;;  %v5558_v11 = vld [vmem:[%s7469_s1 + $0x130] sm:$0xff]  }
 0x962   :  { %5003 = vmatprep.subr.mxu0 %v6293_v43  ;;  %v1456_v30 = vmul.bf16 %v6170_v59, %v1446_v60  ;;  %v1455_v3 = vmul.bf16 %v6144_v9, %v1446_v60  ;;  %5056 = vmatprep.subr.bf16.mxu1 %v5556_v31 }
 0x963   :  { %5004 = vmatpush3.msra.mxu0 %v6293_v43  ;;  %5057 = vmatpush3.bf16.msra.mxu1 %v5556_v31 }
 0x964   :  { %5005 = vmatprep.subr.mxu0 %v6296_v46  ;;  %5058 = vmatprep.subr.bf16.mxu1 %v5557_v2 }
 0x965   :  { %5006 = vmatpush3.msra.mxu0 %v6296_v46 }
 0x966   :  { %5007 = vmatprep.subr.mxu0 %v6303_v48 }
 0x967   :  { %5008 = vmatpush3.msra.mxu0 %v6303_v48  ;;  %5059 = vmatpush3.bf16.msra.mxu1 %v5557_v2 }
 0x968   :  { %5009 = vmatprep.subr.mxu0 %v6307_v49  ;;  %5060 = vmatprep.subr.bf16.mxu1 %v5558_v11 }
 0x969   :  { %5010 = vmatpush3.msra.mxu0 %v6307_v49 }
 0x96a   :  { %5011 = vmatprep.subr.mxu0 %v6311_v50 }
 0x96b   :  { %5012 = vmatpush3.msra.mxu0 %v6311_v50  ;;  %5061 = vmatpush3.bf16.msra.mxu1 %v5558_v11 }
 0x96c   :  { %5013 = vmatprep.subr.mxu0 %v6340_v36  ;;  %5062 = vmatprep.subr.bf16.mxu1 %v5559_v56 }
 0x96d   :  { %5014 = vmatpush3.msra.mxu0 %v6340_v36  ;;  %v5675_v13 = vpop.eup %5674 }
 0x96e   :  { %5015 = vmatprep.subr.mxu0 %v6343_v37 }
 0x96f   :  { %5016 = vmatpush3.msra.mxu0 %v6343_v37  ;;  %5063 = vmatpush3.bf16.msra.mxu1 %v5559_v56 }
 0x970   :  { %5017 = vmatprep.subr.mxu0 %v6350_v39 }
 0x971   :  { %5018 = vmatpush3.msra.mxu0 %v6350_v39 }
 0x972   :  { %5019 = vmatprep.subr.mxu0 %v6354_v41 }
 0x973   :  { %5020 = vmatpush3.msra.mxu0 %v6354_v41 }
 0x974   :  { %5021 = vmatprep.subr.mxu0 %v6361_v51 }
 0x975   :  { %5022 = vmatpush3.msra.mxu0 %v6361_v51 }
 0x976   :  { %5023 = vmatprep.subr.mxu0 %v6364_v52 }
 0x977   :  { %5024 = vmatpush3.msra.mxu0 %v6364_v52 }
 0x978   :  { %5025 = vmatprep.subr.mxu0 %v6372_v55 }
 0x979   :  { %5026 = vmatpush3.msra.mxu0 %v6372_v55 }
 0x97a   :  { %5027 = vmatprep.subr.mxu0 %v6375_v57 }
 0x97b   :  { %5028 = vmatpush3.msra.mxu0 %v6375_v57 }
 0x97c   :  { %5029 = vmatprep.subr.mxu0 %v6382_v61 }
 0x97d   :  { %5030 = vmatpush3.msra.mxu0 %v6382_v61 }
 0x97e   :  { %5031 = vmatprep.subr.mxu0 %v6386_v63 }
 0x97f   :  { %5032 = vmatpush3.msra.mxu0 %v6386_v63 }
 0x980   :  { %5034 = vmatmul.mubr.f32.vlgmr.msra.gmra.mxu0 %v5675_v13  ;;  %5036 = vmatprep.subr.bf16.mxu0 %v5806_v23 }
 0x981   :  { %5037 = vmatpush3.bf16.msra.mxu0 %v1462_v0  ;;  %5052 = vmatprep.mubr.msk.bf16.mxu0 %vm5807_vm4, %v5806_v23 }
 0x982   :  { %5038 = vmatprep.subr.bf16.mxu0 %v5806_v23 }
 0x985   :  { %5039 = vmatpush3.bf16.msra.mxu0 %v1461_v62 }
 0x986   :  { %5040 = vmatprep.subr.bf16.mxu0 %v5806_v23 }
 0x989   :  { %5041 = vmatpush3.bf16.msra.mxu0 %v1460_v26 }
 0x98a   :  { %5042 = vmatprep.subr.bf16.mxu0 %v5806_v23 }
 0x98d   :  { %5043 = vmatpush3.bf16.msra.mxu0 %v1459_v29 }
 0x98e   :  { %5044 = vmatprep.subr.bf16.mxu0 %v5806_v23 }
 0x991   :  { %5045 = vmatpush3.bf16.msra.mxu0 %v1458_v1 }
 0x992   :  { %5046 = vmatprep.subr.bf16.mxu0 %v5806_v23 }
 0x995   :  { %5047 = vmatpush3.bf16.msra.mxu0 %v1457_v58 }
 0x996   :  { %5048 = vmatprep.subr.bf16.mxu0 %v5806_v23 }
 0x999   :  { %5049 = vmatpush3.bf16.msra.mxu0 %v1456_v30 }
 0x99a   :  { %5050 = vmatprep.subr.bf16.mxu0 %v5806_v23 }
 0x99d   :  { %5051 = vmatpush3.bf16.msra.mxu0 %v1455_v3 }
 0xa20   :  { %v1438_v9 = vpop.f32.mrf.mxu0 }
 0xa22   :  { %v4979_v59 = vpop.f32.mrf.mxu0 }
 0xa24   :  { %v1441_v5 = vpop.f32.mrf.mxu0 }
 0xa25   :  { %v1688_v7 = vpack.c.bf16 %v1441_v5, %v1438_v9 }
 0xa26   :  { %v4980_v8 = vpop.f32.mrf.mxu0 }
 0xa27   :  { %5064 = vmatprep.mubr.msk.bf16.mxu1 %vm110_vm0, %v1688_v7 }
 0xa40   :  { %v5035_v12 = vpop.f32.mrf.mxu0 }
 0xa41   :  { %5676 = vrcp.f32 %v5035_v12 }
 0xa42   :  { %v1633_v25 = vpop.f32.mrf.mxu0 }
 0xa43   :  { %5678 = vrcp.f32 %v1633_v25 }
 0xa4e   :  { %v5677_v22 = vpop.eup %5676 }
 0xa4f   :  { %v1645_v20 = vmul.f32 %v5677_v22, %v5675_v13 }
 0xa50   :  { %v5679_v18 = vpop.eup %5678 }
 0xa51   :  { %v1644_v6 = vmul.f32 %v5679_v18, %v6425_v27  ;;  %v1698_v27 = vld [vmem:[%s7472_s4 + $0x55] ss:$0 sm:$0xff] }
 0xa53   :  { %v1646_v17 = vpack.c.bf16 %v1645_v20, %v1644_v6 }
 0xa55   :  { %5053 = vmatmul.mubr.bf16.vlgmr.msra.gmra.mxu0 %v1646_v17 }
 0xb15   :  { %v1681_v15 = vpop.f32.mrf.mxu0 }
 0xb17   :  { %v5054_v4 = vpop.f32.mrf.mxu0 }
 0xb19   :  { %v1684_v33 = vpop.f32.mrf.mxu0 }
 0xb1a   :  { %v1689_v28 = vpack.c.bf16 %v1684_v33, %v1681_v15 }
 0xb1b   :  { %v5055_v54 = vpop.f32.mrf.mxu0 }
 0xb1c   :  { %5065 = vmatmul.mubr.msk.bf16.vlgmr.msra.gmra.mxu1 %vm110_vm0, %v1689_v28 }
 0xbdc   :  { %v5066_v60 = vpop.f32.mrf.mxu1 }
 0xbdd   :  { %v1772_v0 = vadd.f32 %v5066_v60, %v1698_v27 }
 0xbde   :  { %v1763_v13 = vpop.f32.mrf.mxu1 }
 0xbdf   :  { %v1764_v62 = vadd.f32 %v1763_v13, %v1698_v27  ;;  %v6504_v58 = vadd.f32 %v1772_v0, %v6053_v53  ;;  %v5561_v13 = vld [vmem:[%s7470_s2 + $0x10] sm:$0xff]   ;;  %v5562_v0 = vld [vmem:[%s7470_s2 + $0x8] sm:$0xff]  }
 0xbe0   :  { %v5067_v26 = vpop.f32.mrf.mxu1 }
 0xbe1   :  { %v6501_v29 = vadd.f32 %v1764_v62, %v6039_v40  ;;  %v1775_v30 = vadd.f32 %v5067_v26, %v1698_v27  ;;  %v1790_v9 = vsel %vm110_vm0, %v6504_v58, 0.0  ;;  %v5563_v62 = vld [vmem:[%s7470_s2] sm:$0xff]  }
 0xbe2   :  { %v1766_v1 = vpop.f32.mrf.mxu1 }
 0xbe3   :  { %v1767_v3 = vadd.f32 %v1766_v1, %v1698_v27  ;;  %v1784_v31 = vsel %vm110_vm0, %v6501_v29, 0.0  ;;  %v6512_v11 = vadd.f32 %v1775_v30, %v6075_v19  ;;  %v5560_v27 = vld [vmem:[%s7470_s2 + $0x18] sm:$0xff]  }
 0xbe4   :  { %1785 = vadd.xlane.f32.xlu1 %v1784_v31  ;;  %5068 = vmatprep.subr.bf16.mxu1 %v5560_v27 }
 0xbe5   :  { %v6509_v2 = vadd.f32 %v1767_v3, %v6046_v47  ;;  %v1793_v53 = vsel %vm110_vm0, %v6512_v11, 0.0  ;;  %5069 = vmatpush3.bf16.msra.mxu1 %v5560_v27 }
 0xbe6   :  { %5070 = vmatprep.subr.bf16.mxu1 %v5561_v13 }
 0xbe7   :  { %v1787_v40 = vsel %vm110_vm0, %v6509_v2, 0.0 }
 0xbe8   :  { %1788 = vadd.xlane.f32.xlu0 %v1787_v40  ;;  %1791 = vadd.xlane.f32.xlu1 %v1790_v9 }
 0xbe9   :  { %5071 = vmatpush3.bf16.msra.mxu1 %v5561_v13 }
 0xbea   :  { %5072 = vmatprep.subr.bf16.mxu1 %v5562_v0 }
 0xbec   :  { %1794 = vadd.xlane.f32.xlu0 %v1793_v53 }
 0xbed   :  { %5073 = vmatpush3.bf16.msra.mxu1 %v5562_v0 }
 0xbee   :  { %5074 = vmatprep.subr.bf16.mxu1 %v5563_v62 }
 0xbf1   :  { %5075 = vmatpush3.bf16.msra.mxu1 %v5563_v62 }
 0xc6d   :  { %v1786_v59 = vpop.xlane.xlu1 %1785 }
 0xc6e   :  { %v1796_v5 = vmul.f32 0.015625, %v1786_v59 }
 0xc70   :  { %v1800_v47 = vsub.f32 %v6501_v29, %v1796_v5 }
 0xc71   :  { %v1789_v7 = vpop.xlane.xlu0 %1788  ;;  %v1792_v8 = vpop.xlane.xlu1 %1791 }
 0xc72   :  { %v1797_v19 = vmul.f32 0.015625, %v1789_v7  ;;  %v1798_v12 = vmul.f32 0.015625, %v1792_v8  ;;  %v1804_v25 = vmul.f32 %v1800_v47, %v1800_v47 }
 0xc74   :  { %v1801_v22 = vsub.f32 %v6509_v2, %v1797_v19  ;;  %v1802_v18 = vsub.f32 %v6504_v58, %v1798_v12  ;;  %v1808_v6 = vsel %vm110_vm0, %v1804_v25, 0.0  ;;  %v1782_v25 = vld [vmem:[%s7472_s4 + $0x52] ss:$0 sm:$0xff] }
 0xc75   :  { %v1795_v20 = vpop.xlane.xlu0 %1794  ;;  %1809 = vadd.xlane.f32.xlu1 %v1808_v6 }
 0xc76   :  { %v1799_v17 = vmul.f32 0.015625, %v1795_v20  ;;  %v1805_v56 = vmul.f32 %v1801_v22, %v1801_v22  ;;  %v1806_v15 = vmul.f32 %v1802_v18, %v1802_v18 }
 0xc78   :  { %v1803_v4 = vsub.f32 %v6512_v11, %v1799_v17  ;;  %v1811_v33 = vsel %vm110_vm0, %v1805_v56, 0.0  ;;  %v1814_v28 = vsel %vm110_vm0, %v1806_v15, 0.0 }
 0xc79   :  { %1812 = vadd.xlane.f32.xlu0 %v1811_v33  ;;  %1815 = vadd.xlane.f32.xlu1 %v1814_v28  ;;  %v1783_v33 = vld [vmem:[%s7472_s4 + $0x53] ss:$0 sm:$0xff] }
 0xc7a   :  { %v1807_v54 = vmul.f32 %v1803_v4, %v1803_v4 }
 0xc7c   :  { %v1817_v60 = vsel %vm110_vm0, %v1807_v54, 0.0 }
 0xc7d   :  { %1818 = vadd.xlane.f32.xlu0 %v1817_v60 }
 0xcfe   :  { %v1810_v26 = vpop.xlane.xlu1 %1809 }
 0xcff   :  { %v1820_v1 = vmul.f32 0.015625, %v1810_v26 }
 0xd01   :  { %v1824_v30 = vadd.f32 1e-05, %v1820_v1 }
 0xd02   :  { %v1813_v3 = vpop.xlane.xlu0 %1812  ;;  %v1816_v31 = vpop.xlane.xlu1 %1815 }
 0xd03   :  { %5680 = vrsqrt.f32 %v1824_v30  ;;  %v1821_v40 = vmul.f32 0.015625, %v1813_v3  ;;  %v1822_v9 = vmul.f32 0.015625, %v1816_v31  ;;  %v5567_v3 = vld [vmem:[%s7469_s1 + $0x1a8] sm:$0xff]   ;;  %v5568_v31 = vld [vmem:[%s7469_s1 + $0x1a0] sm:$0xff]  }
 0xd05   :  { %v1825_v53 = vadd.f32 1e-05, %v1821_v40  ;;  %v1826_v59 = vadd.f32 1e-05, %v1822_v9  ;;  %v5569_v40 = vld [vmem:[%s7469_s1 + $0x198] sm:$0xff]   ;;  %v5570_v9 = vld [vmem:[%s7469_s1 + $0x190] sm:$0xff]  }
 0xd06   :  { %v1819_v5 = vpop.xlane.xlu0 %1818 }
 0xd07   :  { %5682 = vrsqrt.f32 %v1825_v53  ;;  %v1823_v7 = vmul.f32 0.015625, %v1819_v5  ;;  %v5571_v53 = vld [vmem:[%s7469_s1 + $0x188] sm:$0xff]  }
 0xd08   :  { %5684 = vrsqrt.f32 %v1826_v59  ;;  %v1854_v59 = vld [vmem:[%s7472_s4 + $0x56] ss:$0 sm:$0xff] }
 0xd09   :  { %v1827_v8 = vadd.f32 1e-05, %v1823_v7 }
 0xd0b   :  { %5686 = vrsqrt.f32 %v1827_v8 }
 0xd10   :  { %v5681_v19 = vpop.eup %5680 }
 0xd11   :  { %v1832_v12 = vmul.f32 %v5681_v19, %v1800_v47 }
 0xd13   :  { %v1836_v56 = vmul.f32 %v1832_v12, %v1782_v25 }
 0xd14   :  { %v5683_v6 = vpop.eup %5682 }
 0xd15   :  { %v5685_v20 = vpop.eup %5684  ;;  %v1833_v17 = vmul.f32 %v5683_v6, %v1801_v22  ;;  %v1840_v27 = vadd.f32 %v1836_v56, %v1783_v33  ;;  %v5564_v22 = vld [vmem:[%s7469_s1 + $0x1c0] sm:$0xff]  }
 0xd16   :  { %v1834_v15 = vmul.f32 %v5685_v20, %v1802_v18  ;;  %5080 = vmatprep.subr.bf16.mxu0 %v5564_v22  ;;  %v5565_v18 = vld [vmem:[%s7469_s1 + $0x1b8] sm:$0xff]  }
 0xd17   :  { %v1837_v28 = vmul.f32 %v1833_v17, %v1782_v25  ;;  %5081 = vmatpush3.bf16.msra.mxu0 %v5564_v22 }
 0xd18   :  { %v5687_v54 = vpop.eup %5686  ;;  %v1838_v0 = vmul.f32 %v1834_v15, %v1782_v25  ;;  %5082 = vmatprep.subr.bf16.mxu0 %v5565_v18 }
 0xd19   :  { %v1835_v60 = vmul.f32 %v5687_v54, %v1803_v4  ;;  %v1841_v13 = vadd.f32 %v1837_v28, %v1783_v33  ;;  %v5566_v4 = vld [vmem:[%s7469_s1 + $0x1b0] sm:$0xff]  }
 0xd1a   :  { %v1842_v26 = vadd.f32 %v1838_v0, %v1783_v33 }
 0xd1b   :  { %v1852_v47 = vpack.c.bf16 %v1841_v13, %v1840_v27  ;;  %v1839_v62 = vmul.f32 %v1835_v60, %v1782_v25  ;;  %5083 = vmatpush3.bf16.msra.mxu0 %v5565_v18 }
 0xd1c   :  { %5084 = vmatprep.subr.bf16.mxu0 %v5566_v4 }
 0xd1d   :  { %5076 = vmatprep.mubr.msk.bf16.mxu1 %vm110_vm0, %v1852_v47  ;;  %v1843_v1 = vadd.f32 %v1839_v62, %v1783_v33 }
 0xd1f   :  { %v1853_v30 = vpack.c.bf16 %v1843_v1, %v1842_v26  ;;  %5085 = vmatpush3.bf16.msra.mxu0 %v5566_v4 }
 0xd20   :  { %5086 = vmatprep.subr.bf16.mxu0 %v5567_v3 }
 0xd21   :  { %5077 = vmatmul.mubr.msk.bf16.vlgmr.msra.gmra.mxu1 %vm110_vm0, %v1853_v30 }
 0xd22   :  { %2253 = vmatprep.mubr.bf16.mxu1 %v5804_v35 }
 0xd23   :  { %5087 = vmatpush3.bf16.msra.mxu0 %v5567_v3 }
 0xd24   :  { %5088 = vmatprep.subr.bf16.mxu0 %v5568_v31 }
 0xd27   :  { %5089 = vmatpush3.bf16.msra.mxu0 %v5568_v31 }
 0xd28   :  { %5090 = vmatprep.subr.bf16.mxu0 %v5569_v40 }
 0xd2b   :  { %5091 = vmatpush3.bf16.msra.mxu0 %v5569_v40 }
 0xd2c   :  { %5092 = vmatprep.subr.bf16.mxu0 %v5570_v9 }
 0xd2f   :  { %5093 = vmatpush3.bf16.msra.mxu0 %v5570_v9 }
 0xd30   :  { %5094 = vmatprep.subr.bf16.mxu0 %v5571_v53 }
 0xd33   :  { %5095 = vmatpush3.bf16.msra.mxu0 %v5571_v53 }
 0xd34   :  { %5120 = vmatprep.subr.mxu0 %v6291_v42 }
 0xde1   :  { %v5078_v5 = vpop.f32.mrf.mxu1 }
 0xde2   :  { %v1928_v7 = vadd.f32 %v5078_v5, %v1854_v59 }
 0xde3   :  { %v1919_v8 = vpop.f32.mrf.mxu1 }
 0xde4   :  { %v1940_v19 = vmul.f32 0.044715, %v1928_v7  ;;  %v1920_v12 = vadd.f32 %v1919_v8, %v1854_v59 }
 0xde5   :  { %v5079_v25 = vpop.f32.mrf.mxu1 }
 0xde6   :  { %v1944_v6 = vmul.f32 %v1940_v19, %v1928_v7  ;;  %v1938_v20 = vmul.f32 0.044715, %v1920_v12  ;;  %v1931_v17 = vadd.f32 %v5079_v25, %v1854_v59 }
 0xde7   :  { %v1922_v56 = vpop.f32.mrf.mxu1 }
 0xde8   :  { %v1948_v15 = vmul.f32 %v1944_v6, %v1928_v7  ;;  %v1942_v33 = vmul.f32 %v1938_v20, %v1920_v12  ;;  %v1941_v28 = vmul.f32 0.044715, %v1931_v17  ;;  %v1923_v54 = vadd.f32 %v1922_v56, %v1854_v59 }
 0xde9   :  { %v1937_v19 = vmul.f32 0.5, %v1931_v17  ;;  %v1934_v6 = vmul.f32 0.5, %v1920_v12 }
 0xdea   :  { %v1952_v60 = vadd.f32 %v1948_v15, %v1928_v7  ;;  %v1946_v27 = vmul.f32 %v1942_v33, %v1920_v12  ;;  %v1945_v13 = vmul.f32 %v1941_v28, %v1931_v17  ;;  %v1939_v0 = vmul.f32 0.044715, %v1923_v54 }
 0xdeb   :  { %v1935_v20 = vmul.f32 0.5, %v1923_v54  ;;  %v1936_v15 = vmul.f32 0.5, %v1928_v7  ;;  %v1988_v7 = vld [vmem:[%s7472_s4 + $0x57] ss:$0 sm:$0xff] }
 0xdec   :  { %v1949_v47 = vmul.f32 %v1945_v13, %v1931_v17  ;;  %v1943_v62 = vmul.f32 %v1939_v0, %v1923_v54  ;;  %v1950_v26 = vadd.f32 %v1946_v27, %v1920_v12  ;;  %v1956_v1 = vmul.f32 0.7978846, %v1952_v60 }
 0xdee   :  { %v1953_v30 = vadd.f32 %v1949_v47, %v1931_v17  ;;  %v1947_v22 = vmul.f32 %v1943_v62, %v1923_v54  ;;  %v1954_v18 = vmul.f32 0.7978846, %v1950_v26 }
 0xdf0   :  { %v1957_v4 = vmul.f32 0.7978846, %v1953_v30  ;;  %v1951_v3 = vadd.f32 %v1947_v22, %v1923_v54  ;;  %5688 = vtanh.f32 %v1954_v18 }
 0xdf1   :  { %5690 = vtanh.f32 %v1956_v1 }
 0xdf2   :  { %5692 = vtanh.f32 %v1957_v4  ;;  %v1955_v31 = vmul.f32 0.7978846, %v1951_v3 }
 0xdf4   :  { %5694 = vtanh.f32 %v1955_v31 }
 0xdfd   :  { %v5689_v40 = vpop.eup %5688 }
 0xdfe   :  { %v5691_v9 = vpop.eup %5690  ;;  %v1962_v59 = vadd.f32 1.0, %v5689_v40 }
 0xdff   :  { %v5693_v53 = vpop.eup %5692  ;;  %v1964_v25 = vadd.f32 1.0, %v5691_v9 }
 0xe00   :  { %v1965_v5 = vadd.f32 1.0, %v5693_v53  ;;  %v1966_v28 = vmul.f32 %v1962_v59, %v1934_v6 }
 0xe01   :  { %v5695_v8 = vpop.eup %5694  ;;  %v1968_v27 = vmul.f32 %v1964_v25, %v1936_v15  ;;  %v5574_v15 = vld [vmem:[%s7471_s3 + $0x74] ss:$8 sps:$4 sm:$0xff]  }
 0xe02   :  { %v1963_v56 = vadd.f32 1.0, %v5695_v8  ;;  %v1969_v33 = vmul.f32 %v1965_v5, %v1937_v19  ;;  %2229 = vmatprep.subr.bf16.mxu1 %v5574_v15 }
 0xe04   :  { %v1967_v60 = vmul.f32 %v1963_v56, %v1935_v20  ;;  %v1987_v0 = vpack.c.bf16 %v1969_v33, %v1968_v27  ;;  %v5577_v33 = vld [vmem:[%s7471_s3 + $0x64] ss:$8 sps:$4 sm:$0xff]  }
 0xe05   :  { %v5583_v27 = vld [vmem:[%s7471_s3 + $0x44] ss:$8 sps:$4 sm:$0xff]  }
 0xe06   :  { %v1986_v13 = vpack.c.bf16 %v1967_v60, %v1966_v28  ;;  %v5580_v28 = vld [vmem:[%s7471_s3 + $0x54] ss:$8 sps:$4 sm:$0xff]   ;;  %v5578_v60 = vld [vmem:[%s7471_s3 + $0x50] ss:$8 sps:$4 sm:$0xff]  }
 0xe08   :  { %5096 = vmatprep.mubr.bf16.mxu0 %v1986_v13  ;;  %v5581_v13 = vld [vmem:[%s7471_s3 + $0x40] ss:$8 sps:$4 sm:$0xff]  }
 0xe09   :  { %5097 = vmatmul.mubr.bf16.vlgmr.msra.gmra.mxu0 %v1987_v0 }
 0xe0a   :  { %5121 = vmatpush3.msra.mxu0 %v6291_v42 }
 0xe0b   :  { %5122 = vmatprep.subr.mxu0 %v6293_v43 }
 0xe0c   :  { %5123 = vmatpush3.msra.mxu0 %v6293_v43 }
 0xe0d   :  { %5124 = vmatprep.subr.mxu0 %v6296_v46 }
 0xe0e   :  { %5125 = vmatpush3.msra.mxu0 %v6296_v46 }
 0xe0f   :  { %5126 = vmatprep.subr.mxu0 %v6303_v48 }
 0xe10   :  { %5127 = vmatpush3.msra.mxu0 %v6303_v48 }
 0xe11   :  { %5128 = vmatprep.subr.mxu0 %v6307_v49 }
 0xe12   :  { %5129 = vmatpush3.msra.mxu0 %v6307_v49 }
 0xe13   :  { %5130 = vmatprep.subr.mxu0 %v6311_v50 }
 0xe14   :  { %5131 = vmatpush3.msra.mxu0 %v6311_v50 }
 0xe15   :  { %5132 = vmatprep.subr.mxu0 %v6340_v36 }
 0xe16   :  { %5133 = vmatpush3.msra.mxu0 %v6340_v36 }
 0xe17   :  { %5134 = vmatprep.subr.mxu0 %v6343_v37 }
 0xe18   :  { %5135 = vmatpush3.msra.mxu0 %v6343_v37 }
 0xe19   :  { %5136 = vmatprep.subr.mxu0 %v6350_v39 }
 0xe1a   :  { %5137 = vmatpush3.msra.mxu0 %v6350_v39 }
 0xe1b   :  { %5138 = vmatprep.subr.mxu0 %v6354_v41 }
 0xe1c   :  { %5139 = vmatpush3.msra.mxu0 %v6354_v41 }
 0xe1d   :  { %5140 = vmatprep.subr.mxu0 %v6361_v51 }
 0xe1e   :  { %5141 = vmatpush3.msra.mxu0 %v6361_v51 }
 0xe1f   :  { %5142 = vmatprep.subr.mxu0 %v6364_v52 }
 0xe20   :  { %5143 = vmatpush3.msra.mxu0 %v6364_v52 }
 0xe21   :  { %5144 = vmatprep.subr.mxu0 %v6372_v55 }
 0xe22   :  { %5145 = vmatpush3.msra.mxu0 %v6372_v55 }
 0xe23   :  { %5146 = vmatprep.subr.mxu0 %v6375_v57 }
 0xe24   :  { %5147 = vmatpush3.msra.mxu0 %v6375_v57 }
 0xe25   :  { %5148 = vmatprep.subr.mxu0 %v6382_v61 }
 0xe26   :  { %5149 = vmatpush3.msra.mxu0 %v6382_v61 }
 0xe27   :  { %5150 = vmatprep.subr.mxu0 %v6386_v63 }
 0xe28   :  { %5151 = vmatpush3.msra.mxu0 %v6386_v63 }
 0xe29   :  { %5155 = vmatprep.subr.bf16.mxu0 %v5806_v23 }
 0xec9   :  { %v5098_v12 = vpop.f32.mrf.mxu0 }
 0xeca   :  { %v2080_v17 = vadd.f32 %v5098_v12, %v1988_v7 }
 0xecb   :  { %v2071_v54 = vpop.f32.mrf.mxu0 }
 0xecc   :  { %v2072_v47 = vadd.f32 %v2071_v54, %v1988_v7 }
 0xecd   :  { %v5099_v62 = vpop.f32.mrf.mxu0 }
 0xece   :  { %v2083_v26 = vadd.f32 %v5099_v62, %v1988_v7  ;;  %v2086_v1 = vadd.f32 %v2072_v47, %v6501_v29  ;;  %v2088_v29 = vadd.f32 %v2080_v17, %v6504_v58  ;;  %v5572_v58 = vld [vmem:[%s7471_s3 + $0x70] ss:$8 sps:$4 sm:$0xff]  }
 0xecf   :  { %v2074_v30 = vpop.f32.mrf.mxu0  ;;  %2230 = vmatpush1.bf16.msra.mxu1 %v5572_v58 }
 0xed0   :  { %v2075_v22 = vadd.f32 %v2074_v30, %v1988_v7  ;;  %v2092_v18 = vsel %vm110_vm0, %v2086_v1, 0.0  ;;  %v2089_v20 = vadd.f32 %v2083_v26, %v6512_v11  ;;  %v5575_v11 = vld [vmem:[%s7471_s3 + $0x60] ss:$8 sps:$4 sm:$0xff]   ;;  %2231 = vmatprep.subr.bf16.mxu1 %v5577_v33 }
 0xed1   :  { %2093 = vadd.xlane.f32.xlu1 %v2092_v18 }
 0xed2   :  { %v2087_v4 = vadd.f32 %v2075_v22, %v6509_v2  ;;  %v2098_v2 = vsel %vm110_vm0, %v2088_v29, 0.0  ;;  %v2101_v56 = vsel %vm110_vm0, %v2089_v20, 0.0 }
 0xed3   :  { %2232 = vmatpush1.bf16.msra.mxu1 %v5575_v11 }
 0xed4   :  { %v2095_v3 = vsel %vm110_vm0, %v2087_v4, 0.0  ;;  %2233 = vmatprep.subr.bf16.mxu1 %v5580_v28 }
 0xed5   :  { %2096 = vadd.xlane.f32.xlu0 %v2095_v3 }
 0xed7   :  { %2234 = vmatpush1.bf16.msra.mxu1 %v5578_v60 }
 0xed8   :  { %2235 = vmatprep.subr.bf16.mxu1 %v5583_v27 }
 0xedb   :  { %2236 = vmatpush1.bf16.msra.mxu1 %v5581_v13 }
 0xedc   :  { %5100 = vmatprep.subr.bf16.mxu1 %v5806_v23 }
 0xf5a   :  { %v2094_v31 = vpop.xlane.xlu1 %2093 }
 0xf5b   :  { %v2104_v40 = vmul.f32 0.015625, %v2094_v31 }
 0xf5d   :  { %v2108_v9 = vsub.f32 %v2086_v1, %v2104_v40 }
 0xf5e   :  { %v2097_v53 = vpop.xlane.xlu0 %2096 }
 0xf5f   :  { %v2105_v59 = vmul.f32 0.015625, %v2097_v53  ;;  %v2112_v5 = vmul.f32 %v2108_v9, %v2108_v9 }
 0xf61   :  { %v2109_v8 = vsub.f32 %v2087_v4, %v2105_v59  ;;  %v2116_v19 = vsel %vm110_vm0, %v2112_v5, 0.0  ;;  %v2090_v5 = vld [vmem:[%s7472_s4 + $0x80] ss:$0 sm:$0xff] }
 0xf62   :  { %2117 = vadd.xlane.f32.xlu1 %v2116_v19 }
 0xf63   :  { %v2113_v25 = vmul.f32 %v2109_v8, %v2109_v8 }
 0xf65   :  { %v2119_v6 = vsel %vm110_vm0, %v2113_v25, 0.0 }
 0xf66   :  { %2120 = vadd.xlane.f32.xlu0 %v2119_v6  ;;  %2099 = vadd.xlane.f32.xlu1 %v2098_v2  ;;  %v2091_v6 = vld [vmem:[%s7472_s4 + $0x81] ss:$0 sm:$0xff] }
 0xf6a   :  { %2102 = vadd.xlane.f32.xlu0 %v2101_v56 }
 0xfeb   :  { %v2118_v0 = vpop.xlane.xlu1 %2117 }
 0xfec   :  { %v2128_v7 = vmul.f32 0.015625, %v2118_v0 }
 0xfee   :  { %v2132_v12 = vadd.f32 1e-05, %v2128_v7 }
 0xfef   :  { %v2121_v17 = vpop.xlane.xlu0 %2120  ;;  %v2100_v54 = vpop.xlane.xlu1 %2099 }
 0xff0   :  { %5696 = vrsqrt.f32 %v2132_v12  ;;  %v2129_v47 = vmul.f32 0.015625, %v2121_v17  ;;  %v2106_v62 = vmul.f32 0.015625, %v2100_v54 }
 0xff2   :  { %v2133_v26 = vadd.f32 1e-05, %v2129_v47  ;;  %v2110_v1 = vsub.f32 %v2088_v29, %v2106_v62  ;;  %v6675_v62 = vld [vmem:[%s7472_s4 + $0x64] ss:$8 sm:$0x3] }
 0xff3   :  { %v2103_v30 = vpop.xlane.xlu0 %2102 }
 0xff4   :  { %5698 = vrsqrt.f32 %v2133_v26  ;;  %v2107_v22 = vmul.f32 0.015625, %v2103_v30  ;;  %v2114_v18 = vmul.f32 %v2110_v1, %v2110_v1 }
 0xff6   :  { %v2111_v4 = vsub.f32 %v2089_v20, %v2107_v22  ;;  %v2122_v3 = vsel %vm110_vm0, %v2114_v18, 0.0 }
 0xff7   :  { %2123 = vadd.xlane.f32.xlu1 %v2122_v3 }
 0xff8   :  { %v2115_v31 = vmul.f32 %v2111_v4, %v2111_v4 }
 0xffa   :  { %v2125_v40 = vsel %vm110_vm0, %v2115_v31, 0.0 }
 0xffb   :  { %2126 = vadd.xlane.f32.xlu0 %v2125_v40 }
 0xffd   :  { %v5697_v53 = vpop.eup %5696 }
 0xffe   :  { %v2140_v59 = vmul.f32 %v5697_v53, %v2108_v9 }
0x1000   :  { %v2144_v25 = vmul.f32 %v2140_v59, %v2090_v5 }
0x1001   :  { %v5699_v19 = vpop.eup %5698 }
0x1002   :  { %v2141_v29 = vmul.f32 %v5699_v19, %v2109_v8  ;;  %v6655_v20 = vadd.f32 %v2144_v25, %v2091_v6 }
0x1004   :  { %v2145_v2 = vmul.f32 %v2141_v29, %v2090_v5 }
0x1006   :  { %v6657_v56 = vadd.f32 %v2145_v2, %v2091_v6 }
0x1008   :  { %v2160_v15 = vpack.c.bf16 %v6657_v56, %v6655_v20 }
0x100a   :  { %4394 = vmatmul.mubr.msk.bf16.vlgmr.msra.gmra.mxu1 %vm110_vm0, %v2160_v15 }
0x100b   :  { %2263 = vmatprep.mubr.bf16.mxu1 %v5804_v35 }
0x1080   :  { %v2124_v9 = vpop.xlane.xlu1 %2123 }
0x1081   :  { %v2130_v58 = vmul.f32 0.015625, %v2124_v9 }
0x1083   :  { %v2134_v8 = vadd.f32 1e-05, %v2130_v58 }
0x1084   :  { %v2127_v33 = vpop.xlane.xlu0 %2126 }
0x1085   :  { %5700 = vrsqrt.f32 %v2134_v8  ;;  %v2131_v11 = vmul.f32 0.015625, %v2127_v33 }
0x1087   :  { %v2135_v28 = vadd.f32 1e-05, %v2131_v11 }
0x1089   :  { %5702 = vrsqrt.f32 %v2135_v28 }
0x1092   :  { %v5701_v60 = vpop.eup %5700 }
0x1093   :  { %v2142_v27 = vmul.f32 %v5701_v60, %v2110_v1  ;;  %v2168_v1 = vrot.slane %v6675_v62, %v6183_v14 }
0x1095   :  { %v2146_v7 = vmul.f32 %v2142_v27, %v2090_v5 }
0x1096   :  { %v5703_v13 = vpop.eup %5702 }
0x1097   :  { %v2143_v0 = vmul.f32 %v5703_v13, %v2111_v4  ;;  %v6663_v17 = vadd.f32 %v2146_v7, %v2091_v6 }
0x1099   :  { %v2147_v12 = vmul.f32 %v2143_v0, %v2090_v5 }
0x109b   :  { %v6665_v54 = vadd.f32 %v2147_v12, %v2091_v6 }
0x109d   :  { %v2161_v47 = vpack.c.bf16 %v6665_v54, %v6663_v17 }
0x109f   :  { %4395 = vmatmul.mubr.msk.bf16.gmra.mxu1 %vm110_vm0, %v2161_v47 }
0x10a0   :  { %5116 = vmatprep.mubr.msk.bf16.mxu1 %vm5807_vm4, %v5806_v23 }
0x10ca   :  { %v2255_v26 = vpop.f32.mrf.mxu1 }
0x10cb   :  { %v2256_v18 = vadd.f32 %v2255_v26, %v2168_v1 }
0x10cc   :  { %v6679_v30 = vpop.f32.mrf.mxu1 }
0x10ce   :  { %v2259_v22 = vpop.f32.mrf.mxu1 }
0x10cf   :  { %v2260_v4 = vadd.f32 %v2259_v22, %v2168_v1 }
0x10d0   :  { %v6713_v33 = vpop.f32.mrf.mxu1 }
0x10d1   :  { %v6681_v3 = vpack.c.bf16 %v2260_v4, %v2256_v18 }
0x10d3   :  { %v2282_v31 = vmul.bf16 %v6681_v3, %v6201_v34  ;;  %v2283_v40 = vmul.bf16 %v6681_v3, %v6176_v16  ;;  %v2279_v53 = vmul.bf16 %v6681_v3, %v6197_v32  ;;  %v2281_v59 = vmul.bf16 %v6681_v3, %v6180_v21 }
0x10d4   :  { %v2277_v5 = vmul.bf16 %v6681_v3, %v6221_v44  ;;  %v2280_v19 = vmul.bf16 %v6681_v3, %v6191_v24  ;;  %v2278_v29 = vmul.bf16 %v6681_v3, %v6209_v38  ;;  %v2276_v25 = vmul.bf16 %v6681_v3, %v6223_v45 }
0x10d5   :  { %2312 = vrot.lane.b32.xlu0 %v2282_v31, %s5805_s18  ;;  %2314 = vrot.lane.b32.xlu1 %v2283_v40, %s5805_s18 }
0x10d9   :  { %2306 = vrot.lane.b32.xlu0 %v2279_v53, %s5805_s18  ;;  %2310 = vrot.lane.b32.xlu1 %v2281_v59, %s5805_s18 }
0x10dd   :  { %2302 = vrot.lane.b32.xlu0 %v2277_v5, %s5805_s18  ;;  %2308 = vrot.lane.b32.xlu1 %v2280_v19, %s5805_s18 }
0x10e1   :  { %2304 = vrot.lane.b32.xlu1 %v2278_v29, %s5805_s18 }
0x10e5   :  { %2300 = vrot.lane.b32.xlu1 %v2276_v25, %s5805_s18 }
0x1147   :  { %v2315_v6 = vpop.permute.xlu1 %2314  ;;  %v2313_v15 = vpop.permute.xlu0 %2312 }
0x1148   :  { %v2341_v2 = vsel %vm110_vm0, %v2315_v6, 0  ;;  %v2338_v9 = vsel %vm110_vm0, %v2313_v15, 0 }
0x1149   :  { %5101 = vmatpush3.bf16.xpose.msra.mxu1 %v2341_v2 }
0x114a   :  { %5102 = vmatprep.subr.bf16.mxu1 %v5806_v23 }
0x114b   :  { %v2311_v58 = vpop.permute.xlu1 %2310  ;;  %v2307_v12 = vpop.permute.xlu0 %2306 }
0x114c   :  { %v2335_v8 = vsel %vm110_vm0, %v2311_v58, 0  ;;  %v2329_v26 = vsel %vm110_vm0, %v2307_v12, 0 }
0x114f   :  { %v2309_v11 = vpop.permute.xlu1 %2308  ;;  %v2303_v29 = vpop.permute.xlu0 %2302 }
0x1150   :  { %v2332_v60 = vsel %vm110_vm0, %v2309_v11, 0  ;;  %v2323_v25 = vsel %vm110_vm0, %v2303_v29, 0 }
0x1151   :  { %5103 = vmatpush3.bf16.xpose.msra.mxu1 %v2338_v9 }
0x1152   :  { %5104 = vmatprep.subr.bf16.mxu1 %v5806_v23 }
0x1153   :  { %v2305_v31 = vpop.permute.xlu1 %2304 }
0x1154   :  { %v2326_v40 = vsel %vm110_vm0, %v2305_v31, 0 }
0x1157   :  { %v2301_v6 = vpop.permute.xlu1 %2300 }
0x1158   :  { %v2320_v2 = vsel %vm110_vm0, %v2301_v6, 0 }
0x1159   :  { %5105 = vmatpush3.bf16.xpose.msra.mxu1 %v2335_v8 }
0x115a   :  { %5106 = vmatprep.subr.bf16.mxu1 %v5806_v23 }
0x115f   :  { %v2265_v28 = vpop.f32.mrf.mxu1 }
0x1160   :  { %v2266_v0 = vadd.f32 %v2265_v28, %v2168_v1 }
0x1161   :  { %v6716_v27 = vpop.f32.mrf.mxu1  ;;  %5107 = vmatpush3.bf16.xpose.msra.mxu1 %v2332_v60 }
0x1162   :  { %5108 = vmatprep.subr.bf16.mxu1 %v5806_v23 }
0x1163   :  { %v2269_v13 = vpop.f32.mrf.mxu1 }
0x1164   :  { %v2270_v7 = vadd.f32 %v2269_v13, %v2168_v1 }
0x1166   :  { %v6719_v47 = vpack.c.bf16 %v2270_v7, %v2266_v0 }
0x1168   :  { %v2526_v22 = vmul.bf16 %v6719_v47, %v6176_v16  ;;  %v2525_v18 = vmul.bf16 %v6719_v47, %v6201_v34  ;;  %v2524_v1 = vmul.bf16 %v6719_v47, %v6180_v21  ;;  %v2523_v4 = vmul.bf16 %v6719_v47, %v6191_v24 }
0x1169   :  { %5109 = vmatpush3.bf16.xpose.msra.mxu1 %v2329_v26  ;;  %v2522_v53 = vmul.bf16 %v6719_v47, %v6197_v32  ;;  %v2521_v59 = vmul.bf16 %v6719_v47, %v6209_v38  ;;  %v2520_v5 = vmul.bf16 %v6719_v47, %v6221_v44  ;;  %v2519_v19 = vmul.bf16 %v6719_v47, %v6223_v45 }
0x116a   :  { %2557 = vrot.lane.b32.xlu0 %v2526_v22, %s5805_s18  ;;  %2555 = vrot.lane.b32.xlu1 %v2525_v18, %s5805_s18 }
0x116b   :  { %5110 = vmatprep.subr.bf16.mxu1 %v5806_v23 }
0x116e   :  { %2553 = vrot.lane.b32.xlu0 %v2524_v1, %s5805_s18  ;;  %2551 = vrot.lane.b32.xlu1 %v2523_v4, %s5805_s18  ;;  %v6774_v4 = vpop.f32.mrf.mxu1 }
0x1171   :  { %5111 = vmatpush3.bf16.xpose.msra.mxu1 %v2326_v40 }
0x1172   :  { %2549 = vrot.lane.b32.xlu0 %v2522_v53, %s5805_s18  ;;  %2547 = vrot.lane.b32.xlu1 %v2521_v59, %s5805_s18 }
0x1173   :  { %5112 = vmatprep.subr.bf16.mxu1 %v5806_v23 }
0x1176   :  { %2545 = vrot.lane.b32.xlu0 %v2520_v5, %s5805_s18  ;;  %2543 = vrot.lane.b32.xlu1 %v2519_v19, %s5805_s18 }
0x1179   :  { %5113 = vmatpush3.bf16.xpose.msra.mxu1 %v2323_v25 }
0x117a   :  { %5114 = vmatprep.subr.bf16.mxu1 %v5806_v23 }
0x1181   :  { %5115 = vmatpush3.bf16.xpose.msra.mxu1 %v2320_v2 }
0x1182   :  { %5175 = vmatprep.subr.bf16.mxu1 %v5806_v23 }
0x1188   :  { %5117 = vmatmul.mubr.msk.bf16.vlgmr.msra.gmra.mxu1 %vm110_vm0, %v6681_v3 }
0x1189   :  { %5191 = vmatprep.mubr.msk.bf16.mxu1 %vm5807_vm4, %v5806_v23 }
0x11dc   :  { %v2558_v15 = vpop.permute.xlu0 %2557  ;;  %v2556_v58 = vpop.permute.xlu1 %2555 }
0x11dd   :  { %v2584_v9 = vsel %vm110_vm0, %v2558_v15, 0  ;;  %v2581_v8 = vsel %vm110_vm0, %v2556_v58, 0 }
0x11de   :  { %5176 = vmatpush3.bf16.xpose.msra.mxu1 %v2584_v9 }
0x11df   :  { %5177 = vmatprep.subr.bf16.mxu1 %v5806_v23 }
0x11e0   :  { %v2554_v11 = vpop.permute.xlu0 %2553  ;;  %v2552_v3 = vpop.permute.xlu1 %2551 }
0x11e1   :  { %v2578_v28 = vsel %vm110_vm0, %v2554_v11, 0  ;;  %v2575_v60 = vsel %vm110_vm0, %v2552_v3, 0  ;;  %v6778_v11 = vrot.slane %v6675_v62, %v6394_v10  ;;  %v6790_v62 = vld [vmem:[%s7469_s1 + $0x120] sm:$0xff]  }
0x11e3   :  { %v2262_v3 = vadd.f32 %v6713_v33, %v6778_v11 }
0x11e4   :  { %v2550_v13 = vpop.permute.xlu0 %2549  ;;  %v2548_v7 = vpop.permute.xlu1 %2547 }
0x11e5   :  { %v2572_v0 = vsel %vm110_vm0, %v2550_v13, 0  ;;  %v2569_v12 = vsel %vm110_vm0, %v2548_v7, 0 }
0x11e6   :  { %5178 = vmatpush3.bf16.xpose.msra.mxu1 %v2581_v8 }
0x11e7   :  { %5179 = vmatprep.subr.bf16.mxu1 %v5806_v23 }
0x11e8   :  { %v2546_v26 = vpop.permute.xlu0 %2545  ;;  %v2544_v18 = vpop.permute.xlu1 %2543 }
0x11e9   :  { %v2566_v22 = vsel %vm110_vm0, %v2546_v26, 0  ;;  %v2563_v1 = vsel %vm110_vm0, %v2544_v18, 0  ;;  %v6806_v18 = vld [vmem:[%s7469_s1 + $0x110] sm:$0xff]  }
0x11ee   :  { %5180 = vmatpush3.bf16.xpose.msra.mxu1 %v2578_v28 }
0x11ef   :  { %5181 = vmatprep.subr.bf16.mxu1 %v5806_v23 }
0x11f6   :  { %5182 = vmatpush3.bf16.xpose.msra.mxu1 %v2575_v60 }
0x11f7   :  { %5183 = vmatprep.subr.bf16.mxu1 %v5806_v23 }
0x11fe   :  { %5184 = vmatpush3.bf16.xpose.msra.mxu1 %v2572_v0  ;;  %v2258_v0 = vadd.f32 %v6679_v30, %v6778_v11  ;;  %v6799_v30 = vld [vmem:[%s7469_s1 + $0x118] sm:$0xff]  }
0x11ff   :  { %5185 = vmatprep.subr.bf16.mxu1 %v5806_v23 }
0x1206   :  { %5186 = vmatpush3.bf16.xpose.msra.mxu1 %v2569_v12  ;;  %v2275_v12 = vpack.c.bf16 %v2262_v3, %v2258_v0 }
0x1207   :  { %5187 = vmatprep.subr.bf16.mxu1 %v5806_v23 }
0x1208   :  { %v2290_v33 = vmul.bf16 %v6799_v30, %v2275_v12 }
0x120e   :  { %5188 = vmatpush3.bf16.xpose.msra.mxu1 %v2566_v22  ;;  %v2291_v22 = vmul.bf16 %v6790_v62, %v2275_v12 }
0x120f   :  { %5189 = vmatprep.subr.bf16.mxu1 %v5806_v23 }
0x1216   :  { %5190 = vmatpush3.bf16.xpose.msra.mxu1 %v2563_v1  ;;  %v2289_v1 = vmul.bf16 %v6806_v18, %v2275_v12 }
0x121d   :  { %5192 = vmatmul.mubr.msk.bf16.vlgmr.msra.gmra.mxu1 %vm110_vm0, %v6719_v47 }
0x1248   :  { %v2377_v31 = vpop.f32.mrf.mxu1 }
0x1249   :  { %v2384_v40 = vmul.f32 0.35355338, %v2377_v31  ;;  %v6813_v31 = vld [vmem:[%s7469_s1 + $0x108] sm:$0xff]  }
0x124a   :  { %v5118_v53 = vpop.f32.mrf.mxu1 }
0x124b   :  { %2386 = vmax.xlane.f32.xlu0 %v2384_v40  ;;  %v6820_v53 = vld [vmem:[%s7469_s1 + $0x100] sm:$0xff]  }
0x124c   :  { %v2380_v59 = vpop.f32.mrf.mxu1 }
0x124d   :  { %v2385_v5 = vmul.f32 0.35355338, %v2380_v59  ;;  %v2287_v59 = vmul.bf16 %v6820_v53, %v2275_v12 }
0x124e   :  { %v5119_v19 = vpop.f32.mrf.mxu1 }
0x124f   :  { %2388 = vmax.xlane.f32.xlu1 %v2385_v5 }
0x12d4   :  { %v2387_v29 = vpop.xlane.xlu0 %2386 }
0x12d5   :  { %v2390_v25 = vsub.f32 %v2384_v40, %v2387_v29  ;;  %v2288_v40 = vmul.bf16 %v6813_v31, %v2275_v12  ;;  %v6834_v29 = vld [vmem:[%s7469_s1 + $0xf0] sm:$0xff]  }
0x12d7   :  { %v2392_v6 = vmul.f32 1.442695, %v2390_v25  ;;  %v2285_v25 = vmul.bf16 %v6834_v29, %v2275_v12 }
0x12d8   :  { %v2389_v2 = vpop.xlane.xlu1 %2388 }
0x12d9   :  { %5704 = vpow2.f32 %v2392_v6  ;;  %v2391_v15 = vsub.f32 %v2385_v5, %v2389_v2  ;;  %v6827_v5 = vld [vmem:[%s7469_s1 + $0xf8] sm:$0xff]   ;;  %v6841_v6 = vld [vmem:[%s7469_s1 + $0xe8] sm:$0xff]  }
0x12da   :  { %v2286_v19 = vmul.bf16 %v6827_v5, %v2275_v12  ;;  %v2284_v2 = vmul.bf16 %v6841_v6, %v2275_v12 }
0x12db   :  { %v2394_v9 = vmul.f32 1.442695, %v2391_v15 }
0x12dd   :  { %5706 = vpow2.f32 %v2394_v9  ;;  %v2620_v58 = vpop.f32.mrf.mxu1 }
0x12de   :  { %v2627_v47 = vmul.f32 0.35355338, %v2620_v58 }
0x12df   :  { %v5193_v8 = vpop.f32.mrf.mxu1 }
0x12e0   :  { %2629 = vmax.xlane.f32.xlu0 %v2627_v47 }
0x12e1   :  { %v2623_v28 = vpop.f32.mrf.mxu1 }
0x12e2   :  { %v6782_v60 = vmul.f32 0.35355338, %v2623_v28 }
0x12e3   :  { %v5194_v13 = vpop.f32.mrf.mxu1 }
0x12e4   :  { %2631 = vmax.xlane.f32.xlu0 %v6782_v60 }
0x12e6   :  { %v5705_v7 = vpop.eup %5704 }
0x12e7   :  { %5152 = vmatprep.mubr.f32.mxu0 %v5705_v7 }
0x12ea   :  { %v5707_v26 = vpop.eup %5706 }
0x12eb   :  { %5153 = vmatmul.mubr.f32.vlgmr.msra.gmra.mxu0 %v5707_v26 }
0x12ec   :  { %5156 = vmatpush3.bf16.msra.mxu0 %v2291_v22  ;;  %5171 = vmatprep.mubr.msk.bf16.mxu0 %vm5807_vm4, %v5806_v23 }
0x12ed   :  { %5157 = vmatprep.subr.bf16.mxu0 %v5806_v23 }
0x12f0   :  { %5158 = vmatpush3.bf16.msra.mxu0 %v2290_v33 }
0x12f1   :  { %5159 = vmatprep.subr.bf16.mxu0 %v5806_v23 }
0x12f4   :  { %5160 = vmatpush3.bf16.msra.mxu0 %v2289_v1 }
0x12f5   :  { %5161 = vmatprep.subr.bf16.mxu0 %v5806_v23 }
0x12f8   :  { %5162 = vmatpush3.bf16.msra.mxu0 %v2288_v40 }
0x12f9   :  { %5163 = vmatprep.subr.bf16.mxu0 %v5806_v23 }
0x12fc   :  { %5164 = vmatpush3.bf16.msra.mxu0 %v2287_v59 }
0x12fd   :  { %5165 = vmatprep.subr.bf16.mxu0 %v5806_v23 }
0x1300   :  { %5166 = vmatpush3.bf16.msra.mxu0 %v2286_v19 }
0x1301   :  { %5167 = vmatprep.subr.bf16.mxu0 %v5806_v23 }
0x1304   :  { %5168 = vmatpush3.bf16.msra.mxu0 %v2285_v25  ;;  %v5585_v25 = vld [vmem:[%s7469_s1 + $0x158] sm:$0xff]  }
0x1305   :  { %5169 = vmatprep.subr.bf16.mxu0 %v5806_v23 }
0x1308   :  { %5170 = vmatpush3.bf16.msra.mxu0 %v2284_v2 }
0x1309   :  { %5195 = vmatprep.subr.mxu0 %v6291_v42 }
0x1369   :  { %v2630_v15 = vpop.xlane.xlu0 %2629 }
0x136a   :  { %v2633_v9 = vsub.f32 %v2627_v47, %v2630_v15 }
0x136c   :  { %v2635_v28 = vmul.f32 1.442695, %v2633_v9 }
0x136d   :  { %v2632_v47 = vpop.xlane.xlu0 %2631 }
0x13ab   :  { %v5154_v58 = vpop.f32.mrf.mxu0 }
0x13ac   :  { %5708 = vrcp.f32 %v5154_v58 }
0x13ad   :  { %v2462_v8 = vpop.f32.mrf.mxu0 }
0x13ae   :  { %5710 = vrcp.f32 %v2462_v8 }
0x13af   :  { %5712 = vpow2.f32 %v2635_v28 }
0x13b9   :  { %v5709_v3 = vpop.eup %5708 }
0x13ba   :  { %v2474_v22 = vmul.f32 %v5709_v3, %v5707_v26  ;;  %v2268_v26 = vadd.f32 %v6716_v27, %v6778_v11 }
0x13bb   :  { %v5711_v13 = vpop.eup %5710 }
0x13bc   :  { %v2473_v0 = vmul.f32 %v5711_v13, %v5705_v7  ;;  %v6845_v1 = vpop.eup %5712  ;;  %v2634_v7 = vsub.f32 %v6782_v60, %v2632_v47  ;;  %v2272_v60 = vadd.f32 %v6774_v4, %v6778_v11 }
0x13be   :  { %v2475_v33 = vpack.c.bf16 %v2474_v22, %v2473_v0  ;;  %v2637_v12 = vmul.f32 1.442695, %v2634_v7  ;;  %v2518_v40 = vpack.c.bf16 %v2272_v60, %v2268_v26 }
0x13c0   :  { %5172 = vmatmul.mubr.bf16.vlgmr.msra.gmra.mxu0 %v2475_v33  ;;  %5714 = vpow2.f32 %v2637_v12  ;;  %v2534_v59 = vmul.bf16 %v6790_v62, %v2518_v40  ;;  %v2533_v27 = vmul.bf16 %v6799_v30, %v2518_v40  ;;  %v2532_v11 = vmul.bf16 %v6806_v18, %v2518_v40  ;;  %v5587_v33 = vld [vmem:[%s7469_s1 + $0x148] sm:$0xff]  }
0x13c1   :  { %5196 = vmatpush3.msra.mxu0 %v6291_v42  ;;  %5227 = vmatprep.mubr.f32.mxu0 %v6845_v1  ;;  %v2531_v62 = vmul.bf16 %v6813_v31, %v2518_v40  ;;  %v2530_v19 = vmul.bf16 %v6820_v53, %v2518_v40  ;;  %v2529_v30 = vmul.bf16 %v6827_v5, %v2518_v40  ;;  %v5584_v53 = vld [vmem:[%s7469_s1 + $0x160] sm:$0xff]   ;;  %v5586_v5 = vld [vmem:[%s7469_s1 + $0x150] sm:$0xff]  }
0x13c2   :  { %5197 = vmatprep.subr.mxu0 %v6293_v43  ;;  %v2528_v18 = vmul.bf16 %v6834_v29, %v2518_v40  ;;  %v2527_v31 = vmul.bf16 %v6841_v6, %v2518_v40  ;;  %5250 = vmatprep.subr.bf16.mxu1 %v5584_v53 }
0x13c3   :  { %5198 = vmatpush3.msra.mxu0 %v6293_v43  ;;  %5251 = vmatpush3.bf16.msra.mxu1 %v5584_v53 }
0x13c4   :  { %5199 = vmatprep.subr.mxu0 %v6296_v46  ;;  %5252 = vmatprep.subr.bf16.mxu1 %v5585_v25 }
0x13c5   :  { %5200 = vmatpush3.msra.mxu0 %v6296_v46 }
0x13c6   :  { %5201 = vmatprep.subr.mxu0 %v6303_v48 }
0x13c7   :  { %5202 = vmatpush3.msra.mxu0 %v6303_v48  ;;  %5253 = vmatpush3.bf16.msra.mxu1 %v5585_v25 }
0x13c8   :  { %5203 = vmatprep.subr.mxu0 %v6307_v49  ;;  %5254 = vmatprep.subr.bf16.mxu1 %v5586_v5 }
0x13c9   :  { %5204 = vmatpush3.msra.mxu0 %v6307_v49 }
0x13ca   :  { %5205 = vmatprep.subr.mxu0 %v6311_v50 }
0x13cb   :  { %5206 = vmatpush3.msra.mxu0 %v6311_v50  ;;  %5255 = vmatpush3.bf16.msra.mxu1 %v5586_v5 }
0x13cc   :  { %5207 = vmatprep.subr.mxu0 %v6340_v36  ;;  %5256 = vmatprep.subr.bf16.mxu1 %v5587_v33 }
0x13cd   :  { %5208 = vmatpush3.msra.mxu0 %v6340_v36  ;;  %v5715_v4 = vpop.eup %5714 }
0x13ce   :  { %5209 = vmatprep.subr.mxu0 %v6343_v37 }
0x13cf   :  { %5210 = vmatpush3.msra.mxu0 %v6343_v37  ;;  %5257 = vmatpush3.bf16.msra.mxu1 %v5587_v33 }
0x13d0   :  { %5211 = vmatprep.subr.mxu0 %v6350_v39 }
0x13d1   :  { %5212 = vmatpush3.msra.mxu0 %v6350_v39 }
0x13d2   :  { %5213 = vmatprep.subr.mxu0 %v6354_v41 }
0x13d3   :  { %5214 = vmatpush3.msra.mxu0 %v6354_v41 }
0x13d4   :  { %5215 = vmatprep.subr.mxu0 %v6361_v51 }
0x13d5   :  { %5216 = vmatpush3.msra.mxu0 %v6361_v51 }
0x13d6   :  { %5217 = vmatprep.subr.mxu0 %v6364_v52 }
0x13d7   :  { %5218 = vmatpush3.msra.mxu0 %v6364_v52 }
0x13d8   :  { %5219 = vmatprep.subr.mxu0 %v6372_v55 }
0x13d9   :  { %5220 = vmatpush3.msra.mxu0 %v6372_v55 }
0x13da   :  { %5221 = vmatprep.subr.mxu0 %v6375_v57 }
0x13db   :  { %5222 = vmatpush3.msra.mxu0 %v6375_v57 }
0x13dc   :  { %5223 = vmatprep.subr.mxu0 %v6382_v61 }
0x13dd   :  { %5224 = vmatpush3.msra.mxu0 %v6382_v61 }
0x13de   :  { %5225 = vmatprep.subr.mxu0 %v6386_v63 }
0x13df   :  { %5226 = vmatpush3.msra.mxu0 %v6386_v63 }
0x13e0   :  { %5228 = vmatmul.mubr.f32.vlgmr.msra.gmra.mxu0 %v5715_v4  ;;  %5230 = vmatprep.subr.bf16.mxu0 %v5806_v23 }
0x13e1   :  { %5231 = vmatpush3.bf16.msra.mxu0 %v2534_v59  ;;  %5246 = vmatprep.mubr.msk.bf16.mxu0 %vm5807_vm4, %v5806_v23 }
0x13e2   :  { %5232 = vmatprep.subr.bf16.mxu0 %v5806_v23 }
0x13e5   :  { %5233 = vmatpush3.bf16.msra.mxu0 %v2533_v27 }
0x13e6   :  { %5234 = vmatprep.subr.bf16.mxu0 %v5806_v23 }
0x13e9   :  { %5235 = vmatpush3.bf16.msra.mxu0 %v2532_v11 }
0x13ea   :  { %5236 = vmatprep.subr.bf16.mxu0 %v5806_v23 }
0x13ed   :  { %5237 = vmatpush3.bf16.msra.mxu0 %v2531_v62 }
0x13ee   :  { %5238 = vmatprep.subr.bf16.mxu0 %v5806_v23 }
0x13f1   :  { %5239 = vmatpush3.bf16.msra.mxu0 %v2530_v19 }
0x13f2   :  { %5240 = vmatprep.subr.bf16.mxu0 %v5806_v23 }
0x13f5   :  { %5241 = vmatpush3.bf16.msra.mxu0 %v2529_v30 }
0x13f6   :  { %5242 = vmatprep.subr.bf16.mxu0 %v5806_v23 }
0x13f9   :  { %5243 = vmatpush3.bf16.msra.mxu0 %v2528_v18 }
0x13fa   :  { %5244 = vmatprep.subr.bf16.mxu0 %v5806_v23 }
0x13fd   :  { %5245 = vmatpush3.bf16.msra.mxu0 %v2527_v31 }
0x1480   :  { %v2510_v29 = vpop.f32.mrf.mxu0 }
0x1482   :  { %v5173_v6 = vpop.f32.mrf.mxu0 }
0x1484   :  { %v2513_v2 = vpop.f32.mrf.mxu0 }
0x1485   :  { %v2760_v15 = vpack.c.bf16 %v2513_v2, %v2510_v29 }
0x1486   :  { %v5174_v9 = vpop.f32.mrf.mxu0 }
0x1487   :  { %5258 = vmatprep.mubr.msk.bf16.mxu1 %vm110_vm0, %v2760_v15 }
0x14a0   :  { %v5229_v58 = vpop.f32.mrf.mxu0 }
0x14a1   :  { %5716 = vrcp.f32 %v5229_v58 }
0x14a2   :  { %v2705_v8 = vpop.f32.mrf.mxu0 }
0x14a3   :  { %5718 = vrcp.f32 %v2705_v8 }
0x14ae   :  { %v5717_v28 = vpop.eup %5716 }
0x14af   :  { %v2717_v0 = vmul.f32 %v5717_v28, %v5715_v4 }
0x14b0   :  { %v5719_v3 = vpop.eup %5718 }
0x14b1   :  { %v2716_v13 = vmul.f32 %v5719_v3, %v6845_v1  ;;  %v2770_v1 = vld [vmem:[%s7472_s4 + $0x65] ss:$0 sm:$0xff] }
0x14b3   :  { %v2718_v22 = vpack.c.bf16 %v2717_v0, %v2716_v13 }
0x14b5   :  { %5247 = vmatmul.mubr.bf16.vlgmr.msra.gmra.mxu0 %v2718_v22 }
0x1575   :  { %v2753_v47 = vpop.f32.mrf.mxu0 }
0x1577   :  { %v5248_v7 = vpop.f32.mrf.mxu0 }
0x1579   :  { %v2756_v12 = vpop.f32.mrf.mxu0 }
0x157a   :  { %v2761_v60 = vpack.c.bf16 %v2756_v12, %v2753_v47 }
0x157b   :  { %v5249_v26 = vpop.f32.mrf.mxu0 }
0x157c   :  { %5259 = vmatmul.mubr.msk.bf16.vlgmr.msra.gmra.mxu1 %vm110_vm0, %v2761_v60 }
0x163c   :  { %v5260_v40 = vpop.f32.mrf.mxu1 }
0x163d   :  { %v2844_v59 = vadd.f32 %v5260_v40, %v2770_v1 }
0x163e   :  { %v2835_v4 = vpop.f32.mrf.mxu1 }
0x163f   :  { %v2836_v27 = vadd.f32 %v2835_v4, %v2770_v1  ;;  %v2852_v53 = vadd.f32 %v2844_v59, %v6663_v17  ;;  %v5589_v4 = vld [vmem:[%s7470_s2 + $0x30] sm:$0xff]   ;;  %v5590_v59 = vld [vmem:[%s7470_s2 + $0x28] sm:$0xff]  }
0x1640   :  { %v5261_v11 = vpop.f32.mrf.mxu1 }
0x1641   :  { %v2850_v62 = vadd.f32 %v2836_v27, %v6655_v20  ;;  %v2847_v30 = vadd.f32 %v5261_v11, %v2770_v1  ;;  %v2862_v29 = vsel %vm110_vm0, %v2852_v53, 0.0  ;;  %v5591_v27 = vld [vmem:[%s7470_s2 + $0x20] sm:$0xff]  }
0x1642   :  { %v2838_v19 = vpop.f32.mrf.mxu1  ;;  %v5592_v11 = vld [vmem:[%s7469_s1 + $0x200] sm:$0xff]  }
0x1643   :  { %v2839_v18 = vadd.f32 %v2838_v19, %v2770_v1  ;;  %v2856_v31 = vsel %vm110_vm0, %v2850_v62, 0.0  ;;  %v2853_v6 = vadd.f32 %v2847_v30, %v6665_v54  ;;  %v5588_v1 = vld [vmem:[%s7470_s2 + $0x38] sm:$0xff]   ;;  %5274 = vmatprep.subr.bf16.mxu1 %v5592_v11  ;;  %v5594_v19 = vld [vmem:[%s7469_s1 + $0x1f0] sm:$0xff]   ;;  %v5595_v30 = vld [vmem:[%s7469_s1 + $0x1e8] sm:$0xff]  }
0x1644   :  { %2857 = vadd.xlane.f32.xlu1 %v2856_v31  ;;  %5262 = vmatprep.subr.bf16.mxu0 %v5588_v1 }
0x1645   :  { %v2851_v25 = vadd.f32 %v2839_v18, %v6657_v56  ;;  %v2865_v20 = vsel %vm110_vm0, %v2853_v6, 0.0  ;;  %5263 = vmatpush3.bf16.msra.mxu0 %v5588_v1  ;;  %5275 = vmatpush3.bf16.msra.mxu1 %v5592_v11  ;;  %v5596_v18 = vld [vmem:[%s7469_s1 + $0x1e0] sm:$0xff]  }
0x1646   :  { %5264 = vmatprep.subr.bf16.mxu0 %v5589_v4 }
0x1647   :  { %v2859_v5 = vsel %vm110_vm0, %v2851_v25, 0.0 }
0x1648   :  { %2860 = vadd.xlane.f32.xlu0 %v2859_v5  ;;  %2863 = vadd.xlane.f32.xlu1 %v2862_v29 }
0x1649   :  { %5265 = vmatpush3.bf16.msra.mxu0 %v5589_v4 }
0x164a   :  { %5266 = vmatprep.subr.bf16.mxu0 %v5590_v59 }
0x164c   :  { %2866 = vadd.xlane.f32.xlu0 %v2865_v20 }
0x164d   :  { %5267 = vmatpush3.bf16.msra.mxu0 %v5590_v59 }
0x164e   :  { %5268 = vmatprep.subr.bf16.mxu0 %v5591_v27 }
0x1651   :  { %5269 = vmatpush3.bf16.msra.mxu0 %v5591_v27 }
0x16cd   :  { %v2858_v2 = vpop.xlane.xlu1 %2857 }
0x16ce   :  { %v2868_v15 = vmul.f32 0.015625, %v2858_v2 }
0x16d0   :  { %v6928_v9 = vsub.f32 %v2850_v62, %v2868_v15  ;;  %v5593_v62 = vld [vmem:[%s7469_s1 + $0x1f8] sm:$0xff]  }
0x16d1   :  { %v2861_v58 = vpop.xlane.xlu0 %2860  ;;  %v2864_v17 = vpop.xlane.xlu1 %2863  ;;  %5276 = vmatprep.subr.bf16.mxu1 %v5593_v62 }
0x16d2   :  { %v2869_v8 = vmul.f32 0.015625, %v2861_v58  ;;  %v2870_v28 = vmul.f32 0.015625, %v2864_v17  ;;  %v2876_v56 = vmul.f32 %v6928_v9, %v6928_v9  ;;  %5277 = vmatpush3.bf16.msra.mxu1 %v5593_v62 }
0x16d3   :  { %5278 = vmatprep.subr.bf16.mxu1 %v5594_v19 }
0x16d4   :  { %v6932_v3 = vsub.f32 %v2851_v25, %v2869_v8  ;;  %v6934_v13 = vsub.f32 %v2852_v53, %v2870_v28  ;;  %v2880_v54 = vsel %vm110_vm0, %v2876_v56, 0.0 }
0x16d5   :  { %v2867_v0 = vpop.xlane.xlu0 %2866  ;;  %2881 = vadd.xlane.f32.xlu1 %v2880_v54  ;;  %v2854_v54 = vld [vmem:[%s7472_s4 + $0x60] ss:$0 sm:$0xff] }
0x16d6   :  { %v2871_v22 = vmul.f32 0.015625, %v2867_v0  ;;  %v2877_v33 = vmul.f32 %v6932_v3, %v6932_v3  ;;  %v2878_v47 = vmul.f32 %v6934_v13, %v6934_v13  ;;  %5279 = vmatpush3.bf16.msra.mxu1 %v5594_v19  ;;  %v5598_v19 = vld [vmem:[%s7469_s1 + $0x1d0] sm:$0xff]  }
0x16d7   :  { %5280 = vmatprep.subr.bf16.mxu1 %v5595_v30 }
0x16d8   :  { %v2875_v7 = vsub.f32 %v2853_v6, %v2871_v22  ;;  %v2883_v12 = vsel %vm110_vm0, %v2877_v33, 0.0  ;;  %v2886_v60 = vsel %vm110_vm0, %v2878_v47, 0.0 }
0x16d9   :  { %2884 = vadd.xlane.f32.xlu0 %v2883_v12  ;;  %2887 = vadd.xlane.f32.xlu1 %v2886_v60  ;;  %v2855_v60 = vld [vmem:[%s7472_s4 + $0x61] ss:$0 sm:$0xff] }
0x16da   :  { %v2879_v26 = vmul.f32 %v2875_v7, %v2875_v7  ;;  %5281 = vmatpush3.bf16.msra.mxu1 %v5595_v30  ;;  %v5599_v30 = vld [vmem:[%s7469_s1 + $0x1c8] sm:$0xff]  }
0x16db   :  { %5282 = vmatprep.subr.bf16.mxu1 %v5596_v18 }
0x16dc   :  { %v2889_v40 = vsel %vm110_vm0, %v2879_v26, 0.0 }
0x16dd   :  { %2890 = vadd.xlane.f32.xlu0 %v2889_v40 }
0x16de   :  { %5283 = vmatpush3.bf16.msra.mxu1 %v5596_v18 }
0x175e   :  { %v2882_v31 = vpop.xlane.xlu1 %2881 }
0x175f   :  { %v2892_v53 = vmul.f32 0.015625, %v2882_v31 }
0x1761   :  { %v2896_v25 = vadd.f32 1e-05, %v2892_v53  ;;  %v2926_v53 = vld [vmem:[%s7472_s4 + $0x66] ss:$0 sm:$0xff] }
0x1762   :  { %v2885_v5 = vpop.xlane.xlu0 %2884  ;;  %v2888_v29 = vpop.xlane.xlu1 %2887 }
0x1763   :  { %5720 = vrsqrt.f32 %v2896_v25  ;;  %v2893_v6 = vmul.f32 0.015625, %v2885_v5  ;;  %v2894_v20 = vmul.f32 0.015625, %v2888_v29 }
0x1765   :  { %v2897_v2 = vadd.f32 1e-05, %v2893_v6  ;;  %v2898_v15 = vadd.f32 1e-05, %v2894_v20 }
0x1766   :  { %v2891_v58 = vpop.xlane.xlu0 %2890 }
0x1767   :  { %5722 = vrsqrt.f32 %v2897_v2  ;;  %v2895_v17 = vmul.f32 0.015625, %v2891_v58 }
0x1768   :  { %5724 = vrsqrt.f32 %v2898_v15 }
0x1769   :  { %v2899_v8 = vadd.f32 1e-05, %v2895_v17 }
0x176b   :  { %5726 = vrsqrt.f32 %v2899_v8 }
0x1770   :  { %v5721_v28 = vpop.eup %5720 }
0x1771   :  { %v2904_v56 = vmul.f32 %v5721_v28, %v6928_v9 }
0x1773   :  { %v2908_v47 = vmul.f32 %v2904_v56, %v2854_v54 }
0x1774   :  { %v5723_v0 = vpop.eup %5722 }
0x1775   :  { %v5725_v22 = vpop.eup %5724  ;;  %v2905_v33 = vmul.f32 %v5723_v0, %v6932_v3  ;;  %v6980_v4 = vadd.f32 %v2908_v47, %v2855_v60 }
0x1776   :  { %v2906_v12 = vmul.f32 %v5725_v22, %v6934_v13 }
0x1777   :  { %v2909_v26 = vmul.f32 %v2905_v33, %v2854_v54 }
0x1778   :  { %v5727_v40 = vpop.eup %5726  ;;  %v2910_v59 = vmul.f32 %v2906_v12, %v2854_v54 }
0x1779   :  { %v2907_v1 = vmul.f32 %v5727_v40, %v2875_v7  ;;  %v6982_v9 = vadd.f32 %v2909_v26, %v2855_v60  ;;  %v5597_v7 = vld [vmem:[%s7469_s1 + $0x1d8] sm:$0xff]  }
0x177a   :  { %v6987_v3 = vadd.f32 %v2910_v59, %v2855_v60  ;;  %5284 = vmatprep.subr.bf16.mxu1 %v5597_v7 }
0x177b   :  { %v2924_v27 = vpack.c.bf16 %v6982_v9, %v6980_v4  ;;  %v2911_v11 = vmul.f32 %v2907_v1, %v2854_v54  ;;  %5285 = vmatpush3.bf16.msra.mxu1 %v5597_v7  ;;  %v3028_v54 = vld [vmem:[%s7472_s4 + $0x67] ss:$0 sm:$0xff] }
0x177c   :  { %5286 = vmatprep.subr.bf16.mxu1 %v5598_v19 }
0x177d   :  { %5270 = vmatprep.mubr.msk.bf16.mxu0 %vm110_vm0, %v2924_v27  ;;  %v6989_v13 = vadd.f32 %v2911_v11, %v2855_v60 }
0x177f   :  { %v2925_v62 = vpack.c.bf16 %v6989_v13, %v6987_v3  ;;  %5287 = vmatpush3.bf16.msra.mxu1 %v5598_v19 }
0x1780   :  { %5288 = vmatprep.subr.bf16.mxu1 %v5599_v30 }
0x1781   :  { %5271 = vmatmul.mubr.msk.bf16.vlgmr.msra.gmra.mxu0 %vm110_vm0, %v2925_v62 }
0x1782   :  { %3293 = vmatprep.mubr.bf16.mxu0 %v5804_v35 }
0x1783   :  { %5289 = vmatpush3.bf16.msra.mxu1 %v5599_v30 }
0x1784   :  { %5314 = vmatprep.subr.mxu1 %v6291_v42 }
0x1841   :  { %v5272_v18 = vpop.f32.mrf.mxu0 }
0x1842   :  { %v3000_v6 = vadd.f32 %v5272_v18, %v2926_v53 }
0x1843   :  { %v2991_v31 = vpop.f32.mrf.mxu0 }
0x1844   :  { %v2992_v5 = vadd.f32 %v2991_v31, %v2926_v53  ;;  %v3008_v8 = vmax.f32 %v3000_v6, 0.0 }
0x1845   :  { %v5273_v25 = vpop.f32.mrf.mxu0 }
0x1846   :  { %v3003_v29 = vadd.f32 %v5273_v25, %v2926_v53  ;;  %v3006_v58 = vmax.f32 %v2992_v5, 0.0 }
0x1847   :  { %v2994_v20 = vpop.f32.mrf.mxu0 }
0x1848   :  { %v2995_v2 = vadd.f32 %v2994_v20, %v2926_v53  ;;  %v3009_v15 = vmax.f32 %v3003_v29, 0.0 }
0x184a   :  { %v3007_v17 = vmax.f32 %v2995_v2, 0.0  ;;  %v3027_v56 = vpack.c.bf16 %v3009_v15, %v3008_v8  ;;  %v5602_v2 = vld [vmem:[%s7471_s3 + $0xb4] ss:$8 sps:$4 sm:$0xff]   ;;  %v5605_v15 = vld [vmem:[%s7471_s3 + $0xa4] ss:$8 sps:$4 sm:$0xff]  }
0x184b   :  { %3269 = vmatprep.subr.bf16.mxu0 %v5602_v2  ;;  %v5611_v8 = vld [vmem:[%s7471_s3 + $0x84] ss:$8 sps:$4 sm:$0xff]  }
0x184c   :  { %v3026_v28 = vpack.c.bf16 %v3007_v17, %v3006_v58  ;;  %v5608_v58 = vld [vmem:[%s7471_s3 + $0x94] ss:$8 sps:$4 sm:$0xff]   ;;  %v5606_v17 = vld [vmem:[%s7471_s3 + $0x90] ss:$8 sps:$4 sm:$0xff]  }
0x184e   :  { %5290 = vmatprep.mubr.bf16.mxu1 %v3026_v28  ;;  %v5609_v28 = vld [vmem:[%s7471_s3 + $0x80] ss:$8 sps:$4 sm:$0xff]  }
0x184f   :  { %5291 = vmatmul.mubr.bf16.vlgmr.msra.gmra.mxu1 %v3027_v56 }
0x1850   :  { %5315 = vmatpush3.msra.mxu1 %v6291_v42 }
0x1851   :  { %5316 = vmatprep.subr.mxu1 %v6293_v43 }
0x1852   :  { %5317 = vmatpush3.msra.mxu1 %v6293_v43 }
0x1853   :  { %5318 = vmatprep.subr.mxu1 %v6296_v46 }
0x1854   :  { %5319 = vmatpush3.msra.mxu1 %v6296_v46 }
0x1855   :  { %5320 = vmatprep.subr.mxu1 %v6303_v48 }
0x1856   :  { %5321 = vmatpush3.msra.mxu1 %v6303_v48 }
0x1857   :  { %5322 = vmatprep.subr.mxu1 %v6307_v49 }
0x1858   :  { %5323 = vmatpush3.msra.mxu1 %v6307_v49 }
0x1859   :  { %5324 = vmatprep.subr.mxu1 %v6311_v50 }
0x185a   :  { %5325 = vmatpush3.msra.mxu1 %v6311_v50 }
0x185b   :  { %5326 = vmatprep.subr.mxu1 %v6340_v36 }
0x185c   :  { %5327 = vmatpush3.msra.mxu1 %v6340_v36 }
0x185d   :  { %5328 = vmatprep.subr.mxu1 %v6343_v37 }
0x185e   :  { %5329 = vmatpush3.msra.mxu1 %v6343_v37 }
0x185f   :  { %5330 = vmatprep.subr.mxu1 %v6350_v39 }
0x1860   :  { %5331 = vmatpush3.msra.mxu1 %v6350_v39 }
0x1861   :  { %5332 = vmatprep.subr.mxu1 %v6354_v41 }
0x1862   :  { %5333 = vmatpush3.msra.mxu1 %v6354_v41 }
0x1863   :  { %5334 = vmatprep.subr.mxu1 %v6361_v51 }
0x1864   :  { %5335 = vmatpush3.msra.mxu1 %v6361_v51 }
0x1865   :  { %5336 = vmatprep.subr.mxu1 %v6364_v52 }
0x1866   :  { %5337 = vmatpush3.msra.mxu1 %v6364_v52 }
0x1867   :  { %5338 = vmatprep.subr.mxu1 %v6372_v55 }
0x1868   :  { %5339 = vmatpush3.msra.mxu1 %v6372_v55 }
0x1869   :  { %5340 = vmatprep.subr.mxu1 %v6375_v57 }
0x186a   :  { %5341 = vmatpush3.msra.mxu1 %v6375_v57 }
0x186b   :  { %5342 = vmatprep.subr.mxu1 %v6382_v61 }
0x186c   :  { %5343 = vmatpush3.msra.mxu1 %v6382_v61 }
0x186d   :  { %5344 = vmatprep.subr.mxu1 %v6386_v63 }
0x186e   :  { %5345 = vmatpush3.msra.mxu1 %v6386_v63 }
0x186f   :  { %5349 = vmatprep.subr.bf16.mxu1 %v5806_v23 }
0x190f   :  { %v5292_v0 = vpop.f32.mrf.mxu1 }
0x1910   :  { %v3120_v22 = vadd.f32 %v5292_v0, %v3028_v54 }
0x1911   :  { %v3111_v33 = vpop.f32.mrf.mxu1 }
0x1912   :  { %v3112_v47 = vadd.f32 %v3111_v33, %v3028_v54 }
0x1913   :  { %v5293_v12 = vpop.f32.mrf.mxu1 }
0x1914   :  { %v3123_v60 = vadd.f32 %v5293_v12, %v3028_v54  ;;  %v3126_v26 = vadd.f32 %v3112_v47, %v6980_v4  ;;  %v3128_v4 = vadd.f32 %v3120_v22, %v6987_v3  ;;  %v5600_v3 = vld [vmem:[%s7471_s3 + $0xb0] ss:$8 sps:$4 sm:$0xff]  }
0x1915   :  { %v3114_v40 = vpop.f32.mrf.mxu1  ;;  %3270 = vmatpush1.bf16.msra.mxu0 %v5600_v3 }
0x1916   :  { %v3115_v1 = vadd.f32 %v3114_v40, %v3028_v54  ;;  %v3132_v59 = vsel %vm110_vm0, %v3126_v26, 0.0  ;;  %v3129_v6 = vadd.f32 %v3123_v60, %v6989_v13  ;;  %v5603_v13 = vld [vmem:[%s7471_s3 + $0xa0] ss:$8 sps:$4 sm:$0xff]   ;;  %3271 = vmatprep.subr.bf16.mxu0 %v5605_v15 }
0x1917   :  { %3133 = vadd.xlane.f32.xlu1 %v3132_v59 }
0x1918   :  { %v3127_v27 = vadd.f32 %v3115_v1, %v6982_v9  ;;  %v3138_v9 = vsel %vm110_vm0, %v3128_v4, 0.0  ;;  %v3141_v20 = vsel %vm110_vm0, %v3129_v6, 0.0 }
0x1919   :  { %3272 = vmatpush1.bf16.msra.mxu0 %v5603_v13 }
0x191a   :  { %v3135_v11 = vsel %vm110_vm0, %v3127_v27, 0.0  ;;  %3273 = vmatprep.subr.bf16.mxu0 %v5608_v58 }
0x191b   :  { %3136 = vadd.xlane.f32.xlu0 %v3135_v11 }
0x191d   :  { %3274 = vmatpush1.bf16.msra.mxu0 %v5606_v17 }
0x191e   :  { %3275 = vmatprep.subr.bf16.mxu0 %v5611_v8 }
0x1921   :  { %3276 = vmatpush1.bf16.msra.mxu0 %v5609_v28 }
0x1922   :  { %5294 = vmatprep.subr.bf16.mxu0 %v5806_v23 }
0x19a0   :  { %v3134_v62 = vpop.xlane.xlu1 %3133 }
0x19a1   :  { %v3144_v7 = vmul.f32 0.015625, %v3134_v62 }
0x19a3   :  { %v3148_v19 = vsub.f32 %v3126_v26, %v3144_v7 }
0x19a4   :  { %v3137_v30 = vpop.xlane.xlu0 %3136 }
0x19a5   :  { %v3145_v18 = vmul.f32 0.015625, %v3137_v30  ;;  %v3152_v31 = vmul.f32 %v3148_v19, %v3148_v19 }
0x19a7   :  { %v3149_v53 = vsub.f32 %v3127_v27, %v3145_v18  ;;  %v3156_v25 = vsel %vm110_vm0, %v3152_v31, 0.0  ;;  %v3130_v31 = vld [vmem:[%s7472_s4 + $0x62] ss:$0 sm:$0xff] }
0x19a8   :  { %3157 = vadd.xlane.f32.xlu1 %v3156_v25 }
0x19a9   :  { %v3153_v5 = vmul.f32 %v3149_v53, %v3149_v53 }
0x19ab   :  { %v3159_v29 = vsel %vm110_vm0, %v3153_v5, 0.0 }
0x19ac   :  { %3160 = vadd.xlane.f32.xlu0 %v3159_v29  ;;  %3139 = vadd.xlane.f32.xlu1 %v3138_v9  ;;  %v3131_v29 = vld [vmem:[%s7472_s4 + $0x63] ss:$0 sm:$0xff] }
0x19b0   :  { %3142 = vadd.xlane.f32.xlu0 %v3141_v20 }
0x1a31   :  { %v3158_v56 = vpop.xlane.xlu1 %3157 }
0x1a32   :  { %v3168_v54 = vmul.f32 0.015625, %v3158_v56 }
0x1a34   :  { %v3172_v0 = vadd.f32 1e-05, %v3168_v54 }
0x1a35   :  { %v3161_v22 = vpop.xlane.xlu0 %3160  ;;  %v3140_v33 = vpop.xlane.xlu1 %3139 }
0x1a36   :  { %5728 = vrsqrt.f32 %v3172_v0  ;;  %v3169_v47 = vmul.f32 0.015625, %v3161_v22  ;;  %v3146_v12 = vmul.f32 0.015625, %v3140_v33 }
0x1a38   :  { %v3173_v60 = vadd.f32 1e-05, %v3169_v47  ;;  %v3150_v26 = vsub.f32 %v3128_v4, %v3146_v12  ;;  %v7106_v47 = vld [vmem:[%s7472_s4 + $0x74] ss:$8 sm:$0x3] }
0x1a39   :  { %v3143_v40 = vpop.xlane.xlu0 %3142 }
0x1a3a   :  { %5730 = vrsqrt.f32 %v3173_v60  ;;  %v3147_v1 = vmul.f32 0.015625, %v3143_v40  ;;  %v3154_v59 = vmul.f32 %v3150_v26, %v3150_v26  ;;  %v3208_v60 = vrot.slane %v7106_v47, %v6183_v14 }
0x1a3c   :  { %v3151_v27 = vsub.f32 %v3129_v6, %v3147_v1  ;;  %v3162_v11 = vsel %vm110_vm0, %v3154_v59, 0.0 }
0x1a3d   :  { %3163 = vadd.xlane.f32.xlu1 %v3162_v11 }
0x1a3e   :  { %v3155_v62 = vmul.f32 %v3151_v27, %v3151_v27 }
0x1a40   :  { %v3165_v7 = vsel %vm110_vm0, %v3155_v62, 0.0 }
0x1a41   :  { %3166 = vadd.xlane.f32.xlu0 %v3165_v7 }
0x1a43   :  { %v5729_v30 = vpop.eup %5728 }
0x1a44   :  { %v3180_v18 = vmul.f32 %v5729_v30, %v3148_v19 }
0x1a46   :  { %v3184_v5 = vmul.f32 %v3180_v18, %v3130_v31 }
0x1a47   :  { %v5731_v25 = vpop.eup %5730 }
0x1a48   :  { %v3181_v4 = vmul.f32 %v5731_v25, %v3149_v53  ;;  %v7086_v6 = vadd.f32 %v3184_v5, %v3131_v29 }
0x1a4a   :  { %v3185_v9 = vmul.f32 %v3181_v4, %v3130_v31 }
0x1a4c   :  { %v7088_v20 = vadd.f32 %v3185_v9, %v3131_v29 }
0x1a4e   :  { %v3200_v2 = vpack.c.bf16 %v7088_v20, %v7086_v6 }
0x1a50   :  { %4427 = vmatmul.mubr.msk.bf16.vlgmr.msra.gmra.mxu0 %vm110_vm0, %v3200_v2 }
0x1a51   :  { %3303 = vmatprep.mubr.bf16.mxu0 %v5804_v35 }
0x1ac6   :  { %v3164_v19 = vpop.xlane.xlu1 %3163 }
0x1ac7   :  { %v3170_v3 = vmul.f32 0.015625, %v3164_v19 }
0x1ac9   :  { %v3174_v53 = vadd.f32 1e-05, %v3170_v3 }
0x1aca   :  { %v3167_v15 = vpop.xlane.xlu0 %3166 }
0x1acb   :  { %5732 = vrsqrt.f32 %v3174_v53  ;;  %v3171_v13 = vmul.f32 0.015625, %v3167_v15 }
0x1acd   :  { %v3175_v58 = vadd.f32 1e-05, %v3171_v13 }
0x1acf   :  { %5734 = vrsqrt.f32 %v3175_v58 }
0x1ad8   :  { %v5733_v17 = vpop.eup %5732 }
0x1ad9   :  { %v3182_v8 = vmul.f32 %v5733_v17, %v3150_v26 }
0x1adb   :  { %v3186_v54 = vmul.f32 %v3182_v8, %v3130_v31 }
0x1adc   :  { %v5735_v28 = vpop.eup %5734 }
0x1add   :  { %v3183_v56 = vmul.f32 %v5735_v28, %v3151_v27  ;;  %v7094_v22 = vadd.f32 %v3186_v54, %v3131_v29 }
0x1adf   :  { %v3187_v0 = vmul.f32 %v3183_v56, %v3130_v31 }
0x1ae1   :  { %v7096_v33 = vadd.f32 %v3187_v0, %v3131_v29 }
0x1ae3   :  { %v3201_v35 = vpack.c.bf16 %v7096_v33, %v7094_v22 }
0x1ae5   :  { %4428 = vmatmul.mubr.msk.bf16.gmra.mxu0 %vm110_vm0, %v3201_v35 }
0x1ae6   :  { %5310 = vmatprep.mubr.msk.bf16.mxu0 %vm5807_vm4, %v5806_v23 }
0x1b10   :  { %v3295_v12 = vpop.f32.mrf.mxu0 }
0x1b11   :  { %v3296_v1 = vadd.f32 %v3295_v12, %v3208_v60 }
0x1b12   :  { %v7110_v26 = vpop.f32.mrf.mxu0 }
0x1b14   :  { %v3299_v40 = vpop.f32.mrf.mxu0 }
0x1b15   :  { %v3300_v59 = vadd.f32 %v3299_v40, %v3208_v60 }
0x1b16   :  { %v7144_v3 = vpop.f32.mrf.mxu0 }
0x1b17   :  { %v7112_v27 = vpack.c.bf16 %v3300_v59, %v3296_v1 }
0x1b19   :  { %v3322_v11 = vmul.bf16 %v7112_v27, %v6201_v34  ;;  %v3323_v62 = vmul.bf16 %v7112_v27, %v6176_v16  ;;  %v3319_v14 = vmul.bf16 %v7112_v27, %v6197_v32  ;;  %v3321_v7 = vmul.bf16 %v7112_v27, %v6180_v21 }
0x1b1a   :  { %v3317_v30 = vmul.bf16 %v7112_v27, %v6221_v44  ;;  %v3320_v18 = vmul.bf16 %v7112_v27, %v6191_v24  ;;  %v3318_v31 = vmul.bf16 %v7112_v27, %v6209_v38  ;;  %v3316_v25 = vmul.bf16 %v7112_v27, %v6223_v45 }
0x1b1b   :  { %3352 = vrot.lane.b32.xlu0 %v3322_v11, %s5805_s18  ;;  %3354 = vrot.lane.b32.xlu1 %v3323_v62, %s5805_s18 }
0x1b1f   :  { %3346 = vrot.lane.b32.xlu0 %v3319_v14, %s5805_s18  ;;  %3350 = vrot.lane.b32.xlu1 %v3321_v7, %s5805_s18 }
0x1b23   :  { %3342 = vrot.lane.b32.xlu0 %v3317_v30, %s5805_s18  ;;  %3348 = vrot.lane.b32.xlu1 %v3320_v18, %s5805_s18 }
0x1b27   :  { %3344 = vrot.lane.b32.xlu1 %v3318_v31, %s5805_s18 }
0x1b2b   :  { %3340 = vrot.lane.b32.xlu1 %v3316_v25, %s5805_s18 }
0x1b8d   :  { %v3355_v4 = vpop.permute.xlu1 %3354  ;;  %v3353_v29 = vpop.permute.xlu0 %3352 }
0x1b8e   :  { %v3381_v5 = vsel %vm110_vm0, %v3355_v4, 0  ;;  %v3378_v9 = vsel %vm110_vm0, %v3353_v29, 0 }
0x1b8f   :  { %5295 = vmatpush3.bf16.xpose.msra.mxu0 %v3381_v5 }
0x1b90   :  { %5296 = vmatprep.subr.bf16.mxu0 %v5806_v23 }
0x1b91   :  { %v3351_v2 = vpop.permute.xlu1 %3350  ;;  %v3347_v56 = vpop.permute.xlu0 %3346 }
0x1b92   :  { %v3375_v19 = vsel %vm110_vm0, %v3351_v2, 0  ;;  %v3369_v0 = vsel %vm110_vm0, %v3347_v56, 0 }
0x1b95   :  { %v3349_v53 = vpop.permute.xlu1 %3348  ;;  %v3343_v11 = vpop.permute.xlu0 %3342 }
0x1b96   :  { %v3372_v13 = vsel %vm110_vm0, %v3349_v53, 0 }
0x1b97   :  { %5297 = vmatpush3.bf16.xpose.msra.mxu0 %v3378_v9 }
0x1b98   :  { %5298 = vmatprep.subr.bf16.mxu0 %v5806_v23 }
0x1b99   :  { %v3345_v1 = vpop.permute.xlu1 %3344 }
0x1b9f   :  { %5299 = vmatpush3.bf16.xpose.msra.mxu0 %v3375_v19 }
0x1ba0   :  { %5300 = vmatprep.subr.bf16.mxu0 %v5806_v23 }
0x1ba5   :  { %v3305_v15 = vpop.f32.mrf.mxu0 }
0x1ba6   :  { %v3306_v8 = vadd.f32 %v3305_v15, %v3208_v60 }
0x1ba7   :  { %v7147_v58 = vpop.f32.mrf.mxu0  ;;  %5301 = vmatpush3.bf16.xpose.msra.mxu0 %v3372_v13 }
0x1ba8   :  { %5302 = vmatprep.subr.bf16.mxu0 %v5806_v23 }
0x1ba9   :  { %v3309_v17 = vpop.f32.mrf.mxu0 }
0x1baa   :  { %v3310_v28 = vadd.f32 %v3309_v17, %v3208_v60 }
0x1bab   :  { %v7205_v15 = vpop.f32.mrf.mxu0 }
0x1bac   :  { %v7150_v54 = vpack.c.bf16 %v3310_v28, %v3306_v8 }
0x1bae   :  { %v3566_v35 = vmul.bf16 %v7150_v54, %v6176_v16  ;;  %v3565_v12 = vmul.bf16 %v7150_v54, %v6201_v34  ;;  %v3564_v60 = vmul.bf16 %v7150_v54, %v6180_v21  ;;  %v3563_v40 = vmul.bf16 %v7150_v54, %v6191_v24 }
0x1baf   :  { %5303 = vmatpush3.bf16.xpose.msra.mxu0 %v3369_v0  ;;  %v3366_v16 = vsel %vm110_vm0, %v3345_v1, 0  ;;  %v3562_v34 = vmul.bf16 %v7150_v54, %v6197_v32  ;;  %v3561_v59 = vmul.bf16 %v7150_v54, %v6209_v38  ;;  %v3560_v21 = vmul.bf16 %v7150_v54, %v6221_v44  ;;  %v3341_v38 = vpop.permute.xlu1 %3340 }
0x1bb0   :  { %3597 = vrot.lane.b32.xlu0 %v3566_v35, %s5805_s18  ;;  %3595 = vrot.lane.b32.xlu1 %v3565_v12, %s5805_s18  ;;  %v3559_v24 = vmul.bf16 %v7150_v54, %v6223_v45  ;;  %v3363_v32 = vsel %vm110_vm0, %v3343_v11, 0  ;;  %v3360_v62 = vsel %vm110_vm0, %v3341_v38, 0 }
0x1bb1   :  { %5304 = vmatprep.subr.bf16.mxu0 %v5806_v23 }
0x1bb4   :  { %3593 = vrot.lane.b32.xlu0 %v3564_v60, %s5805_s18  ;;  %3591 = vrot.lane.b32.xlu1 %v3563_v40, %s5805_s18 }
0x1bb7   :  { %5305 = vmatpush3.bf16.xpose.msra.mxu0 %v3366_v16 }
0x1bb8   :  { %3589 = vrot.lane.b32.xlu0 %v3562_v34, %s5805_s18  ;;  %3587 = vrot.lane.b32.xlu1 %v3561_v59, %s5805_s18 }
0x1bb9   :  { %5306 = vmatprep.subr.bf16.mxu0 %v5806_v23 }
0x1bbc   :  { %3585 = vrot.lane.b32.xlu0 %v3560_v21, %s5805_s18  ;;  %3583 = vrot.lane.b32.xlu1 %v3559_v24, %s5805_s18  ;;  %v7209_v21 = vrot.slane %v7106_v47, %v6394_v10  ;;  %v7221_v10 = vld [vmem:[%s7469_s1 + $0x120] sm:$0xff]  }
0x1bbe   :  { %v3302_v11 = vadd.f32 %v7144_v3, %v7209_v21 }
0x1bbf   :  { %5307 = vmatpush3.bf16.xpose.msra.mxu0 %v3363_v32 }
0x1bc0   :  { %5308 = vmatprep.subr.bf16.mxu0 %v5806_v23 }
0x1bc7   :  { %5309 = vmatpush3.bf16.xpose.msra.mxu0 %v3360_v62  ;;  %v3298_v62 = vadd.f32 %v7110_v26, %v7209_v21  ;;  %v7230_v26 = vld [vmem:[%s7469_s1 + $0x118] sm:$0xff]  }
0x1bc8   :  { %5369 = vmatprep.subr.bf16.mxu0 %v5806_v23 }
0x1bce   :  { %5311 = vmatmul.mubr.msk.bf16.vlgmr.msra.gmra.mxu0 %vm110_vm0, %v7112_v27 }
0x1bcf   :  { %5385 = vmatprep.mubr.msk.bf16.mxu0 %vm5807_vm4, %v5806_v23 }
0x1c22   :  { %v3598_v44 = vpop.permute.xlu0 %3597  ;;  %v3596_v14 = vpop.permute.xlu1 %3595 }
0x1c23   :  { %v3624_v45 = vsel %vm110_vm0, %v3598_v44, 0  ;;  %v3621_v7 = vsel %vm110_vm0, %v3596_v14, 0 }
0x1c24   :  { %5370 = vmatpush3.bf16.xpose.msra.mxu0 %v3624_v45  ;;  %v3315_v45 = vpack.c.bf16 %v3302_v11, %v3298_v62 }
0x1c25   :  { %5371 = vmatprep.subr.bf16.mxu0 %v5806_v23 }
0x1c26   :  { %v3594_v30 = vpop.permute.xlu0 %3593  ;;  %v3592_v27 = vpop.permute.xlu1 %3591  ;;  %v3331_v47 = vmul.bf16 %v7221_v10, %v3315_v45  ;;  %v3330_v3 = vmul.bf16 %v7230_v26, %v3315_v45 }
0x1c27   :  { %v3618_v18 = vsel %vm110_vm0, %v3594_v30, 0  ;;  %v3615_v31 = vsel %vm110_vm0, %v3592_v27, 0 }
0x1c2a   :  { %v3590_v25 = vpop.permute.xlu0 %3589  ;;  %v3588_v5 = vpop.permute.xlu1 %3587 }
0x1c2b   :  { %v3612_v4 = vsel %vm110_vm0, %v3590_v25, 0  ;;  %v3609_v29 = vsel %vm110_vm0, %v3588_v5, 0 }
0x1c2c   :  { %5372 = vmatpush3.bf16.xpose.msra.mxu0 %v3621_v7  ;;  %v7237_v7 = vld [vmem:[%s7469_s1 + $0x110] sm:$0xff]  }
0x1c2d   :  { %5373 = vmatprep.subr.bf16.mxu0 %v5806_v23  ;;  %v3329_v30 = vmul.bf16 %v7237_v7, %v3315_v45 }
0x1c2e   :  { %v3586_v9 = vpop.permute.xlu0 %3585  ;;  %v3584_v19 = vpop.permute.xlu1 %3583 }
0x1c2f   :  { %v3606_v2 = vsel %vm110_vm0, %v3586_v9, 0  ;;  %v3603_v53 = vsel %vm110_vm0, %v3584_v19, 0 }
0x1c34   :  { %5374 = vmatpush3.bf16.xpose.msra.mxu0 %v3618_v18  ;;  %v7244_v18 = vld [vmem:[%s7469_s1 + $0x108] sm:$0xff]  }
0x1c35   :  { %5375 = vmatprep.subr.bf16.mxu0 %v5806_v23  ;;  %v3328_v27 = vmul.bf16 %v7244_v18, %v3315_v45 }
0x1c3c   :  { %5376 = vmatpush3.bf16.xpose.msra.mxu0 %v3615_v31  ;;  %v7251_v31 = vld [vmem:[%s7469_s1 + $0x100] sm:$0xff]  }
0x1c3d   :  { %5377 = vmatprep.subr.bf16.mxu0 %v5806_v23  ;;  %v3327_v25 = vmul.bf16 %v7251_v31, %v3315_v45 }
0x1c44   :  { %5378 = vmatpush3.bf16.xpose.msra.mxu0 %v3612_v4  ;;  %v7258_v4 = vld [vmem:[%s7469_s1 + $0xf8] sm:$0xff]  }
0x1c45   :  { %5379 = vmatprep.subr.bf16.mxu0 %v5806_v23  ;;  %v3326_v5 = vmul.bf16 %v7258_v4, %v3315_v45 }
0x1c4c   :  { %5380 = vmatpush3.bf16.xpose.msra.mxu0 %v3609_v29  ;;  %v7265_v29 = vld [vmem:[%s7469_s1 + $0xf0] sm:$0xff]  }
0x1c4d   :  { %5381 = vmatprep.subr.bf16.mxu0 %v5806_v23  ;;  %v3325_v9 = vmul.bf16 %v7265_v29, %v3315_v45 }
0x1c54   :  { %5382 = vmatpush3.bf16.xpose.msra.mxu0 %v3606_v2  ;;  %v7272_v2 = vld [vmem:[%s7469_s1 + $0xe8] sm:$0xff]  }
0x1c55   :  { %5383 = vmatprep.subr.bf16.mxu0 %v5806_v23  ;;  %v3324_v19 = vmul.bf16 %v7272_v2, %v3315_v45  ;;  %v5615_v45 = vld [vmem:[%s7469_s1 + $0x168] sm:$0xff]  }
0x1c5c   :  { %5384 = vmatpush3.bf16.xpose.msra.mxu0 %v3603_v53 }
0x1c63   :  { %5386 = vmatmul.mubr.msk.bf16.vlgmr.msra.gmra.mxu0 %vm110_vm0, %v7150_v54 }
0x1c8e   :  { %v3417_v13 = vpop.f32.mrf.mxu0 }
0x1c8f   :  { %v3424_v17 = vmul.f32 0.35355338, %v3417_v13 }
0x1c90   :  { %v5312_v8 = vpop.f32.mrf.mxu0 }
0x1c91   :  { %3426 = vmax.xlane.f32.xlu0 %v3424_v17 }
0x1c92   :  { %v3420_v28 = vpop.f32.mrf.mxu0 }
0x1c93   :  { %v3425_v56 = vmul.f32 0.35355338, %v3420_v28 }
0x1c94   :  { %v5313_v0 = vpop.f32.mrf.mxu0 }
0x1c95   :  { %3428 = vmax.xlane.f32.xlu1 %v3425_v56 }
0x1d1a   :  { %v3427_v35 = vpop.xlane.xlu0 %3426 }
0x1d1b   :  { %v3430_v12 = vsub.f32 %v3424_v17, %v3427_v35 }
0x1d1d   :  { %v3432_v60 = vmul.f32 1.442695, %v3430_v12 }
0x1d1e   :  { %v3429_v40 = vpop.xlane.xlu1 %3428 }
0x1d1f   :  { %5736 = vpow2.f32 %v3432_v60  ;;  %v3431_v1 = vsub.f32 %v3425_v56, %v3429_v40 }
0x1d21   :  { %v3434_v16 = vmul.f32 1.442695, %v3431_v1 }
0x1d23   :  { %5738 = vpow2.f32 %v3434_v16  ;;  %v3660_v34 = vpop.f32.mrf.mxu0 }
0x1d24   :  { %v3667_v54 = vmul.f32 0.35355338, %v3660_v34 }
0x1d25   :  { %v5387_v59 = vpop.f32.mrf.mxu0 }
0x1d26   :  { %3669 = vmax.xlane.f32.xlu0 %v3667_v54 }
0x1d27   :  { %v3663_v24 = vpop.f32.mrf.mxu0 }
0x1d28   :  { %v7213_v32 = vmul.f32 0.35355338, %v3663_v24 }
0x1d29   :  { %v5388_v38 = vpop.f32.mrf.mxu0 }
0x1d2a   :  { %3671 = vmax.xlane.f32.xlu0 %v7213_v32 }
0x1d2c   :  { %v5737_v44 = vpop.eup %5736 }
0x1d2d   :  { %5346 = vmatprep.mubr.f32.mxu1 %v5737_v44 }
0x1d30   :  { %v5739_v14 = vpop.eup %5738 }
0x1d31   :  { %5347 = vmatmul.mubr.f32.vlgmr.msra.gmra.mxu1 %v5739_v14 }
0x1d32   :  { %5350 = vmatpush3.bf16.msra.mxu1 %v3331_v47  ;;  %5365 = vmatprep.mubr.msk.bf16.mxu1 %vm5807_vm4, %v5806_v23 }
0x1d33   :  { %5351 = vmatprep.subr.bf16.mxu1 %v5806_v23 }
0x1d36   :  { %5352 = vmatpush3.bf16.msra.mxu1 %v3330_v3 }
0x1d37   :  { %5353 = vmatprep.subr.bf16.mxu1 %v5806_v23 }
0x1d3a   :  { %5354 = vmatpush3.bf16.msra.mxu1 %v3329_v30  ;;  %v3810_v30 = vld [vmem:[%s7472_s4 + $0x75] ss:$0 sm:$0xff] }
0x1d3b   :  { %5355 = vmatprep.subr.bf16.mxu1 %v5806_v23 }
0x1d3e   :  { %5356 = vmatpush3.bf16.msra.mxu1 %v3328_v27 }
0x1d3f   :  { %5357 = vmatprep.subr.bf16.mxu1 %v5806_v23 }
0x1d42   :  { %5358 = vmatpush3.bf16.msra.mxu1 %v3327_v25 }
0x1d43   :  { %5359 = vmatprep.subr.bf16.mxu1 %v5806_v23 }
0x1d46   :  { %5360 = vmatpush3.bf16.msra.mxu1 %v3326_v5 }
0x1d47   :  { %5361 = vmatprep.subr.bf16.mxu1 %v5806_v23 }
0x1d4a   :  { %5362 = vmatpush3.bf16.msra.mxu1 %v3325_v9 }
0x1d4b   :  { %5363 = vmatprep.subr.bf16.mxu1 %v5806_v23 }
0x1d4e   :  { %5364 = vmatpush3.bf16.msra.mxu1 %v3324_v19 }
0x1d4f   :  { %5389 = vmatprep.subr.mxu1 %v6291_v42 }
0x1daf   :  { %v3670_v53 = vpop.xlane.xlu0 %3669 }
0x1db0   :  { %v3673_v13 = vsub.f32 %v3667_v54, %v3670_v53 }
0x1db2   :  { %v3675_v28 = vmul.f32 1.442695, %v3673_v13 }
0x1db3   :  { %v3672_v1 = vpop.xlane.xlu0 %3671 }
0x1df1   :  { %v5348_v17 = vpop.f32.mrf.mxu1 }
0x1df2   :  { %5740 = vrcp.f32 %v5348_v17 }
0x1df3   :  { %v3502_v8 = vpop.f32.mrf.mxu1 }
0x1df4   :  { %5742 = vrcp.f32 %v3502_v8 }
0x1df5   :  { %5744 = vpow2.f32 %v3675_v28 }
0x1dff   :  { %v5741_v56 = vpop.eup %5740 }
0x1e00   :  { %v3514_v12 = vmul.f32 %v5741_v56, %v5739_v14 }
0x1e01   :  { %v5743_v0 = vpop.eup %5742 }
0x1e02   :  { %v3513_v35 = vmul.f32 %v5743_v0, %v5737_v44  ;;  %v7276_v40 = vpop.eup %5744 }
0x1e04   :  { %v3515_v60 = vpack.c.bf16 %v3514_v12, %v3513_v35 }
0x1e06   :  { %5366 = vmatmul.mubr.bf16.vlgmr.msra.gmra.mxu1 %v3515_v60 }
0x1e07   :  { %5390 = vmatpush3.msra.mxu1 %v6291_v42  ;;  %5421 = vmatprep.mubr.f32.mxu1 %v7276_v40  ;;  %v3674_v42 = vsub.f32 %v7213_v32, %v3672_v1 }
0x1e08   :  { %5391 = vmatprep.subr.mxu1 %v6293_v43 }
0x1e09   :  { %5392 = vmatpush3.msra.mxu1 %v6293_v43  ;;  %v3677_v43 = vmul.f32 1.442695, %v3674_v42 }
0x1e0a   :  { %5393 = vmatprep.subr.mxu1 %v6296_v46 }
0x1e0b   :  { %5394 = vmatpush3.msra.mxu1 %v6296_v46  ;;  %5746 = vpow2.f32 %v3677_v43  ;;  %v3312_v46 = vadd.f32 %v7205_v15, %v7209_v21 }
0x1e0c   :  { %5395 = vmatprep.subr.mxu1 %v6303_v48 }
0x1e0d   :  { %5396 = vmatpush3.msra.mxu1 %v6303_v48  ;;  %v3308_v48 = vadd.f32 %v7147_v58, %v7209_v21  ;;  %v5614_v58 = vld [vmem:[%s7469_s1 + $0x170] sm:$0xff]  }
0x1e0e   :  { %5397 = vmatprep.subr.mxu1 %v6307_v49 }
0x1e0f   :  { %5398 = vmatpush3.msra.mxu1 %v6307_v49  ;;  %v3558_v49 = vpack.c.bf16 %v3312_v46, %v3308_v48 }
0x1e10   :  { %5399 = vmatprep.subr.mxu1 %v6311_v50 }
0x1e11   :  { %5400 = vmatpush3.msra.mxu1 %v6311_v50 }
0x1e12   :  { %5401 = vmatprep.subr.mxu1 %v6340_v36 }
0x1e13   :  { %5402 = vmatpush3.msra.mxu1 %v6340_v36  ;;  %v3574_v36 = vmul.bf16 %v7221_v10, %v3558_v49 }
0x1e14   :  { %5403 = vmatprep.subr.mxu1 %v6343_v37 }
0x1e15   :  { %5404 = vmatpush3.msra.mxu1 %v6343_v37  ;;  %v3573_v37 = vmul.bf16 %v7230_v26, %v3558_v49 }
0x1e16   :  { %5405 = vmatprep.subr.mxu1 %v6350_v39 }
0x1e17   :  { %5406 = vmatpush3.msra.mxu1 %v6350_v39  ;;  %v3572_v39 = vmul.bf16 %v7237_v7, %v3558_v49 }
0x1e18   :  { %5407 = vmatprep.subr.mxu1 %v6354_v41  ;;  %v5747_v50 = vpop.eup %5746 }
0x1e19   :  { %5408 = vmatpush3.msra.mxu1 %v6354_v41  ;;  %v3571_v41 = vmul.bf16 %v7244_v18, %v3558_v49 }
0x1e1a   :  { %5409 = vmatprep.subr.mxu1 %v6361_v51 }
0x1e1b   :  { %5410 = vmatpush3.msra.mxu1 %v6361_v51  ;;  %v3570_v51 = vmul.bf16 %v7251_v31, %v3558_v49 }
0x1e1c   :  { %5411 = vmatprep.subr.mxu1 %v6364_v52 }
0x1e1d   :  { %5412 = vmatpush3.msra.mxu1 %v6364_v52  ;;  %v3569_v52 = vmul.bf16 %v7258_v4, %v3558_v49 }
0x1e1e   :  { %5413 = vmatprep.subr.mxu1 %v6372_v55 }
0x1e1f   :  { %5414 = vmatpush3.msra.mxu1 %v6372_v55  ;;  %v3568_v55 = vmul.bf16 %v7265_v29, %v3558_v49 }
0x1e20   :  { %5415 = vmatprep.subr.mxu1 %v6375_v57 }
0x1e21   :  { %5416 = vmatpush3.msra.mxu1 %v6375_v57  ;;  %v3567_v57 = vmul.bf16 %v7272_v2, %v3558_v49 }
0x1e22   :  { %5417 = vmatprep.subr.mxu1 %v6382_v61 }
0x1e23   :  { %5418 = vmatpush3.msra.mxu1 %v6382_v61  ;;  %v5612_v61 = vld [vmem:[%s7469_s1 + $0x180] sm:$0xff]  }
0x1e24   :  { %5419 = vmatprep.subr.mxu1 %v6386_v63  ;;  %5444 = vmatprep.subr.bf16.mxu0 %v5612_v61 }
0x1e25   :  { %5420 = vmatpush3.msra.mxu1 %v6386_v63  ;;  %v5613_v63 = vld [vmem:[%s7469_s1 + $0x178] sm:$0xff]   ;;  %5445 = vmatpush3.bf16.msra.mxu0 %v5612_v61 }
0x1e26   :  { %5422 = vmatmul.mubr.f32.vlgmr.msra.gmra.mxu1 %v5747_v50  ;;  %5424 = vmatprep.subr.bf16.mxu1 %v5806_v23  ;;  %v5621_v61 = vld [vmem:[%s7469_s1 + $0x238] sm:$0xff]  }
0x1e27   :  { %5425 = vmatpush3.bf16.msra.mxu1 %v3574_v36  ;;  %5440 = vmatprep.mubr.msk.bf16.mxu1 %vm5807_vm4, %v5806_v23 }
0x1e28   :  { %5426 = vmatprep.subr.bf16.mxu1 %v5806_v23  ;;  %5446 = vmatprep.subr.bf16.mxu0 %v5613_v63 }
0x1e29   :  { %5447 = vmatpush3.bf16.msra.mxu0 %v5613_v63  ;;  %v5622_v63 = vld [vmem:[%s7469_s1 + $0x230] sm:$0xff]  }
0x1e2a   :  { %5448 = vmatprep.subr.bf16.mxu0 %v5614_v58 }
0x1e2b   :  { %5427 = vmatpush3.bf16.msra.mxu1 %v3573_v37 }
0x1e2c   :  { %5428 = vmatprep.subr.bf16.mxu1 %v5806_v23 }
0x1e2d   :  { %5449 = vmatpush3.bf16.msra.mxu0 %v5614_v58  ;;  %v5623_v58 = vld [vmem:[%s7469_s1 + $0x228] sm:$0xff]  }
0x1e2e   :  { %5450 = vmatprep.subr.bf16.mxu0 %v5615_v45 }
0x1e2f   :  { %5429 = vmatpush3.bf16.msra.mxu1 %v3572_v39 }
0x1e30   :  { %5430 = vmatprep.subr.bf16.mxu1 %v5806_v23 }
0x1e31   :  { %5451 = vmatpush3.bf16.msra.mxu0 %v5615_v45 }
0x1e33   :  { %5431 = vmatpush3.bf16.msra.mxu1 %v3571_v41  ;;  %v5616_v41 = vld [vmem:[%s7470_s2 + $0x58] sm:$0xff]  }
0x1e34   :  { %5432 = vmatprep.subr.bf16.mxu1 %v5806_v23 }
0x1e37   :  { %5433 = vmatpush3.bf16.msra.mxu1 %v3570_v51  ;;  %v5617_v51 = vld [vmem:[%s7470_s2 + $0x50] sm:$0xff]  }
0x1e38   :  { %5434 = vmatprep.subr.bf16.mxu1 %v5806_v23 }
0x1e3b   :  { %5435 = vmatpush3.bf16.msra.mxu1 %v3569_v52  ;;  %v5618_v52 = vld [vmem:[%s7470_s2 + $0x48] sm:$0xff]  }
0x1e3c   :  { %5436 = vmatprep.subr.bf16.mxu1 %v5806_v23 }
0x1e3f   :  { %5437 = vmatpush3.bf16.msra.mxu1 %v3568_v55  ;;  %v5619_v55 = vld [vmem:[%s7470_s2 + $0x40] sm:$0xff]  }
0x1e40   :  { %5438 = vmatprep.subr.bf16.mxu1 %v5806_v23 }
0x1e43   :  { %5439 = vmatpush3.bf16.msra.mxu1 %v3567_v57  ;;  %v5620_v57 = vld [vmem:[%s7469_s1 + $0x240] sm:$0xff]  }
0x1e44   :  { %5456 = vmatprep.subr.bf16.mxu1 %v5616_v41  ;;  %5468 = vmatprep.subr.bf16.mxu0 %v5620_v57 }
0x1ec6   :  { %v3550_v15 = vpop.f32.mrf.mxu1 }
0x1ec8   :  { %v5367_v16 = vpop.f32.mrf.mxu1 }
0x1eca   :  { %v3553_v34 = vpop.f32.mrf.mxu1 }
0x1ecb   :  { %v3800_v54 = vpack.c.bf16 %v3553_v34, %v3550_v15  ;;  %v5624_v15 = vld [vmem:[%s7469_s1 + $0x220] sm:$0xff]  }
0x1ecc   :  { %v5368_v59 = vpop.f32.mrf.mxu1 }
0x1ecd   :  { %5452 = vmatprep.mubr.msk.bf16.mxu0 %vm110_vm0, %v3800_v54 }
0x1ee6   :  { %v5423_v21 = vpop.f32.mrf.mxu1 }
0x1ee7   :  { %5748 = vrcp.f32 %v5423_v21 }
0x1ee8   :  { %v3745_v24 = vpop.f32.mrf.mxu1 }
0x1ee9   :  { %5750 = vrcp.f32 %v3745_v24 }
0x1ef4   :  { %v5749_v11 = vpop.eup %5748 }
0x1ef5   :  { %v3757_v62 = vmul.f32 %v5749_v11, %v5747_v50 }
0x1ef6   :  { %v5751_v32 = vpop.eup %5750 }
0x1ef7   :  { %v3756_v38 = vmul.f32 %v5751_v32, %v7276_v40 }
0x1ef9   :  { %v3758_v44 = vpack.c.bf16 %v3757_v62, %v3756_v38 }
0x1efb   :  { %5441 = vmatmul.mubr.bf16.vlgmr.msra.gmra.mxu1 %v3758_v44 }
0x1efc   :  { %5457 = vmatpush3.bf16.msra.mxu1 %v5616_v41 }
0x1efd   :  { %5458 = vmatprep.subr.bf16.mxu1 %v5617_v51 }
0x1f00   :  { %5459 = vmatpush3.bf16.msra.mxu1 %v5617_v51 }
0x1f01   :  { %5460 = vmatprep.subr.bf16.mxu1 %v5618_v52 }
0x1f04   :  { %5461 = vmatpush3.bf16.msra.mxu1 %v5618_v52 }
0x1f05   :  { %5462 = vmatprep.subr.bf16.mxu1 %v5619_v55 }
0x1f08   :  { %5463 = vmatpush3.bf16.msra.mxu1 %v5619_v55 }
0x1f09   :  { %5488 = vmatprep.subr.bf16.mxu1 %v5806_v23 }
0x1fbb   :  { %v3793_v14 = vpop.f32.mrf.mxu1 }
0x1fbd   :  { %v5442_v10 = vpop.f32.mrf.mxu1 }
0x1fbf   :  { %v3796_v47 = vpop.f32.mrf.mxu1 }
0x1fc0   :  { %v3801_v26 = vpack.c.bf16 %v3796_v47, %v3793_v14  ;;  %v3894_v47 = vld [vmem:[%s7472_s4 + $0x70] ss:$0 sm:$0xff] }
0x1fc1   :  { %v5443_v3 = vpop.f32.mrf.mxu1 }
0x1fc2   :  { %5453 = vmatmul.mubr.msk.bf16.vlgmr.msra.gmra.mxu0 %vm110_vm0, %v3801_v26 }
0x1fc3   :  { %5469 = vmatpush3.bf16.msra.mxu0 %v5620_v57 }
0x1fc4   :  { %5470 = vmatprep.subr.bf16.mxu0 %v5621_v61 }
0x1fc7   :  { %5471 = vmatpush3.bf16.msra.mxu0 %v5621_v61 }
0x1fc8   :  { %5472 = vmatprep.subr.bf16.mxu0 %v5622_v63 }
0x1fcb   :  { %5473 = vmatpush3.bf16.msra.mxu0 %v5622_v63 }
0x1fcc   :  { %5474 = vmatprep.subr.bf16.mxu0 %v5623_v58 }
0x1fcf   :  { %5475 = vmatpush3.bf16.msra.mxu0 %v5623_v58 }
0x1fd0   :  { %5476 = vmatprep.subr.bf16.mxu0 %v5624_v15 }
0x1fd3   :  { %5477 = vmatpush3.bf16.msra.mxu0 %v5624_v15 }
0x2082   :  { %v5454_v7 = vpop.f32.mrf.mxu0 }
0x2083   :  { %v3884_v27 = vadd.f32 %v5454_v7, %v3810_v30 }
0x2084   :  { %v3875_v18 = vpop.f32.mrf.mxu0 }
0x2085   :  { %v3876_v31 = vadd.f32 %v3875_v18, %v3810_v30  ;;  %v3892_v29 = vadd.f32 %v3884_v27, %v7094_v22  ;;  %v3895_v27 = vld [vmem:[%s7472_s4 + $0x71] ss:$0 sm:$0xff] }
0x2086   :  { %v5455_v25 = vpop.f32.mrf.mxu0 }
0x2087   :  { %v3890_v4 = vadd.f32 %v3876_v31, %v7086_v6  ;;  %v3887_v9 = vadd.f32 %v5455_v25, %v3810_v30  ;;  %v3902_v8 = vsel %vm110_vm0, %v3892_v29, 0.0 }
0x2088   :  { %v3878_v5 = vpop.f32.mrf.mxu0 }
0x2089   :  { %v3879_v2 = vadd.f32 %v3878_v5, %v3810_v30  ;;  %v3896_v19 = vsel %vm110_vm0, %v3890_v4, 0.0  ;;  %v3893_v13 = vadd.f32 %v3887_v9, %v7096_v33 }
0x208a   :  { %3897 = vadd.xlane.f32.xlu1 %v3896_v19 }
0x208b   :  { %v3891_v53 = vadd.f32 %v3879_v2, %v7088_v20  ;;  %v3905_v6 = vsel %vm110_vm0, %v3893_v13, 0.0 }
0x208d   :  { %v3899_v17 = vsel %vm110_vm0, %v3891_v53, 0.0 }
0x208e   :  { %3900 = vadd.xlane.f32.xlu0 %v3899_v17  ;;  %3903 = vadd.xlane.f32.xlu1 %v3902_v8  ;;  %v5625_v8 = vld [vmem:[%s7469_s1 + $0x218] sm:$0xff]  }
0x208f   :  { %5478 = vmatprep.subr.bf16.mxu0 %v5625_v8 }
0x2090   :  { %5479 = vmatpush3.bf16.msra.mxu0 %v5625_v8 }
0x2092   :  { %3906 = vadd.xlane.f32.xlu0 %v3905_v6  ;;  %v5626_v6 = vld [vmem:[%s7469_s1 + $0x210] sm:$0xff]  }
0x2093   :  { %5480 = vmatprep.subr.bf16.mxu0 %v5626_v6 }
0x2094   :  { %5481 = vmatpush3.bf16.msra.mxu0 %v5626_v6 }
0x2113   :  { %v3898_v28 = vpop.xlane.xlu1 %3897 }
0x2114   :  { %v3908_v22 = vmul.f32 0.015625, %v3898_v28  ;;  %v5627_v28 = vld [vmem:[%s7469_s1 + $0x208] sm:$0xff]  }
0x2115   :  { %5482 = vmatprep.subr.bf16.mxu0 %v5627_v28 }
0x2116   :  { %v7359_v56 = vsub.f32 %v3890_v4, %v3908_v22  ;;  %5483 = vmatpush3.bf16.msra.mxu0 %v5627_v28 }
0x2117   :  { %v3901_v0 = vpop.xlane.xlu0 %3900  ;;  %v3904_v35 = vpop.xlane.xlu1 %3903 }
0x2118   :  { %v3909_v12 = vmul.f32 0.015625, %v3901_v0  ;;  %v3910_v60 = vmul.f32 0.015625, %v3904_v35  ;;  %v3916_v20 = vmul.f32 %v7359_v56, %v7359_v56  ;;  %v3966_v0 = vld [vmem:[%s7472_s4 + $0x76] ss:$0 sm:$0xff] }
0x211a   :  { %v7363_v33 = vsub.f32 %v3891_v53, %v3909_v12  ;;  %v7365_v40 = vsub.f32 %v3892_v29, %v3910_v60  ;;  %v3920_v1 = vsel %vm110_vm0, %v3916_v20, 0.0 }
0x211b   :  { %v3907_v42 = vpop.xlane.xlu0 %3906  ;;  %3921 = vadd.xlane.f32.xlu1 %v3920_v1 }
0x211c   :  { %v3911_v43 = vmul.f32 0.015625, %v3907_v42  ;;  %v3917_v46 = vmul.f32 %v7363_v33, %v7363_v33  ;;  %v3918_v48 = vmul.f32 %v7365_v40, %v7365_v40 }
0x211e   :  { %v7372_v49 = vsub.f32 %v3893_v13, %v3911_v43  ;;  %v3923_v50 = vsel %vm110_vm0, %v3917_v46, 0.0  ;;  %v3926_v36 = vsel %vm110_vm0, %v3918_v48, 0.0 }
0x211f   :  { %3924 = vadd.xlane.f32.xlu0 %v3923_v50  ;;  %3927 = vadd.xlane.f32.xlu1 %v3926_v36  ;;  %v4068_v50 = vld [vmem:[%s7472_s4 + $0x77] ss:$0 sm:$0xff] }
0x2120   :  { %v3919_v37 = vmul.f32 %v7372_v49, %v7372_v49 }
0x2122   :  { %v3929_v39 = vsel %vm110_vm0, %v3919_v37, 0.0 }
0x2123   :  { %3930 = vadd.xlane.f32.xlu0 %v3929_v39 }
0x21a4   :  { %v3922_v16 = vpop.xlane.xlu1 %3921 }
0x21a5   :  { %v3932_v34 = vmul.f32 0.015625, %v3922_v16 }
0x21a7   :  { %v3936_v54 = vadd.f32 1e-05, %v3932_v34 }
0x21a8   :  { %v3925_v59 = vpop.xlane.xlu0 %3924  ;;  %v3928_v21 = vpop.xlane.xlu1 %3927 }
0x21a9   :  { %5752 = vrsqrt.f32 %v3936_v54  ;;  %v3933_v24 = vmul.f32 0.015625, %v3925_v59  ;;  %v3934_v11 = vmul.f32 0.015625, %v3928_v21 }
0x21ab   :  { %v3937_v32 = vadd.f32 1e-05, %v3933_v24  ;;  %v3938_v38 = vadd.f32 1e-05, %v3934_v11 }
0x21ac   :  { %v3931_v62 = vpop.xlane.xlu0 %3930 }
0x21ad   :  { %5754 = vrsqrt.f32 %v3937_v32  ;;  %v3935_v44 = vmul.f32 0.015625, %v3931_v62  ;;  %v5629_v62 = vld [vmem:[%s7470_s2 + $0x70] sm:$0xff]  }
0x21ae   :  { %5756 = vrsqrt.f32 %v3938_v38  ;;  %v5628_v38 = vld [vmem:[%s7470_s2 + $0x78] sm:$0xff]  }
0x21af   :  { %v3939_v45 = vadd.f32 1e-05, %v3935_v44  ;;  %v5630_v44 = vld [vmem:[%s7470_s2 + $0x68] sm:$0xff]  }
0x21b1   :  { %5758 = vrsqrt.f32 %v3939_v45  ;;  %v5631_v45 = vld [vmem:[%s7470_s2 + $0x60] sm:$0xff]  }
0x21b6   :  { %v5753_v14 = vpop.eup %5752 }
0x21b7   :  { %v3944_v10 = vmul.f32 %v5753_v14, %v7359_v56 }
0x21b9   :  { %v3948_v30 = vmul.f32 %v3944_v10, %v3894_v47 }
0x21ba   :  { %v5755_v26 = vpop.eup %5754 }
0x21bb   :  { %v5757_v3 = vpop.eup %5756  ;;  %v3945_v7 = vmul.f32 %v5755_v26, %v7363_v33  ;;  %v3952_v5 = vadd.f32 %v3948_v30, %v3895_v27 }
0x21bc   :  { %v3946_v18 = vmul.f32 %v5757_v3, %v7365_v40 }
0x21bd   :  { %v3949_v31 = vmul.f32 %v3945_v7, %v3894_v47 }
0x21be   :  { %v5759_v25 = vpop.eup %5758  ;;  %v3950_v9 = vmul.f32 %v3946_v18, %v3894_v47  ;;  %v4166_v18 = vld [vmem:[%s7472_s4 + $0x72] ss:$0 sm:$0xff] }
0x21bf   :  { %v3947_v4 = vmul.f32 %v5759_v25, %v7372_v49  ;;  %v3953_v29 = vadd.f32 %v3949_v31, %v3895_v27 }
0x21c0   :  { %v3954_v53 = vadd.f32 %v3950_v9, %v3895_v27 }
0x21c1   :  { %v3964_v2 = vpack.c.bf16 %v3953_v29, %v3952_v5  ;;  %v3951_v19 = vmul.f32 %v3947_v4, %v3894_v47 }
0x21c3   :  { %5464 = vmatprep.mubr.msk.bf16.mxu1 %vm110_vm0, %v3964_v2  ;;  %v3955_v13 = vadd.f32 %v3951_v19, %v3895_v27 }
0x21c5   :  { %v3965_v17 = vpack.c.bf16 %v3955_v13, %v3954_v53  ;;  %v4212_v13 = vld [vmem:[%s7472_s4 + $0x82] ss:$0 sm:$0xff] }
0x21c7   :  { %5465 = vmatmul.mubr.msk.bf16.vlgmr.msra.gmra.mxu1 %vm110_vm0, %v3965_v17 }
0x21c8   :  { %5496 = vmatprep.mubr.msk.bf16.mxu1 %vm5807_vm4, %v5806_v23  ;;  %5489 = vmatpush3.bf16.msra.mxu1 %v5628_v38 }
0x21c9   :  { %5490 = vmatprep.subr.bf16.mxu1 %v5806_v23 }
0x21cc   :  { %5491 = vmatpush3.bf16.msra.mxu1 %v5629_v62 }
0x21cd   :  { %5492 = vmatprep.subr.bf16.mxu1 %v5806_v23 }
0x21d0   :  { %5493 = vmatpush3.bf16.msra.mxu1 %v5630_v44 }
0x21d1   :  { %5494 = vmatprep.subr.bf16.mxu1 %v5806_v23  ;;  %v4167_v23 = vld [vmem:[%s7472_s4 + $0x73] ss:$0 sm:$0xff] }
0x21d4   :  { %5495 = vmatpush3.bf16.msra.mxu1 %v5631_v45 }
0x2287   :  { %v5466_v22 = vpop.f32.mrf.mxu1 }
0x2288   :  { %v4040_v20 = vadd.f32 %v5466_v22, %v3966_v0 }
0x2289   :  { %v4031_v56 = vpop.f32.mrf.mxu1 }
0x228a   :  { %v4032_v12 = vadd.f32 %v4031_v56, %v3966_v0  ;;  %v4048_v46 = vmax.f32 %v4040_v20, 0.0 }
0x228b   :  { %v5467_v35 = vpop.f32.mrf.mxu1 }
0x228c   :  { %v4043_v60 = vadd.f32 %v5467_v35, %v3966_v0  ;;  %v4046_v42 = vmax.f32 %v4032_v12, 0.0 }
0x228d   :  { %v4034_v33 = vpop.f32.mrf.mxu1 }
0x228e   :  { %v4035_v40 = vadd.f32 %v4034_v33, %v3966_v0  ;;  %v4049_v1 = vmax.f32 %v4043_v60, 0.0 }
0x2290   :  { %v4047_v43 = vmax.f32 %v4035_v40, 0.0  ;;  %v4067_v49 = vpack.c.bf16 %v4049_v1, %v4048_v46 }
0x2292   :  { %v4066_v48 = vpack.c.bf16 %v4047_v43, %v4046_v42 }
0x2294   :  { %5484 = vmatprep.mubr.bf16.mxu0 %v4066_v48 }
0x2295   :  { %5485 = vmatmul.mubr.bf16.vlgmr.msra.gmra.mxu0 %v4067_v49 }
0x2355   :  { %v5486_v36 = vpop.f32.mrf.mxu0 }
0x2356   :  { %v4159_v37 = vadd.f32 %v5486_v36, %v4068_v50 }
0x2357   :  { %v4151_v39 = vpop.f32.mrf.mxu0 }
0x2358   :  { %v4165_v41 = vadd.f32 %v4159_v37, %v3954_v53  ;;  %v4152_v51 = vadd.f32 %v4151_v39, %v4068_v50 }
0x2359   :  { %v5487_v52 = vpop.f32.mrf.mxu0 }
0x235a   :  { %v4164_v55 = vadd.f32 %v4152_v51, %v3952_v5  ;;  %v4171_v57 = vsel %vm110_vm0, %v4165_v41, 0.0 }
0x235b   :  { %4172 = vadd.xlane.f32.xlu1 %v4171_v57  ;;  %v4154_v61 = vpop.f32.mrf.mxu0 }
0x235c   :  { %v4168_v63 = vsel %vm110_vm0, %v4164_v55, 0.0 }
0x235d   :  { %4169 = vadd.xlane.f32.xlu0 %v4168_v63 }
0x23e4   :  { %v4173_v58 = vpop.xlane.xlu1 %4172 }
0x23e5   :  { %v4175_v15 = vmul.f32 0.015625, %v4173_v58 }
0x23e6   :  { %v4170_v16 = vpop.xlane.xlu0 %4169 }
0x23e7   :  { %v4177_v34 = vsub.f32 %v4165_v41, %v4175_v15  ;;  %v4174_v54 = vmul.f32 0.015625, %v4170_v16 }
0x23e9   :  { %v4176_v59 = vsub.f32 %v4164_v55, %v4174_v54  ;;  %v4179_v21 = vmul.f32 %v4177_v34, %v4177_v34 }
0x23eb   :  { %v4183_v24 = vsel %vm110_vm0, %v4179_v21, 0.0  ;;  %v4178_v11 = vmul.f32 %v4176_v59, %v4176_v59 }
0x23ec   :  { %4184 = vadd.xlane.f32.xlu1 %v4183_v24 }
0x23ed   :  { %v4180_v32 = vsel %vm110_vm0, %v4178_v11, 0.0 }
0x23ee   :  { %4181 = vadd.xlane.f32.xlu0 %v4180_v32 }
0x2475   :  { %v4185_v14 = vpop.xlane.xlu1 %4184 }
0x2476   :  { %v4187_v10 = vmul.f32 0.015625, %v4185_v14 }
0x2477   :  { %v4182_v47 = vpop.xlane.xlu0 %4181 }
0x2478   :  { %v4189_v26 = vadd.f32 1e-05, %v4187_v10  ;;  %v4186_v3 = vmul.f32 0.015625, %v4182_v47 }
0x247a   :  { %5760 = vrsqrt.f32 %v4189_v26  ;;  %v4188_v7 = vadd.f32 1e-05, %v4186_v3 }
0x247c   :  { %5762 = vrsqrt.f32 %v4188_v7 }
0x2487   :  { %v5761_v30 = vpop.eup %5760 }
0x2488   :  { %v4193_v27 = vmul.f32 %v5761_v30, %v4177_v34 }
0x2489   :  { %v5763_v31 = vpop.eup %5762 }
0x248a   :  { %v4195_v25 = vmul.f32 %v4193_v27, %v4166_v18  ;;  %v4192_v4 = vmul.f32 %v5763_v31, %v4176_v59 }
0x248c   :  { %v4194_v5 = vmul.f32 %v4192_v4, %v4166_v18  ;;  %v4197_v29 = vadd.f32 %v4195_v25, %v4167_v23 }
0x248e   :  { %v4196_v9 = vadd.f32 %v4194_v5, %v4167_v23  ;;  %v4207_v2 = vrot.slane %v4197_v29, 7 }
0x2490   :  { %v4210_v19 = vsel %vm4209_vm5, %v4196_v9, %v4207_v2 }
0x2491   :  { %v4211_v53 = vpack.c.bf16 %v4210_v19, %v4210_v19 }
0x2493   :  { %5497 = vmatmul.mubr.msk.bf16.vlgmr.msra.gmra.mxu1 %vm110_vm0, %v4211_v53 }
0x2553   :  { %v4274_v17 = vpop.f32.mrf.mxu1 }
0x2554   :  { %v4275_v8 = vadd.f32 %v4274_v17, %v4212_v13 }
0x2555   :  { %v5498_v6 = vpop.f32.mrf.mxu1 }
0x2556   :  { %4280 = vst [vmem:[#allocation2] sm:$0x3] %v4275_v8 }
0x2557   :  { %v4277_v28 = vpop.f32.mrf.mxu1 }
0x2558   :  { %5791 = shalt.err (!%p5788_p4)
}
0x2559   :  { %4290 = dma.vmem_to_hbm [thread:$0]  %s4288_s16, 32, %s7473_s5, [#allocation3]   ;;  %v5499_v22 = vpop.f32.mrf.mxu1 }
0x255a   :  { %5800 = dma.done.wait [#allocation3], 32  }
0x255b   :  { %5801 = vsyncadd [#allocation3], 4294967264 }
0x255c   :  { %4294 = vsyncpa [#allocation3], 1 }

</bundles_post_ra>
